<compile_context>
chip_gen: v5e
topology: v5e:2x2
jax: 0.10.0
libtpu: 0.0.40
codegen_flags: <defaults>
</compile_context>

<pallas_src>
import numpy as np

import jax
import jax.numpy as jnp
from jax import lax
from jax.experimental import pallas as pl

# ----------------------------- hyperparameters ------------------------------
B = 2            # batch
CH = 1           # channels (PyTorch default channels=1)
IMG = 16         # spatial H = W
PATCH = 4        # patch_size
DIM = 32         # dim
DEPTH = 2        # depth
HEADS = 2        # heads
DIM_HEAD = 16    # dim_head
MLP_DIM = 64     # mlp_dim
NUM_CLASSES = 5  # num_classes
LN_EPS = 1e-5

N_PATCHES = (IMG // PATCH) ** 2
PATCH_DIM = CH * PATCH * PATCH
HD = HEADS * DIM_HEAD
SCALE = 1.0 / (DIM_HEAD ** 0.5)
LANES = 128          # lane-dense width used for slabs / activations / output
OUT_PAD = LANES      # packed output width: [lith(5) | phi(1) | sw(1) | zeros]
W_ALIGN = 16         # bf16 sublane-pack alignment for weight-slab row blocks


def _round_up(x, m):
    return (x + m - 1) // m * m


# --------------------------- static slab layouts -----------------------------
def _w_entries():
    es = [("patch_w", PATCH_DIM, DIM)]
    for l in range(DEPTH):
        for h in range(HEADS):
            es += [(f"l{l}_wq{h}", DIM, DIM_HEAD),
                   (f"l{l}_wk{h}", DIM, DIM_HEAD),
                   (f"l{l}_wv{h}", DIM, DIM_HEAD),
                   (f"l{l}_wo{h}", DIM_HEAD, DIM)]
        es += [(f"l{l}_w1", DIM, MLP_DIM), (f"l{l}_w2", MLP_DIM, DIM)]
    es += [("lith_w1", DIM, DIM // 2), ("lith_w2", DIM // 2, NUM_CLASSES),
           ("phi_w1", DIM + NUM_CLASSES, DIM // 2), ("phi_w2", DIM // 2, 1),
           ("sw_w1", DIM + NUM_CLASSES + 1, DIM // 2), ("sw_w2", DIM // 2, 1)]
    return es


def _v_entries():
    es = [("pos", B * N_PATCHES, DIM),        # pos emb (+ folded patch bias), pre-tiled over B
          ("pool", B, B * N_PATCHES)]         # mean-pool matrix (block-diag 1/N)
    for l in range(DEPTH):
        for h in range(HEADS):
            es += [(f"l{l}_bq{h}", 1, DIM_HEAD), (f"l{l}_bk{h}", 1, DIM_HEAD),
                   (f"l{l}_bv{h}", 1, DIM_HEAD)]
        es += [(f"l{l}_bo", 1, DIM), (f"l{l}_b1", 1, MLP_DIM), (f"l{l}_b2", 1, DIM)]
    for name, d_in, d_out in (("lith", DIM, NUM_CLASSES),
                              ("phi", DIM + NUM_CLASSES, 1),
                              ("sw", DIM + NUM_CLASSES + 1, 1)):
        es += [(f"{name}_g1", 1, d_in), (f"{name}_b1", 1, d_in),
               (f"{name}_c1", 1, DIM // 2), (f"{name}_g2", 1, DIM // 2),
               (f"{name}_b2", 1, DIM // 2), (f"{name}_c2", 1, d_out)]
    return es


def _build_layout(entries, align):
    off, row = {}, 0
    for name, k, c in entries:
        off[name] = (row, k, c)
        row += _round_up(k, align)
    return off, row


W_LAYOUT, W_ROWS = _build_layout(_w_entries(), W_ALIGN)
V_LAYOUT, V_ROWS = _build_layout(_v_entries(), 1)


# ------------------------------ fused Pallas kernel ---------------------------
def fused_forward_kernel(patches_ref, w_ref, v_ref, out_ref):
    f32 = jnp.float32
    bf16 = jnp.bfloat16

    def wblk(name):                           # zero-padded bf16 weight block [Kpad, 128]
        r0, k, _ = W_LAYOUT[name]
        return w_ref[r0:r0 + _round_up(k, W_ALIGN), :]

    def vrow(name):                           # zero-padded f32 vector rows [k, 128]
        r0, k, _ = V_LAYOUT[name]
        return v_ref[r0:r0 + k, :]

    def norm(x):                              # affine-free LN (affines folded into weights)
        mu = jnp.mean(x, axis=-1, keepdims=True)
        xc = x - mu
        var = jnp.mean(xc * xc, axis=-1, keepdims=True)
        return xc * lax.rsqrt(var + LN_EPS)

    # ---- patch embedding + positional embedding (all lane-dense [B*N, 128]) ----
    tok = jnp.dot(patches_ref[...].astype(bf16), wblk("patch_w"),
                  preferred_element_type=f32) + vrow("pos")        # zeros past lane DIM

    # ---- transformer layers (trace-time unrolled, DEPTH=2) ----
    for l in range(DEPTH):
        # attention block (pre-norm; LN affine folded into per-head q/k/v weights)
        xn = norm(tok[:, :DIM]).astype(bf16)                       # [B*N, DIM]
        attn = None
        for h in range(HEADS):
            q = (jnp.dot(xn, wblk(f"l{l}_wq{h}"), preferred_element_type=f32)
                 + vrow(f"l{l}_bq{h}"))[:, :DIM_HEAD].astype(bf16)
            k = (jnp.dot(xn, wblk(f"l{l}_wk{h}"), preferred_element_type=f32)
                 + vrow(f"l{l}_bk{h}"))[:, :DIM_HEAD].astype(bf16)
            v = (jnp.dot(xn, wblk(f"l{l}_wv{h}"), preferred_element_type=f32)
                 + vrow(f"l{l}_bv{h}"))[:, :DIM_HEAD].astype(bf16)
            o_parts = []
            for b in range(B):                # per-image attention; vreg-aligned row slices
                r0, r1 = b * N_PATCHES, (b + 1) * N_PATCHES
                s = lax.dot_general(q[r0:r1], k[r0:r1],
                                    (((1,), (1,)), ((), ())),
                                    preferred_element_type=f32) * SCALE
                m = jnp.max(s, axis=-1, keepdims=True)
                e = jnp.exp(s - m)
                p = (e * pl.reciprocal(jnp.sum(e, axis=-1, keepdims=True),
                                       approx=True)).astype(bf16)
                o_parts.append(jnp.dot(p, v[r0:r1], preferred_element_type=f32))
            o_h = jnp.concatenate(o_parts, axis=0).astype(bf16)    # [B*N, DIM_HEAD]
            proj = jnp.dot(o_h, wblk(f"l{l}_wo{h}"), preferred_element_type=f32)
            attn = proj if attn is None else attn + proj           # accumulate through W_o
        tok = tok + attn + vrow(f"l{l}_bo")

        # MLP block (pre-norm; LN affine folded into w1/b1)
        xn = norm(tok[:, :DIM]).astype(bf16)
        h1 = jnp.maximum(jnp.dot(xn, wblk(f"l{l}_w1"), preferred_element_type=f32)
                         + vrow(f"l{l}_b1"), 0.0)
        tok = tok + (jnp.dot(h1[:, :MLP_DIM].astype(bf16), wblk(f"l{l}_w2"),
                             preferred_element_type=f32) + vrow(f"l{l}_b2"))

    # ---- mean pool over the token axis (x.mean(dim=1)) as one matmul ----
    pr0, pk, pc = V_LAYOUT["pool"]
    pooled = jnp.dot(v_ref[pr0:pr0 + pk, :pc], tok,
                     preferred_element_type=f32)                   # [B, 128], zeros past DIM

    # ---- autoregressive heads: LN -> ReLU -> Linear -> LN -> ReLU -> Linear ----
    def head(x128, d_in, prefix):
        # x128: [B, 128] with exact zeros at lanes >= d_in; the padded lanes of
        # gamma/beta are zero in the slab, so the LN output stays zero there.
        xs = x128[:, :d_in]
        mu = jnp.mean(xs, axis=-1, keepdims=True)
        var = jnp.mean((xs - mu) ** 2, axis=-1, keepdims=True)
        h = (x128 - mu) * lax.rsqrt(var + LN_EPS) * vrow(f"{prefix}_g1") \
            + vrow(f"{prefix}_b1")
        h = jnp.maximum(h, 0.0)
        h = (jnp.dot(h[:, :_round_up(d_in, W_ALIGN)].astype(jnp.bfloat16),
                     wblk(f"{prefix}_w1"), preferred_element_type=f32)
             + vrow(f"{prefix}_c1"))
        hs = h[:, :DIM // 2]
        mu = jnp.mean(hs, axis=-1, keepdims=True)
        var = jnp.mean((hs - mu) ** 2, axis=-1, keepdims=True)
        h = (h - mu) * lax.rsqrt(var + LN_EPS) * vrow(f"{prefix}_g2") \
            + vrow(f"{prefix}_b2")
        h = jnp.maximum(h, 0.0)
        return (jnp.dot(h[:, :DIM // 2].astype(jnp.bfloat16), wblk(f"{prefix}_w2"),
                        preferred_element_type=f32) + vrow(f"{prefix}_c2"))

    lith_full = head(pooled, DIM, "lith")                          # [B,128], real :5
    lith_logits = lith_full[:, :NUM_CLASSES]
    e = jnp.exp(lith_logits - jnp.max(lith_logits, axis=-1, keepdims=True))
    lith_prob = e / jnp.sum(e, axis=-1, keepdims=True)             # exact softmax (feeds chain)

    pad_phi = jnp.zeros((B, LANES - DIM - NUM_CLASSES), f32)
    x_phi = jnp.concatenate([pooled[:, :DIM], lith_prob, pad_phi], axis=-1)
    phi = head(x_phi, DIM + NUM_CLASSES, "phi")[:, :1]             # [B,1]

    pad_sw = jnp.zeros((B, LANES - DIM - NUM_CLASSES - 1), f32)
    x_sw = jnp.concatenate([pooled[:, :DIM], lith_prob, phi, pad_sw], axis=-1)
    sw_logit = head(x_sw, DIM + NUM_CLASSES + 1, "sw")[:, :1]
    sw = 1.0 / (1.0 + jnp.exp(-sw_logit))                          # exact sigmoid

    # ---- single lane-dense packed store: [lith(5) | phi(1) | sw(1) | zeros] ----
    lane = lax.broadcasted_iota(jnp.int32, (B, OUT_PAD), 1)
    out = jnp.where(lane == NUM_CLASSES, phi, lith_full)           # lith_full already 0 past 5
    out = jnp.where(lane == NUM_CLASSES + 1, sw, out)
    out_ref[...] = out


# --------------------------------- raw params ---------------------------------
def _dense(key, fan_in, fan_out):
    w = jax.random.normal(key, (fan_in, fan_out), jnp.float32) * 0.02
    b = jnp.zeros((1, fan_out), jnp.float32)
    return w, b


def _ln_params(d):
    return jnp.ones((1, d), jnp.float32), jnp.zeros((1, d), jnp.float32)


def _head_params(key, d_in, d_hidden, d_out):
    k1, k2 = jax.random.split(key)
    g1, b1 = _ln_params(d_in)
    w1, c1 = _dense(k1, d_in, d_hidden)
    g2, b2 = _ln_params(d_hidden)
    w2, c2 = _dense(k2, d_hidden, d_out)
    return dict(g1=g1, b1=b1, w1=w1, c1=c1, g2=g2, b2=b2, w2=w2, c2=c2)


def init_params(key):
    keys = jax.random.split(key, 6)
    patch_w, patch_b = _dense(keys[0], PATCH_DIM, DIM)
    pos_emb = jax.random.normal(keys[1], (1, N_PATCHES, DIM), jnp.float32) * 0.02

    layers = []
    for lk in jax.random.split(keys[2], DEPTH):
        k1, k2, k3, k4 = jax.random.split(lk, 4)
        ln1_g, ln1_b = _ln_params(DIM)
        wqkv, bqkv = _dense(k1, DIM, 3 * HD)
        wo, bo = _dense(k2, HD, DIM)
        ln2_g, ln2_b = _ln_params(DIM)
        w1, b1 = _dense(k3, DIM, MLP_DIM)
        w2, b2 = _dense(k4, MLP_DIM, DIM)
        layers.append(dict(ln1_g=ln1_g, ln1_b=ln1_b, wqkv=wqkv, bqkv=bqkv,
                           wo=wo, bo=bo, ln2_g=ln2_g, ln2_b=ln2_b,
                           w1=w1, b1=b1, w2=w2, b2=b2))

    lith = _head_params(keys[3], DIM, DIM // 2, NUM_CLASSES)
    phi = _head_params(keys[4], DIM + NUM_CLASSES, DIM // 2, 1)
    sw = _head_params(keys[5], DIM + NUM_CLASSES + 1, DIM // 2, 1)
    return dict(patch_w=patch_w, patch_b=patch_b, pos_emb=pos_emb,
                layers=layers, lith=lith, phi=phi, sw=sw)


# ---------------------- one-time host-side parameter packing ------------------
def pack_params(params):
    """Pack all leaves into two slabs (run once, outside jit).

    Weight slab (bf16 [W_ROWS,128]): every matrix as a zero-padded [Kpad,128]
    row block (per-head q/k/v/o splits, LN affines folded into the linears).
    Vector slab (f32 [V_ROWS,128]): pos emb (+patch bias, tiled over B), the
    pooling matrix, and every bias / head-LN gamma/beta, one row each.
    """
    w = np.zeros((W_ROWS, LANES), np.float32)
    v = np.zeros((V_ROWS, LANES), np.float32)

    def put_w(name, mat):
        r0, k, c = W_LAYOUT[name]
        mat = np.asarray(mat, np.float32)
        assert mat.shape == (k, c), (name, mat.shape, (k, c))
        w[r0:r0 + k, :c] = mat

    def put_v(name, vec):
        r0, k, c = V_LAYOUT[name]
        v[r0:r0 + k, :c] = np.asarray(vec, np.float32).reshape(k, c)

    put_w("patch_w", params["patch_w"])
    pos = np.asarray(params["pos_emb"], np.float32).reshape(N_PATCHES, DIM)
    pos = pos + np.asarray(params["patch_b"], np.float32)          # fold patch bias
    put_v("pos", np.tile(pos, (B, 1)))                             # pre-tile over batch
    put_v("pool", np.kron(np.eye(B), np.ones((1, N_PATCHES))) / N_PATCHES)

    for l, lyr in enumerate(params["layers"]):
        g1 = np.asarray(lyr["ln1_g"], np.float32).reshape(DIM)     # fold LN1 into q/k/v
        b1 = np.asarray(lyr["ln1_b"], np.float32).reshape(DIM)
        wqkv = np.asarray(lyr["wqkv"], np.float32)
        bqkv = np.asarray(lyr["bqkv"], np.float32).reshape(-1)
        wo = np.asarray(lyr["wo"], np.float32)
        for h in range(HEADS):
            for j, nm in enumerate(("q", "k", "v")):
                c0 = j * HD + h * DIM_HEAD
                blk = wqkv[:, c0:c0 + DIM_HEAD]
                put_w(f"l{l}_w{nm}{h}", g1[:, None] * blk)
                put_v(f"l{l}_b{nm}{h}", b1 @ blk + bqkv[c0:c0 + DIM_HEAD])
            put_w(f"l{l}_wo{h}", wo[h * DIM_HEAD:(h + 1) * DIM_HEAD, :])
        put_v(f"l{l}_bo", lyr["bo"])
        g2 = np.asarray(lyr["ln2_g"], np.float32).reshape(DIM)     # fold LN2 into w1
        b2 = np.asarray(lyr["ln2_b"], np.float32).reshape(DIM)
        w1 = np.asarray(lyr["w1"], np.float32)
        put_w(f"l{l}_w1", g2[:, None] * w1)
        put_v(f"l{l}_b1", b2 @ w1 + np.asarray(lyr["b1"], np.float32).reshape(-1))
        put_w(f"l{l}_w2", lyr["w2"])
        put_v(f"l{l}_b2", lyr["b2"])

    for name in ("lith", "phi", "sw"):
        hp = params[name]
        put_v(f"{name}_g1", hp["g1"]); put_v(f"{name}_b1", hp["b1"])
        put_w(f"{name}_w1", hp["w1"]); put_v(f"{name}_c1", hp["c1"])
        put_v(f"{name}_g2", hp["g2"]); put_v(f"{name}_b2", hp["b2"])
        put_w(f"{name}_w2", hp["w2"]); put_v(f"{name}_c2", hp["c2"])

    return jnp.asarray(w, jnp.bfloat16), jnp.asarray(v, jnp.float32)


# ----------------------------------- forward ----------------------------------
def vit_autoregressor_forward(w_slab, v_slab, x):
    Bx, C, H, W = x.shape
    gh, gw = H // PATCH, W // PATCH
    # patchify: b c (gh p1) (gw p2) -> (b gh gw) (p1 p2 c)   [tiny one-time XLA op]
    patches = x.reshape(Bx, C, gh, PATCH, gw, PATCH).transpose(0, 2, 4, 3, 5, 1)
    patches = patches.reshape(Bx * gh * gw, PATCH * PATCH * C)

    packed = pl.pallas_call(
        fused_forward_kernel,
        out_shape=jax.ShapeDtypeStruct((Bx, OUT_PAD), jnp.float32),
    )(patches, w_slab, v_slab)

    lith_logits = packed[:, :NUM_CLASSES]
    phi_out = packed[:, NUM_CLASSES:NUM_CLASSES + 1]
    sw_out = packed[:, NUM_CLASSES + 1:NUM_CLASSES + 2]
    return lith_logits, phi_out, sw_out


# ------------------------------------ main -------------------------------------
if __name__ == "__main__":
    key = jax.random.PRNGKey(0)
    kx, kp = jax.random.split(key)
    x = jax.random.normal(kx, (B, CH, IMG, IMG), jnp.float32)
    params = init_params(kp)
    w_slab, v_slab = pack_params(params)      # host-side packing, runs once

    fwd = jax.jit(vit_autoregressor_forward)
    lith, phi, sw = fwd(w_slab, v_slab, x)
    jax.block_until_ready((lith, phi, sw))

    assert lith.shape == (B, NUM_CLASSES)
    assert phi.shape == (B, 1)
    assert sw.shape == (B, 1)
    assert bool(jnp.all(jnp.isfinite(lith))) and bool(jnp.all(jnp.isfinite(phi)))
    assert bool(jnp.all((sw >= 0.0) & (sw <= 1.0)))
    print("KERNEL_OK")
</pallas_src>

<mosaic_0001>
module attributes {stable_mosaic.version = 11 : i64} {
  func.func @fused_forward_kernel(%arg0: memref<32x16xf32, #tpu.memory_space<vmem>>, %arg1: memref<832x128xbf16, #tpu.memory_space<vmem>>, %arg2: memref<70x128xf32, #tpu.memory_space<vmem>>, %arg3: memref<2x128xf32, #tpu.memory_space<vmem>>) attributes {dimension_semantics = [], scalar_prefetch = 0 : i64, scratch_operands = 0 : i64, tpu.core_type = #tpu.core_type<tc>} {
    %c0 = arith.constant 0 : index
    %c0_0 = arith.constant 0 : index
    %0 = vector.load %arg0[%c0, %c0_0] : memref<32x16xf32, #tpu.memory_space<vmem>>, vector<32x16xf32>
    %1 = arith.truncf %0 : vector<32x16xf32> to vector<32x16xbf16>
    %c0_1 = arith.constant 0 : index
    %c0_2 = arith.constant 0 : index
    %2 = vector.load %arg1[%c0_1, %c0_2] : memref<832x128xbf16, #tpu.memory_space<vmem>>, vector<16x128xbf16>
    %cst = arith.constant dense<0.000000e+00> : vector<32x128xf32>
    %3 = tpu.matmul %1, %2, %cst {dimension_numbers = #tpu.dot_dimension_numbers<[1], [0], [0], [1], [0, 0, 1, 1], [], []>} : vector<32x16xbf16>, vector<16x128xbf16>, vector<32x128xf32> -> vector<32x128xf32>
    %c0_3 = arith.constant 0 : index
    %c0_4 = arith.constant 0 : index
    %4 = vector.load %arg2[%c0_3, %c0_4] : memref<70x128xf32, #tpu.memory_space<vmem>>, vector<32x128xf32>
    %5 = arith.addf %3, %4 : vector<32x128xf32>
    %6 = vector.extract_strided_slice %5 {offsets = [0, 0], sizes = [32, 32], strides = [1, 1]} : vector<32x128xf32> to vector<32x32xf32>
    %cst_5 = arith.constant dense<0.000000e+00> : vector<32xf32>
    %7 = vector.multi_reduction <add>, %6, %cst_5 [1] : vector<32x32xf32> to vector<32xf32>
    %8 = vector.shape_cast %7 : vector<32xf32> to vector<32x1xf32>
    %cst_6 = arith.constant 3.200000e+01 : f32
    %9 = vector.broadcast %cst_6 : f32 to vector<32x1xf32>
    %10 = arith.divf %8, %9 : vector<32x1xf32>
    %11 = vector.broadcast %10 : vector<32x1xf32> to vector<32x32xf32>
    %12 = arith.subf %6, %11 : vector<32x32xf32>
    %13 = arith.mulf %12, %12 : vector<32x32xf32>
    %cst_7 = arith.constant dense<0.000000e+00> : vector<32xf32>
    %14 = vector.multi_reduction <add>, %13, %cst_7 [1] : vector<32x32xf32> to vector<32xf32>
    %15 = vector.shape_cast %14 : vector<32xf32> to vector<32x1xf32>
    %cst_8 = arith.constant 3.200000e+01 : f32
    %16 = vector.broadcast %cst_8 : f32 to vector<32x1xf32>
    %17 = arith.divf %15, %16 : vector<32x1xf32>
    %cst_9 = arith.constant 9.99999974E-6 : f32
    %18 = vector.broadcast %cst_9 : f32 to vector<32x1xf32>
    %19 = arith.addf %17, %18 : vector<32x1xf32>
    %20 = math.rsqrt %19 : vector<32x1xf32>
    %21 = vector.broadcast %20 : vector<32x1xf32> to vector<32x32xf32>
    %22 = arith.mulf %12, %21 : vector<32x32xf32>
    %23 = arith.truncf %22 : vector<32x32xf32> to vector<32x32xbf16>
    %c16 = arith.constant 16 : index
    %c0_10 = arith.constant 0 : index
    %24 = vector.load %arg1[%c16, %c0_10] : memref<832x128xbf16, #tpu.memory_space<vmem>>, vector<32x128xbf16>
    %cst_11 = arith.constant dense<0.000000e+00> : vector<32x128xf32>
    %25 = tpu.matmul %23, %24, %cst_11 {dimension_numbers = #tpu.dot_dimension_numbers<[1], [0], [0], [1], [0, 0, 1, 1], [], []>} : vector<32x32xbf16>, vector<32x128xbf16>, vector<32x128xf32> -> vector<32x128xf32>
    %c34 = arith.constant 34 : index
    %c0_12 = arith.constant 0 : index
    %26 = vector.load %arg2[%c34, %c0_12] : memref<70x128xf32, #tpu.memory_space<vmem>>, vector<1x128xf32>
    %27 = vector.broadcast %26 : vector<1x128xf32> to vector<32x128xf32>
    %28 = arith.addf %25, %27 : vector<32x128xf32>
    %29 = vector.extract_strided_slice %28 {offsets = [0, 0], sizes = [32, 16], strides = [1, 1]} : vector<32x128xf32> to vector<32x16xf32>
    %30 = arith.truncf %29 : vector<32x16xf32> to vector<32x16xbf16>
    %c48 = arith.constant 48 : index
    %c0_13 = arith.constant 0 : index
    %31 = vector.load %arg1[%c48, %c0_13] : memref<832x128xbf16, #tpu.memory_space<vmem>>, vector<32x128xbf16>
    %cst_14 = arith.constant dense<0.000000e+00> : vector<32x128xf32>
    %32 = tpu.matmul %23, %31, %cst_14 {dimension_numbers = #tpu.dot_dimension_numbers<[1], [0], [0], [1], [0, 0, 1, 1], [], []>} : vector<32x32xbf16>, vector<32x128xbf16>, vector<32x128xf32> -> vector<32x128xf32>
    %c35 = arith.constant 35 : index
    %c0_15 = arith.constant 0 : index
    %33 = vector.load %arg2[%c35, %c0_15] : memref<70x128xf32, #tpu.memory_space<vmem>>, vector<1x128xf32>
    %34 = vector.broadcast %33 : vector<1x128xf32> to vector<32x128xf32>
    %35 = arith.addf %32, %34 : vector<32x128xf32>
    %36 = vector.extract_strided_slice %35 {offsets = [0, 0], sizes = [32, 16], strides = [1, 1]} : vector<32x128xf32> to vector<32x16xf32>
    %37 = arith.truncf %36 : vector<32x16xf32> to vector<32x16xbf16>
    %c80 = arith.constant 80 : index
    %c0_16 = arith.constant 0 : index
    %38 = vector.load %arg1[%c80, %c0_16] : memref<832x128xbf16, #tpu.memory_space<vmem>>, vector<32x128xbf16>
    %cst_17 = arith.constant dense<0.000000e+00> : vector<32x128xf32>
    %39 = tpu.matmul %23, %38, %cst_17 {dimension_numbers = #tpu.dot_dimension_numbers<[1], [0], [0], [1], [0, 0, 1, 1], [], []>} : vector<32x32xbf16>, vector<32x128xbf16>, vector<32x128xf32> -> vector<32x128xf32>
    %c36 = arith.constant 36 : index
    %c0_18 = arith.constant 0 : index
    %40 = vector.load %arg2[%c36, %c0_18] : memref<70x128xf32, #tpu.memory_space<vmem>>, vector<1x128xf32>
    %41 = vector.broadcast %40 : vector<1x128xf32> to vector<32x128xf32>
    %42 = arith.addf %39, %41 : vector<32x128xf32>
    %43 = vector.extract_strided_slice %42 {offsets = [0, 0], sizes = [32, 16], strides = [1, 1]} : vector<32x128xf32> to vector<32x16xf32>
    %44 = arith.truncf %43 : vector<32x16xf32> to vector<32x16xbf16>
    %45 = vector.extract_strided_slice %30 {offsets = [0, 0], sizes = [16, 16], strides = [1, 1]} : vector<32x16xbf16> to vector<16x16xbf16>
    %46 = vector.extract_strided_slice %37 {offsets = [0, 0], sizes = [16, 16], strides = [1, 1]} : vector<32x16xbf16> to vector<16x16xbf16>
    %cst_19 = arith.constant dense<0.000000e+00> : vector<16x16xf32>
    %47 = tpu.matmul %45, %46, %cst_19 {dimension_numbers = #tpu.dot_dimension_numbers<[1], [1], [0], [0], [0, 0, 1, 0], [], []>} : vector<16x16xbf16>, vector<16x16xbf16>, vector<16x16xf32> -> vector<16x16xf32>
    %cst_20 = arith.constant 2.500000e-01 : f32
    %48 = vector.broadcast %cst_20 : f32 to vector<16x16xf32>
    %49 = arith.mulf %47, %48 : vector<16x16xf32>
    %cst_21 = arith.constant dense<0xFF800000> : vector<16xf32>
    %50 = vector.multi_reduction <maximumf>, %49, %cst_21 [1] : vector<16x16xf32> to vector<16xf32>
    %51 = vector.shape_cast %50 : vector<16xf32> to vector<16x1xf32>
    %52 = vector.broadcast %51 : vector<16x1xf32> to vector<16x16xf32>
    %53 = arith.subf %49, %52 : vector<16x16xf32>
    %54 = math.exp %53 : vector<16x16xf32>
    %cst_22 = arith.constant dense<0.000000e+00> : vector<16xf32>
    %55 = vector.multi_reduction <add>, %54, %cst_22 [1] : vector<16x16xf32> to vector<16xf32>
    %56 = vector.shape_cast %55 : vector<16xf32> to vector<16x1xf32>
    %57 = tpu.reciprocal %56 {approx = true} : vector<16x1xf32> -> vector<16x1xf32>
    %58 = vector.broadcast %57 : vector<16x1xf32> to vector<16x16xf32>
    %59 = arith.mulf %54, %58 : vector<16x16xf32>
    %60 = arith.truncf %59 : vector<16x16xf32> to vector<16x16xbf16>
    %61 = vector.extract_strided_slice %44 {offsets = [0, 0], sizes = [16, 16], strides = [1, 1]} : vector<32x16xbf16> to vector<16x16xbf16>
    %cst_23 = arith.constant dense<0.000000e+00> : vector<16x16xf32>
    %62 = tpu.matmul %60, %61, %cst_23 {dimension_numbers = #tpu.dot_dimension_numbers<[1], [0], [0], [1], [0, 0, 1, 1], [], []>} : vector<16x16xbf16>, vector<16x16xbf16>, vector<16x16xf32> -> vector<16x16xf32>
    %63 = vector.extract_strided_slice %30 {offsets = [16, 0], sizes = [16, 16], strides = [1, 1]} : vector<32x16xbf16> to vector<16x16xbf16>
    %64 = vector.extract_strided_slice %37 {offsets = [16, 0], sizes = [16, 16], strides = [1, 1]} : vector<32x16xbf16> to vector<16x16xbf16>
    %cst_24 = arith.constant dense<0.000000e+00> : vector<16x16xf32>
    %65 = tpu.matmul %63, %64, %cst_24 {dimension_numbers = #tpu.dot_dimension_numbers<[1], [1], [0], [0], [0, 0, 1, 0], [], []>} : vector<16x16xbf16>, vector<16x16xbf16>, vector<16x16xf32> -> vector<16x16xf32>
    %cst_25 = arith.constant 2.500000e-01 : f32
    %66 = vector.broadcast %cst_25 : f32 to vector<16x16xf32>
    %67 = arith.mulf %65, %66 : vector<16x16xf32>
    %cst_26 = arith.constant dense<0xFF800000> : vector<16xf32>
    %68 = vector.multi_reduction <maximumf>, %67, %cst_26 [1] : vector<16x16xf32> to vector<16xf32>
    %69 = vector.shape_cast %68 : vector<16xf32> to vector<16x1xf32>
    %70 = vector.broadcast %69 : vector<16x1xf32> to vector<16x16xf32>
    %71 = arith.subf %67, %70 : vector<16x16xf32>
    %72 = math.exp %71 : vector<16x16xf32>
    %cst_27 = arith.constant dense<0.000000e+00> : vector<16xf32>
    %73 = vector.multi_reduction <add>, %72, %cst_27 [1] : vector<16x16xf32> to vector<16xf32>
    %74 = vector.shape_cast %73 : vector<16xf32> to vector<16x1xf32>
    %75 = tpu.reciprocal %74 {approx = true} : vector<16x1xf32> -> vector<16x1xf32>
    %76 = vector.broadcast %75 : vector<16x1xf32> to vector<16x16xf32>
    %77 = arith.mulf %72, %76 : vector<16x16xf32>
    %78 = arith.truncf %77 : vector<16x16xf32> to vector<16x16xbf16>
    %79 = vector.extract_strided_slice %44 {offsets = [16, 0], sizes = [16, 16], strides = [1, 1]} : vector<32x16xbf16> to vector<16x16xbf16>
    %cst_28 = arith.constant dense<0.000000e+00> : vector<16x16xf32>
    %80 = tpu.matmul %78, %79, %cst_28 {dimension_numbers = #tpu.dot_dimension_numbers<[1], [0], [0], [1], [0, 0, 1, 1], [], []>} : vector<16x16xbf16>, vector<16x16xbf16>, vector<16x16xf32> -> vector<16x16xf32>
    %81 = tpu.concatenate %62, %80 in 0 : vector<16x16xf32>, vector<16x16xf32> -> vector<32x16xf32>
    %82 = arith.truncf %81 : vector<32x16xf32> to vector<32x16xbf16>
    %c112 = arith.constant 112 : index
    %c0_29 = arith.constant 0 : index
    %83 = vector.load %arg1[%c112, %c0_29] : memref<832x128xbf16, #tpu.memory_space<vmem>>, vector<16x128xbf16>
    %cst_30 = arith.constant dense<0.000000e+00> : vector<32x128xf32>
    %84 = tpu.matmul %82, %83, %cst_30 {dimension_numbers = #tpu.dot_dimension_numbers<[1], [0], [0], [1], [0, 0, 1, 1], [], []>} : vector<32x16xbf16>, vector<16x128xbf16>, vector<32x128xf32> -> vector<32x128xf32>
    %c128 = arith.constant 128 : index
    %c0_31 = arith.constant 0 : index
    %85 = vector.load %arg1[%c128, %c0_31] : memref<832x128xbf16, #tpu.memory_space<vmem>>, vector<32x128xbf16>
    %cst_32 = arith.constant dense<0.000000e+00> : vector<32x128xf32>
    %86 = tpu.matmul %23, %85, %cst_32 {dimension_numbers = #tpu.dot_dimension_numbers<[1], [0], [0], [1], [0, 0, 1, 1], [], []>} : vector<32x32xbf16>, vector<32x128xbf16>, vector<32x128xf32> -> vector<32x128xf32>
    %c37 = arith.constant 37 : index
    %c0_33 = arith.constant 0 : index
    %87 = vector.load %arg2[%c37, %c0_33] : memref<70x128xf32, #tpu.memory_space<vmem>>, vector<1x128xf32>
    %88 = vector.broadcast %87 : vector<1x128xf32> to vector<32x128xf32>
    %89 = arith.addf %86, %88 : vector<32x128xf32>
    %90 = vector.extract_strided_slice %89 {offsets = [0, 0], sizes = [32, 16], strides = [1, 1]} : vector<32x128xf32> to vector<32x16xf32>
    %91 = arith.truncf %90 : vector<32x16xf32> to vector<32x16xbf16>
    %c160 = arith.constant 160 : index
    %c0_34 = arith.constant 0 : index
    %92 = vector.load %arg1[%c160, %c0_34] : memref<832x128xbf16, #tpu.memory_space<vmem>>, vector<32x128xbf16>
    %cst_35 = arith.constant dense<0.000000e+00> : vector<32x128xf32>
    %93 = tpu.matmul %23, %92, %cst_35 {dimension_numbers = #tpu.dot_dimension_numbers<[1], [0], [0], [1], [0, 0, 1, 1], [], []>} : vector<32x32xbf16>, vector<32x128xbf16>, vector<32x128xf32> -> vector<32x128xf32>
    %c38 = arith.constant 38 : index
    %c0_36 = arith.constant 0 : index
    %94 = vector.load %arg2[%c38, %c0_36] : memref<70x128xf32, #tpu.memory_space<vmem>>, vector<1x128xf32>
    %95 = vector.broadcast %94 : vector<1x128xf32> to vector<32x128xf32>
    %96 = arith.addf %93, %95 : vector<32x128xf32>
    %97 = vector.extract_strided_slice %96 {offsets = [0, 0], sizes = [32, 16], strides = [1, 1]} : vector<32x128xf32> to vector<32x16xf32>
    %98 = arith.truncf %97 : vector<32x16xf32> to vector<32x16xbf16>
    %c192 = arith.constant 192 : index
    %c0_37 = arith.constant 0 : index
    %99 = vector.load %arg1[%c192, %c0_37] : memref<832x128xbf16, #tpu.memory_space<vmem>>, vector<32x128xbf16>
    %cst_38 = arith.constant dense<0.000000e+00> : vector<32x128xf32>
    %100 = tpu.matmul %23, %99, %cst_38 {dimension_numbers = #tpu.dot_dimension_numbers<[1], [0], [0], [1], [0, 0, 1, 1], [], []>} : vector<32x32xbf16>, vector<32x128xbf16>, vector<32x128xf32> -> vector<32x128xf32>
    %c39 = arith.constant 39 : index
    %c0_39 = arith.constant 0 : index
    %101 = vector.load %arg2[%c39, %c0_39] : memref<70x128xf32, #tpu.memory_space<vmem>>, vector<1x128xf32>
    %102 = vector.broadcast %101 : vector<1x128xf32> to vector<32x128xf32>
    %103 = arith.addf %100, %102 : vector<32x128xf32>
    %104 = vector.extract_strided_slice %103 {offsets = [0, 0], sizes = [32, 16], strides = [1, 1]} : vector<32x128xf32> to vector<32x16xf32>
    %105 = arith.truncf %104 : vector<32x16xf32> to vector<32x16xbf16>
    %106 = vector.extract_strided_slice %91 {offsets = [0, 0], sizes = [16, 16], strides = [1, 1]} : vector<32x16xbf16> to vector<16x16xbf16>
    %107 = vector.extract_strided_slice %98 {offsets = [0, 0], sizes = [16, 16], strides = [1, 1]} : vector<32x16xbf16> to vector<16x16xbf16>
    %cst_40 = arith.constant dense<0.000000e+00> : vector<16x16xf32>
    %108 = tpu.matmul %106, %107, %cst_40 {dimension_numbers = #tpu.dot_dimension_numbers<[1], [1], [0], [0], [0, 0, 1, 0], [], []>} : vector<16x16xbf16>, vector<16x16xbf16>, vector<16x16xf32> -> vector<16x16xf32>
    %cst_41 = arith.constant 2.500000e-01 : f32
    %109 = vector.broadcast %cst_41 : f32 to vector<16x16xf32>
    %110 = arith.mulf %108, %109 : vector<16x16xf32>
    %cst_42 = arith.constant dense<0xFF800000> : vector<16xf32>
    %111 = vector.multi_reduction <maximumf>, %110, %cst_42 [1] : vector<16x16xf32> to vector<16xf32>
    %112 = vector.shape_cast %111 : vector<16xf32> to vector<16x1xf32>
    %113 = vector.broadcast %112 : vector<16x1xf32> to vector<16x16xf32>
    %114 = arith.subf %110, %113 : vector<16x16xf32>
    %115 = math.exp %114 : vector<16x16xf32>
    %cst_43 = arith.constant dense<0.000000e+00> : vector<16xf32>
    %116 = vector.multi_reduction <add>, %115, %cst_43 [1] : vector<16x16xf32> to vector<16xf32>
    %117 = vector.shape_cast %116 : vector<16xf32> to vector<16x1xf32>
    %118 = tpu.reciprocal %117 {approx = true} : vector<16x1xf32> -> vector<16x1xf32>
    %119 = vector.broadcast %118 : vector<16x1xf32> to vector<16x16xf32>
    %120 = arith.mulf %115, %119 : vector<16x16xf32>
    %121 = arith.truncf %120 : vector<16x16xf32> to vector<16x16xbf16>
    %122 = vector.extract_strided_slice %105 {offsets = [0, 0], sizes = [16, 16], strides = [1, 1]} : vector<32x16xbf16> to vector<16x16xbf16>
    %cst_44 = arith.constant dense<0.000000e+00> : vector<16x16xf32>
    %123 = tpu.matmul %121, %122, %cst_44 {dimension_numbers = #tpu.dot_dimension_numbers<[1], [0], [0], [1], [0, 0, 1, 1], [], []>} : vector<16x16xbf16>, vector<16x16xbf16>, vector<16x16xf32> -> vector<16x16xf32>
    %124 = vector.extract_strided_slice %91 {offsets = [16, 0], sizes = [16, 16], strides = [1, 1]} : vector<32x16xbf16> to vector<16x16xbf16>
    %125 = vector.extract_strided_slice %98 {offsets = [16, 0], sizes = [16, 16], strides = [1, 1]} : vector<32x16xbf16> to vector<16x16xbf16>
    %cst_45 = arith.constant dense<0.000000e+00> : vector<16x16xf32>
    %126 = tpu.matmul %124, %125, %cst_45 {dimension_numbers = #tpu.dot_dimension_numbers<[1], [1], [0], [0], [0, 0, 1, 0], [], []>} : vector<16x16xbf16>, vector<16x16xbf16>, vector<16x16xf32> -> vector<16x16xf32>
    %cst_46 = arith.constant 2.500000e-01 : f32
    %127 = vector.broadcast %cst_46 : f32 to vector<16x16xf32>
    %128 = arith.mulf %126, %127 : vector<16x16xf32>
    %cst_47 = arith.constant dense<0xFF800000> : vector<16xf32>
    %129 = vector.multi_reduction <maximumf>, %128, %cst_47 [1] : vector<16x16xf32> to vector<16xf32>
    %130 = vector.shape_cast %129 : vector<16xf32> to vector<16x1xf32>
    %131 = vector.broadcast %130 : vector<16x1xf32> to vector<16x16xf32>
    %132 = arith.subf %128, %131 : vector<16x16xf32>
    %133 = math.exp %132 : vector<16x16xf32>
    %cst_48 = arith.constant dense<0.000000e+00> : vector<16xf32>
    %134 = vector.multi_reduction <add>, %133, %cst_48 [1] : vector<16x16xf32> to vector<16xf32>
    %135 = vector.shape_cast %134 : vector<16xf32> to vector<16x1xf32>
    %136 = tpu.reciprocal %135 {approx = true} : vector<16x1xf32> -> vector<16x1xf32>
    %137 = vector.broadcast %136 : vector<16x1xf32> to vector<16x16xf32>
    %138 = arith.mulf %133, %137 : vector<16x16xf32>
    %139 = arith.truncf %138 : vector<16x16xf32> to vector<16x16xbf16>
    %140 = vector.extract_strided_slice %105 {offsets = [16, 0], sizes = [16, 16], strides = [1, 1]} : vector<32x16xbf16> to vector<16x16xbf16>
    %cst_49 = arith.constant dense<0.000000e+00> : vector<16x16xf32>
    %141 = tpu.matmul %139, %140, %cst_49 {dimension_numbers = #tpu.dot_dimension_numbers<[1], [0], [0], [1], [0, 0, 1, 1], [], []>} : vector<16x16xbf16>, vector<16x16xbf16>, vector<16x16xf32> -> vector<16x16xf32>
    %142 = tpu.concatenate %123, %141 in 0 : vector<16x16xf32>, vector<16x16xf32> -> vector<32x16xf32>
    %143 = arith.truncf %142 : vector<32x16xf32> to vector<32x16xbf16>
    %c224 = arith.constant 224 : index
    %c0_50 = arith.constant 0 : index
    %144 = vector.load %arg1[%c224, %c0_50] : memref<832x128xbf16, #tpu.memory_space<vmem>>, vector<16x128xbf16>
    %cst_51 = arith.constant dense<0.000000e+00> : vector<32x128xf32>
    %145 = tpu.matmul %143, %144, %cst_51 {dimension_numbers = #tpu.dot_dimension_numbers<[1], [0], [0], [1], [0, 0, 1, 1], [], []>} : vector<32x16xbf16>, vector<16x128xbf16>, vector<32x128xf32> -> vector<32x128xf32>
    %146 = arith.addf %84, %145 : vector<32x128xf32>
    %147 = arith.addf %5, %146 : vector<32x128xf32>
    %c40 = arith.constant 40 : index
    %c0_52 = arith.constant 0 : index
    %148 = vector.load %arg2[%c40, %c0_52] : memref<70x128xf32, #tpu.memory_space<vmem>>, vector<1x128xf32>
    %149 = vector.broadcast %148 : vector<1x128xf32> to vector<32x128xf32>
    %150 = arith.addf %147, %149 : vector<32x128xf32>
    %151 = vector.extract_strided_slice %150 {offsets = [0, 0], sizes = [32, 32], strides = [1, 1]} : vector<32x128xf32> to vector<32x32xf32>
    %cst_53 = arith.constant dense<0.000000e+00> : vector<32xf32>
    %152 = vector.multi_reduction <add>, %151, %cst_53 [1] : vector<32x32xf32> to vector<32xf32>
    %153 = vector.shape_cast %152 : vector<32xf32> to vector<32x1xf32>
    %cst_54 = arith.constant 3.200000e+01 : f32
    %154 = vector.broadcast %cst_54 : f32 to vector<32x1xf32>
    %155 = arith.divf %153, %154 : vector<32x1xf32>
    %156 = vector.broadcast %155 : vector<32x1xf32> to vector<32x32xf32>
    %157 = arith.subf %151, %156 : vector<32x32xf32>
    %158 = arith.mulf %157, %157 : vector<32x32xf32>
    %cst_55 = arith.constant dense<0.000000e+00> : vector<32xf32>
    %159 = vector.multi_reduction <add>, %158, %cst_55 [1] : vector<32x32xf32> to vector<32xf32>
    %160 = vector.shape_cast %159 : vector<32xf32> to vector<32x1xf32>
    %cst_56 = arith.constant 3.200000e+01 : f32
    %161 = vector.broadcast %cst_56 : f32 to vector<32x1xf32>
    %162 = arith.divf %160, %161 : vector<32x1xf32>
    %cst_57 = arith.constant 9.99999974E-6 : f32
    %163 = vector.broadcast %cst_57 : f32 to vector<32x1xf32>
    %164 = arith.addf %162, %163 : vector<32x1xf32>
    %165 = math.rsqrt %164 : vector<32x1xf32>
    %166 = vector.broadcast %165 : vector<32x1xf32> to vector<32x32xf32>
    %167 = arith.mulf %157, %166 : vector<32x32xf32>
    %168 = arith.truncf %167 : vector<32x32xf32> to vector<32x32xbf16>
    %c240 = arith.constant 240 : index
    %c0_58 = arith.constant 0 : index
    %169 = vector.load %arg1[%c240, %c0_58] : memref<832x128xbf16, #tpu.memory_space<vmem>>, vector<32x128xbf16>
    %cst_59 = arith.constant dense<0.000000e+00> : vector<32x128xf32>
    %170 = tpu.matmul %168, %169, %cst_59 {dimension_numbers = #tpu.dot_dimension_numbers<[1], [0], [0], [1], [0, 0, 1, 1], [], []>} : vector<32x32xbf16>, vector<32x128xbf16>, vector<32x128xf32> -> vector<32x128xf32>
    %c41 = arith.constant 41 : index
    %c0_60 = arith.constant 0 : index
    %171 = vector.load %arg2[%c41, %c0_60] : memref<70x128xf32, #tpu.memory_space<vmem>>, vector<1x128xf32>
    %172 = vector.broadcast %171 : vector<1x128xf32> to vector<32x128xf32>
    %173 = arith.addf %170, %172 : vector<32x128xf32>
    %cst_61 = arith.constant 0.000000e+00 : f32
    %174 = vector.broadcast %cst_61 : f32 to vector<32x128xf32>
    %175 = arith.maximumf %173, %174 : vector<32x128xf32>
    %176 = vector.extract_strided_slice %175 {offsets = [0, 0], sizes = [32, 64], strides = [1, 1]} : vector<32x128xf32> to vector<32x64xf32>
    %177 = arith.truncf %176 : vector<32x64xf32> to vector<32x64xbf16>
    %c272 = arith.constant 272 : index
    %c0_62 = arith.constant 0 : index
    %178 = vector.load %arg1[%c272, %c0_62] : memref<832x128xbf16, #tpu.memory_space<vmem>>, vector<64x128xbf16>
    %cst_63 = arith.constant dense<0.000000e+00> : vector<32x128xf32>
    %179 = tpu.matmul %177, %178, %cst_63 {dimension_numbers = #tpu.dot_dimension_numbers<[1], [0], [0], [1], [0, 0, 1, 1], [], []>} : vector<32x64xbf16>, vector<64x128xbf16>, vector<32x128xf32> -> vector<32x128xf32>
    %c42 = arith.constant 42 : index
    %c0_64 = arith.constant 0 : index
    %180 = vector.load %arg2[%c42, %c0_64] : memref<70x128xf32, #tpu.memory_space<vmem>>, vector<1x128xf32>
    %181 = vector.broadcast %180 : vector<1x128xf32> to vector<32x128xf32>
    %182 = arith.addf %179, %181 : vector<32x128xf32>
    %183 = arith.addf %150, %182 : vector<32x128xf32>
    %184 = vector.extract_strided_slice %183 {offsets = [0, 0], sizes = [32, 32], strides = [1, 1]} : vector<32x128xf32> to vector<32x32xf32>
    %cst_65 = arith.constant dense<0.000000e+00> : vector<32xf32>
    %185 = vector.multi_reduction <add>, %184, %cst_65 [1] : vector<32x32xf32> to vector<32xf32>
    %186 = vector.shape_cast %185 : vector<32xf32> to vector<32x1xf32>
    %cst_66 = arith.constant 3.200000e+01 : f32
    %187 = vector.broadcast %cst_66 : f32 to vector<32x1xf32>
    %188 = arith.divf %186, %187 : vector<32x1xf32>
    %189 = vector.broadcast %188 : vector<32x1xf32> to vector<32x32xf32>
    %190 = arith.subf %184, %189 : vector<32x32xf32>
    %191 = arith.mulf %190, %190 : vector<32x32xf32>
    %cst_67 = arith.constant dense<0.000000e+00> : vector<32xf32>
    %192 = vector.multi_reduction <add>, %191, %cst_67 [1] : vector<32x32xf32> to vector<32xf32>
    %193 = vector.shape_cast %192 : vector<32xf32> to vector<32x1xf32>
    %cst_68 = arith.constant 3.200000e+01 : f32
    %194 = vector.broadcast %cst_68 : f32 to vector<32x1xf32>
    %195 = arith.divf %193, %194 : vector<32x1xf32>
    %cst_69 = arith.constant 9.99999974E-6 : f32
    %196 = vector.broadcast %cst_69 : f32 to vector<32x1xf32>
    %197 = arith.addf %195, %196 : vector<32x1xf32>
    %198 = math.rsqrt %197 : vector<32x1xf32>
    %199 = vector.broadcast %198 : vector<32x1xf32> to vector<32x32xf32>
    %200 = arith.mulf %190, %199 : vector<32x32xf32>
    %201 = arith.truncf %200 : vector<32x32xf32> to vector<32x32xbf16>
    %c336 = arith.constant 336 : index
    %c0_70 = arith.constant 0 : index
    %202 = vector.load %arg1[%c336, %c0_70] : memref<832x128xbf16, #tpu.memory_space<vmem>>, vector<32x128xbf16>
    %cst_71 = arith.constant dense<0.000000e+00> : vector<32x128xf32>
    %203 = tpu.matmul %201, %202, %cst_71 {dimension_numbers = #tpu.dot_dimension_numbers<[1], [0], [0], [1], [0, 0, 1, 1], [], []>} : vector<32x32xbf16>, vector<32x128xbf16>, vector<32x128xf32> -> vector<32x128xf32>
    %c43 = arith.constant 43 : index
    %c0_72 = arith.constant 0 : index
    %204 = vector.load %arg2[%c43, %c0_72] : memref<70x128xf32, #tpu.memory_space<vmem>>, vector<1x128xf32>
    %205 = vector.broadcast %204 : vector<1x128xf32> to vector<32x128xf32>
    %206 = arith.addf %203, %205 : vector<32x128xf32>
    %207 = vector.extract_strided_slice %206 {offsets = [0, 0], sizes = [32, 16], strides = [1, 1]} : vector<32x128xf32> to vector<32x16xf32>
    %208 = arith.truncf %207 : vector<32x16xf32> to vector<32x16xbf16>
    %c368 = arith.constant 368 : index
    %c0_73 = arith.constant 0 : index
    %209 = vector.load %arg1[%c368, %c0_73] : memref<832x128xbf16, #tpu.memory_space<vmem>>, vector<32x128xbf16>
    %cst_74 = arith.constant dense<0.000000e+00> : vector<32x128xf32>
    %210 = tpu.matmul %201, %209, %cst_74 {dimension_numbers = #tpu.dot_dimension_numbers<[1], [0], [0], [1], [0, 0, 1, 1], [], []>} : vector<32x32xbf16>, vector<32x128xbf16>, vector<32x128xf32> -> vector<32x128xf32>
    %c44 = arith.constant 44 : index
    %c0_75 = arith.constant 0 : index
    %211 = vector.load %arg2[%c44, %c0_75] : memref<70x128xf32, #tpu.memory_space<vmem>>, vector<1x128xf32>
    %212 = vector.broadcast %211 : vector<1x128xf32> to vector<32x128xf32>
    %213 = arith.addf %210, %212 : vector<32x128xf32>
    %214 = vector.extract_strided_slice %213 {offsets = [0, 0], sizes = [32, 16], strides = [1, 1]} : vector<32x128xf32> to vector<32x16xf32>
    %215 = arith.truncf %214 : vector<32x16xf32> to vector<32x16xbf16>
    %c400 = arith.constant 400 : index
    %c0_76 = arith.constant 0 : index
    %216 = vector.load %arg1[%c400, %c0_76] : memref<832x128xbf16, #tpu.memory_space<vmem>>, vector<32x128xbf16>
    %cst_77 = arith.constant dense<0.000000e+00> : vector<32x128xf32>
    %217 = tpu.matmul %201, %216, %cst_77 {dimension_numbers = #tpu.dot_dimension_numbers<[1], [0], [0], [1], [0, 0, 1, 1], [], []>} : vector<32x32xbf16>, vector<32x128xbf16>, vector<32x128xf32> -> vector<32x128xf32>
    %c45 = arith.constant 45 : index
    %c0_78 = arith.constant 0 : index
    %218 = vector.load %arg2[%c45, %c0_78] : memref<70x128xf32, #tpu.memory_space<vmem>>, vector<1x128xf32>
    %219 = vector.broadcast %218 : vector<1x128xf32> to vector<32x128xf32>
    %220 = arith.addf %217, %219 : vector<32x128xf32>
    %221 = vector.extract_strided_slice %220 {offsets = [0, 0], sizes = [32, 16], strides = [1, 1]} : vector<32x128xf32> to vector<32x16xf32>
    %222 = arith.truncf %221 : vector<32x16xf32> to vector<32x16xbf16>
    %223 = vector.extract_strided_slice %208 {offsets = [0, 0], sizes = [16, 16], strides = [1, 1]} : vector<32x16xbf16> to vector<16x16xbf16>
    %224 = vector.extract_strided_slice %215 {offsets = [0, 0], sizes = [16, 16], strides = [1, 1]} : vector<32x16xbf16> to vector<16x16xbf16>
    %cst_79 = arith.constant dense<0.000000e+00> : vector<16x16xf32>
    %225 = tpu.matmul %223, %224, %cst_79 {dimension_numbers = #tpu.dot_dimension_numbers<[1], [1], [0], [0], [0, 0, 1, 0], [], []>} : vector<16x16xbf16>, vector<16x16xbf16>, vector<16x16xf32> -> vector<16x16xf32>
    %cst_80 = arith.constant 2.500000e-01 : f32
    %226 = vector.broadcast %cst_80 : f32 to vector<16x16xf32>
    %227 = arith.mulf %225, %226 : vector<16x16xf32>
    %cst_81 = arith.constant dense<0xFF800000> : vector<16xf32>
    %228 = vector.multi_reduction <maximumf>, %227, %cst_81 [1] : vector<16x16xf32> to vector<16xf32>
    %229 = vector.shape_cast %228 : vector<16xf32> to vector<16x1xf32>
    %230 = vector.broadcast %229 : vector<16x1xf32> to vector<16x16xf32>
    %231 = arith.subf %227, %230 : vector<16x16xf32>
    %232 = math.exp %231 : vector<16x16xf32>
    %cst_82 = arith.constant dense<0.000000e+00> : vector<16xf32>
    %233 = vector.multi_reduction <add>, %232, %cst_82 [1] : vector<16x16xf32> to vector<16xf32>
    %234 = vector.shape_cast %233 : vector<16xf32> to vector<16x1xf32>
    %235 = tpu.reciprocal %234 {approx = true} : vector<16x1xf32> -> vector<16x1xf32>
    %236 = vector.broadcast %235 : vector<16x1xf32> to vector<16x16xf32>
    %237 = arith.mulf %232, %236 : vector<16x16xf32>
    %238 = arith.truncf %237 : vector<16x16xf32> to vector<16x16xbf16>
    %239 = vector.extract_strided_slice %222 {offsets = [0, 0], sizes = [16, 16], strides = [1, 1]} : vector<32x16xbf16> to vector<16x16xbf16>
    %cst_83 = arith.constant dense<0.000000e+00> : vector<16x16xf32>
    %240 = tpu.matmul %238, %239, %cst_83 {dimension_numbers = #tpu.dot_dimension_numbers<[1], [0], [0], [1], [0, 0, 1, 1], [], []>} : vector<16x16xbf16>, vector<16x16xbf16>, vector<16x16xf32> -> vector<16x16xf32>
    %241 = vector.extract_strided_slice %208 {offsets = [16, 0], sizes = [16, 16], strides = [1, 1]} : vector<32x16xbf16> to vector<16x16xbf16>
    %242 = vector.extract_strided_slice %215 {offsets = [16, 0], sizes = [16, 16], strides = [1, 1]} : vector<32x16xbf16> to vector<16x16xbf16>
    %cst_84 = arith.constant dense<0.000000e+00> : vector<16x16xf32>
    %243 = tpu.matmul %241, %242, %cst_84 {dimension_numbers = #tpu.dot_dimension_numbers<[1], [1], [0], [0], [0, 0, 1, 0], [], []>} : vector<16x16xbf16>, vector<16x16xbf16>, vector<16x16xf32> -> vector<16x16xf32>
    %cst_85 = arith.constant 2.500000e-01 : f32
    %244 = vector.broadcast %cst_85 : f32 to vector<16x16xf32>
    %245 = arith.mulf %243, %244 : vector<16x16xf32>
    %cst_86 = arith.constant dense<0xFF800000> : vector<16xf32>
    %246 = vector.multi_reduction <maximumf>, %245, %cst_86 [1] : vector<16x16xf32> to vector<16xf32>
    %247 = vector.shape_cast %246 : vector<16xf32> to vector<16x1xf32>
    %248 = vector.broadcast %247 : vector<16x1xf32> to vector<16x16xf32>
    %249 = arith.subf %245, %248 : vector<16x16xf32>
    %250 = math.exp %249 : vector<16x16xf32>
    %cst_87 = arith.constant dense<0.000000e+00> : vector<16xf32>
    %251 = vector.multi_reduction <add>, %250, %cst_87 [1] : vector<16x16xf32> to vector<16xf32>
    %252 = vector.shape_cast %251 : vector<16xf32> to vector<16x1xf32>
    %253 = tpu.reciprocal %252 {approx = true} : vector<16x1xf32> -> vector<16x1xf32>
    %254 = vector.broadcast %253 : vector<16x1xf32> to vector<16x16xf32>
    %255 = arith.mulf %250, %254 : vector<16x16xf32>
    %256 = arith.truncf %255 : vector<16x16xf32> to vector<16x16xbf16>
    %257 = vector.extract_strided_slice %222 {offsets = [16, 0], sizes = [16, 16], strides = [1, 1]} : vector<32x16xbf16> to vector<16x16xbf16>
    %cst_88 = arith.constant dense<0.000000e+00> : vector<16x16xf32>
    %258 = tpu.matmul %256, %257, %cst_88 {dimension_numbers = #tpu.dot_dimension_numbers<[1], [0], [0], [1], [0, 0, 1, 1], [], []>} : vector<16x16xbf16>, vector<16x16xbf16>, vector<16x16xf32> -> vector<16x16xf32>
    %259 = tpu.concatenate %240, %258 in 0 : vector<16x16xf32>, vector<16x16xf32> -> vector<32x16xf32>
    %260 = arith.truncf %259 : vector<32x16xf32> to vector<32x16xbf16>
    %c432 = arith.constant 432 : index
    %c0_89 = arith.constant 0 : index
    %261 = vector.load %arg1[%c432, %c0_89] : memref<832x128xbf16, #tpu.memory_space<vmem>>, vector<16x128xbf16>
    %cst_90 = arith.constant dense<0.000000e+00> : vector<32x128xf32>
    %262 = tpu.matmul %260, %261, %cst_90 {dimension_numbers = #tpu.dot_dimension_numbers<[1], [0], [0], [1], [0, 0, 1, 1], [], []>} : vector<32x16xbf16>, vector<16x128xbf16>, vector<32x128xf32> -> vector<32x128xf32>
    %c448 = arith.constant 448 : index
    %c0_91 = arith.constant 0 : index
    %263 = vector.load %arg1[%c448, %c0_91] : memref<832x128xbf16, #tpu.memory_space<vmem>>, vector<32x128xbf16>
    %cst_92 = arith.constant dense<0.000000e+00> : vector<32x128xf32>
    %264 = tpu.matmul %201, %263, %cst_92 {dimension_numbers = #tpu.dot_dimension_numbers<[1], [0], [0], [1], [0, 0, 1, 1], [], []>} : vector<32x32xbf16>, vector<32x128xbf16>, vector<32x128xf32> -> vector<32x128xf32>
    %c46 = arith.constant 46 : index
    %c0_93 = arith.constant 0 : index
    %265 = vector.load %arg2[%c46, %c0_93] : memref<70x128xf32, #tpu.memory_space<vmem>>, vector<1x128xf32>
    %266 = vector.broadcast %265 : vector<1x128xf32> to vector<32x128xf32>
    %267 = arith.addf %264, %266 : vector<32x128xf32>
    %268 = vector.extract_strided_slice %267 {offsets = [0, 0], sizes = [32, 16], strides = [1, 1]} : vector<32x128xf32> to vector<32x16xf32>
    %269 = arith.truncf %268 : vector<32x16xf32> to vector<32x16xbf16>
    %c480 = arith.constant 480 : index
    %c0_94 = arith.constant 0 : index
    %270 = vector.load %arg1[%c480, %c0_94] : memref<832x128xbf16, #tpu.memory_space<vmem>>, vector<32x128xbf16>
    %cst_95 = arith.constant dense<0.000000e+00> : vector<32x128xf32>
    %271 = tpu.matmul %201, %270, %cst_95 {dimension_numbers = #tpu.dot_dimension_numbers<[1], [0], [0], [1], [0, 0, 1, 1], [], []>} : vector<32x32xbf16>, vector<32x128xbf16>, vector<32x128xf32> -> vector<32x128xf32>
    %c47 = arith.constant 47 : index
    %c0_96 = arith.constant 0 : index
    %272 = vector.load %arg2[%c47, %c0_96] : memref<70x128xf32, #tpu.memory_space<vmem>>, vector<1x128xf32>
    %273 = vector.broadcast %272 : vector<1x128xf32> to vector<32x128xf32>
    %274 = arith.addf %271, %273 : vector<32x128xf32>
    %275 = vector.extract_strided_slice %274 {offsets = [0, 0], sizes = [32, 16], strides = [1, 1]} : vector<32x128xf32> to vector<32x16xf32>
    %276 = arith.truncf %275 : vector<32x16xf32> to vector<32x16xbf16>
    %c512 = arith.constant 512 : index
    %c0_97 = arith.constant 0 : index
    %277 = vector.load %arg1[%c512, %c0_97] : memref<832x128xbf16, #tpu.memory_space<vmem>>, vector<32x128xbf16>
    %cst_98 = arith.constant dense<0.000000e+00> : vector<32x128xf32>
    %278 = tpu.matmul %201, %277, %cst_98 {dimension_numbers = #tpu.dot_dimension_numbers<[1], [0], [0], [1], [0, 0, 1, 1], [], []>} : vector<32x32xbf16>, vector<32x128xbf16>, vector<32x128xf32> -> vector<32x128xf32>
    %c48_99 = arith.constant 48 : index
    %c0_100 = arith.constant 0 : index
    %279 = vector.load %arg2[%c48_99, %c0_100] : memref<70x128xf32, #tpu.memory_space<vmem>>, vector<1x128xf32>
    %280 = vector.broadcast %279 : vector<1x128xf32> to vector<32x128xf32>
    %281 = arith.addf %278, %280 : vector<32x128xf32>
    %282 = vector.extract_strided_slice %281 {offsets = [0, 0], sizes = [32, 16], strides = [1, 1]} : vector<32x128xf32> to vector<32x16xf32>
    %283 = arith.truncf %282 : vector<32x16xf32> to vector<32x16xbf16>
    %284 = vector.extract_strided_slice %269 {offsets = [0, 0], sizes = [16, 16], strides = [1, 1]} : vector<32x16xbf16> to vector<16x16xbf16>
    %285 = vector.extract_strided_slice %276 {offsets = [0, 0], sizes = [16, 16], strides = [1, 1]} : vector<32x16xbf16> to vector<16x16xbf16>
    %cst_101 = arith.constant dense<0.000000e+00> : vector<16x16xf32>
    %286 = tpu.matmul %284, %285, %cst_101 {dimension_numbers = #tpu.dot_dimension_numbers<[1], [1], [0], [0], [0, 0, 1, 0], [], []>} : vector<16x16xbf16>, vector<16x16xbf16>, vector<16x16xf32> -> vector<16x16xf32>
    %cst_102 = arith.constant 2.500000e-01 : f32
    %287 = vector.broadcast %cst_102 : f32 to vector<16x16xf32>
    %288 = arith.mulf %286, %287 : vector<16x16xf32>
    %cst_103 = arith.constant dense<0xFF800000> : vector<16xf32>
    %289 = vector.multi_reduction <maximumf>, %288, %cst_103 [1] : vector<16x16xf32> to vector<16xf32>
    %290 = vector.shape_cast %289 : vector<16xf32> to vector<16x1xf32>
    %291 = vector.broadcast %290 : vector<16x1xf32> to vector<16x16xf32>
    %292 = arith.subf %288, %291 : vector<16x16xf32>
    %293 = math.exp %292 : vector<16x16xf32>
    %cst_104 = arith.constant dense<0.000000e+00> : vector<16xf32>
    %294 = vector.multi_reduction <add>, %293, %cst_104 [1] : vector<16x16xf32> to vector<16xf32>
    %295 = vector.shape_cast %294 : vector<16xf32> to vector<16x1xf32>
    %296 = tpu.reciprocal %295 {approx = true} : vector<16x1xf32> -> vector<16x1xf32>
    %297 = vector.broadcast %296 : vector<16x1xf32> to vector<16x16xf32>
    %298 = arith.mulf %293, %297 : vector<16x16xf32>
    %299 = arith.truncf %298 : vector<16x16xf32> to vector<16x16xbf16>
    %300 = vector.extract_strided_slice %283 {offsets = [0, 0], sizes = [16, 16], strides = [1, 1]} : vector<32x16xbf16> to vector<16x16xbf16>
    %cst_105 = arith.constant dense<0.000000e+00> : vector<16x16xf32>
    %301 = tpu.matmul %299, %300, %cst_105 {dimension_numbers = #tpu.dot_dimension_numbers<[1], [0], [0], [1], [0, 0, 1, 1], [], []>} : vector<16x16xbf16>, vector<16x16xbf16>, vector<16x16xf32> -> vector<16x16xf32>
    %302 = vector.extract_strided_slice %269 {offsets = [16, 0], sizes = [16, 16], strides = [1, 1]} : vector<32x16xbf16> to vector<16x16xbf16>
    %303 = vector.extract_strided_slice %276 {offsets = [16, 0], sizes = [16, 16], strides = [1, 1]} : vector<32x16xbf16> to vector<16x16xbf16>
    %cst_106 = arith.constant dense<0.000000e+00> : vector<16x16xf32>
    %304 = tpu.matmul %302, %303, %cst_106 {dimension_numbers = #tpu.dot_dimension_numbers<[1], [1], [0], [0], [0, 0, 1, 0], [], []>} : vector<16x16xbf16>, vector<16x16xbf16>, vector<16x16xf32> -> vector<16x16xf32>
    %cst_107 = arith.constant 2.500000e-01 : f32
    %305 = vector.broadcast %cst_107 : f32 to vector<16x16xf32>
    %306 = arith.mulf %304, %305 : vector<16x16xf32>
    %cst_108 = arith.constant dense<0xFF800000> : vector<16xf32>
    %307 = vector.multi_reduction <maximumf>, %306, %cst_108 [1] : vector<16x16xf32> to vector<16xf32>
    %308 = vector.shape_cast %307 : vector<16xf32> to vector<16x1xf32>
    %309 = vector.broadcast %308 : vector<16x1xf32> to vector<16x16xf32>
    %310 = arith.subf %306, %309 : vector<16x16xf32>
    %311 = math.exp %310 : vector<16x16xf32>
    %cst_109 = arith.constant dense<0.000000e+00> : vector<16xf32>
    %312 = vector.multi_reduction <add>, %311, %cst_109 [1] : vector<16x16xf32> to vector<16xf32>
    %313 = vector.shape_cast %312 : vector<16xf32> to vector<16x1xf32>
    %314 = tpu.reciprocal %313 {approx = true} : vector<16x1xf32> -> vector<16x1xf32>
    %315 = vector.broadcast %314 : vector<16x1xf32> to vector<16x16xf32>
    %316 = arith.mulf %311, %315 : vector<16x16xf32>
    %317 = arith.truncf %316 : vector<16x16xf32> to vector<16x16xbf16>
    %318 = vector.extract_strided_slice %283 {offsets = [16, 0], sizes = [16, 16], strides = [1, 1]} : vector<32x16xbf16> to vector<16x16xbf16>
    %cst_110 = arith.constant dense<0.000000e+00> : vector<16x16xf32>
    %319 = tpu.matmul %317, %318, %cst_110 {dimension_numbers = #tpu.dot_dimension_numbers<[1], [0], [0], [1], [0, 0, 1, 1], [], []>} : vector<16x16xbf16>, vector<16x16xbf16>, vector<16x16xf32> -> vector<16x16xf32>
    %320 = tpu.concatenate %301, %319 in 0 : vector<16x16xf32>, vector<16x16xf32> -> vector<32x16xf32>
    %321 = arith.truncf %320 : vector<32x16xf32> to vector<32x16xbf16>
    %c544 = arith.constant 544 : index
    %c0_111 = arith.constant 0 : index
    %322 = vector.load %arg1[%c544, %c0_111] : memref<832x128xbf16, #tpu.memory_space<vmem>>, vector<16x128xbf16>
    %cst_112 = arith.constant dense<0.000000e+00> : vector<32x128xf32>
    %323 = tpu.matmul %321, %322, %cst_112 {dimension_numbers = #tpu.dot_dimension_numbers<[1], [0], [0], [1], [0, 0, 1, 1], [], []>} : vector<32x16xbf16>, vector<16x128xbf16>, vector<32x128xf32> -> vector<32x128xf32>
    %324 = arith.addf %262, %323 : vector<32x128xf32>
    %325 = arith.addf %183, %324 : vector<32x128xf32>
    %c49 = arith.constant 49 : index
    %c0_113 = arith.constant 0 : index
    %326 = vector.load %arg2[%c49, %c0_113] : memref<70x128xf32, #tpu.memory_space<vmem>>, vector<1x128xf32>
    %327 = vector.broadcast %326 : vector<1x128xf32> to vector<32x128xf32>
    %328 = arith.addf %325, %327 : vector<32x128xf32>
    %329 = vector.extract_strided_slice %328 {offsets = [0, 0], sizes = [32, 32], strides = [1, 1]} : vector<32x128xf32> to vector<32x32xf32>
    %cst_114 = arith.constant dense<0.000000e+00> : vector<32xf32>
    %330 = vector.multi_reduction <add>, %329, %cst_114 [1] : vector<32x32xf32> to vector<32xf32>
    %331 = vector.shape_cast %330 : vector<32xf32> to vector<32x1xf32>
    %cst_115 = arith.constant 3.200000e+01 : f32
    %332 = vector.broadcast %cst_115 : f32 to vector<32x1xf32>
    %333 = arith.divf %331, %332 : vector<32x1xf32>
    %334 = vector.broadcast %333 : vector<32x1xf32> to vector<32x32xf32>
    %335 = arith.subf %329, %334 : vector<32x32xf32>
    %336 = arith.mulf %335, %335 : vector<32x32xf32>
    %cst_116 = arith.constant dense<0.000000e+00> : vector<32xf32>
    %337 = vector.multi_reduction <add>, %336, %cst_116 [1] : vector<32x32xf32> to vector<32xf32>
    %338 = vector.shape_cast %337 : vector<32xf32> to vector<32x1xf32>
    %cst_117 = arith.constant 3.200000e+01 : f32
    %339 = vector.broadcast %cst_117 : f32 to vector<32x1xf32>
    %340 = arith.divf %338, %339 : vector<32x1xf32>
    %cst_118 = arith.constant 9.99999974E-6 : f32
    %341 = vector.broadcast %cst_118 : f32 to vector<32x1xf32>
    %342 = arith.addf %340, %341 : vector<32x1xf32>
    %343 = math.rsqrt %342 : vector<32x1xf32>
    %344 = vector.broadcast %343 : vector<32x1xf32> to vector<32x32xf32>
    %345 = arith.mulf %335, %344 : vector<32x32xf32>
    %346 = arith.truncf %345 : vector<32x32xf32> to vector<32x32xbf16>
    %c560 = arith.constant 560 : index
    %c0_119 = arith.constant 0 : index
    %347 = vector.load %arg1[%c560, %c0_119] : memref<832x128xbf16, #tpu.memory_space<vmem>>, vector<32x128xbf16>
    %cst_120 = arith.constant dense<0.000000e+00> : vector<32x128xf32>
    %348 = tpu.matmul %346, %347, %cst_120 {dimension_numbers = #tpu.dot_dimension_numbers<[1], [0], [0], [1], [0, 0, 1, 1], [], []>} : vector<32x32xbf16>, vector<32x128xbf16>, vector<32x128xf32> -> vector<32x128xf32>
    %c50 = arith.constant 50 : index
    %c0_121 = arith.constant 0 : index
    %349 = vector.load %arg2[%c50, %c0_121] : memref<70x128xf32, #tpu.memory_space<vmem>>, vector<1x128xf32>
    %350 = vector.broadcast %349 : vector<1x128xf32> to vector<32x128xf32>
    %351 = arith.addf %348, %350 : vector<32x128xf32>
    %cst_122 = arith.constant 0.000000e+00 : f32
    %352 = vector.broadcast %cst_122 : f32 to vector<32x128xf32>
    %353 = arith.maximumf %351, %352 : vector<32x128xf32>
    %354 = vector.extract_strided_slice %353 {offsets = [0, 0], sizes = [32, 64], strides = [1, 1]} : vector<32x128xf32> to vector<32x64xf32>
    %355 = arith.truncf %354 : vector<32x64xf32> to vector<32x64xbf16>
    %c592 = arith.constant 592 : index
    %c0_123 = arith.constant 0 : index
    %356 = vector.load %arg1[%c592, %c0_123] : memref<832x128xbf16, #tpu.memory_space<vmem>>, vector<64x128xbf16>
    %cst_124 = arith.constant dense<0.000000e+00> : vector<32x128xf32>
    %357 = tpu.matmul %355, %356, %cst_124 {dimension_numbers = #tpu.dot_dimension_numbers<[1], [0], [0], [1], [0, 0, 1, 1], [], []>} : vector<32x64xbf16>, vector<64x128xbf16>, vector<32x128xf32> -> vector<32x128xf32>
    %c51 = arith.constant 51 : index
    %c0_125 = arith.constant 0 : index
    %358 = vector.load %arg2[%c51, %c0_125] : memref<70x128xf32, #tpu.memory_space<vmem>>, vector<1x128xf32>
    %359 = vector.broadcast %358 : vector<1x128xf32> to vector<32x128xf32>
    %360 = arith.addf %357, %359 : vector<32x128xf32>
    %361 = arith.addf %328, %360 : vector<32x128xf32>
    %c32 = arith.constant 32 : index
    %c0_126 = arith.constant 0 : index
    %362 = vector.load %arg2[%c32, %c0_126] : memref<70x128xf32, #tpu.memory_space<vmem>>, vector<2x32xf32>
    %cst_127 = arith.constant dense<0.000000e+00> : vector<2x128xf32>
    %363 = tpu.matmul %362, %361, %cst_127 {dimension_numbers = #tpu.dot_dimension_numbers<[1], [0], [0], [1], [0, 0, 1, 1], [], []>} : vector<2x32xf32>, vector<32x128xf32>, vector<2x128xf32> -> vector<2x128xf32>
    %364 = vector.extract_strided_slice %363 {offsets = [0, 0], sizes = [2, 32], strides = [1, 1]} : vector<2x128xf32> to vector<2x32xf32>
    %cst_128 = arith.constant dense<0.000000e+00> : vector<2xf32>
    %365 = vector.multi_reduction <add>, %364, %cst_128 [1] : vector<2x32xf32> to vector<2xf32>
    %366 = vector.shape_cast %365 : vector<2xf32> to vector<2x1xf32>
    %cst_129 = arith.constant 3.200000e+01 : f32
    %367 = vector.broadcast %cst_129 : f32 to vector<2x1xf32>
    %368 = arith.divf %366, %367 : vector<2x1xf32>
    %369 = vector.broadcast %368 : vector<2x1xf32> to vector<2x32xf32>
    %370 = arith.subf %364, %369 : vector<2x32xf32>
    %371 = arith.mulf %370, %370 : vector<2x32xf32>
    %cst_130 = arith.constant dense<0.000000e+00> : vector<2xf32>
    %372 = vector.multi_reduction <add>, %371, %cst_130 [1] : vector<2x32xf32> to vector<2xf32>
    %373 = vector.shape_cast %372 : vector<2xf32> to vector<2x1xf32>
    %cst_131 = arith.constant 3.200000e+01 : f32
    %374 = vector.broadcast %cst_131 : f32 to vector<2x1xf32>
    %375 = arith.divf %373, %374 : vector<2x1xf32>
    %376 = vector.broadcast %368 : vector<2x1xf32> to vector<2x128xf32>
    %377 = arith.subf %363, %376 : vector<2x128xf32>
    %cst_132 = arith.constant 9.99999974E-6 : f32
    %378 = vector.broadcast %cst_132 : f32 to vector<2x1xf32>
    %379 = arith.addf %375, %378 : vector<2x1xf32>
    %380 = math.rsqrt %379 : vector<2x1xf32>
    %381 = vector.broadcast %380 : vector<2x1xf32> to vector<2x128xf32>
    %382 = arith.mulf %377, %381 : vector<2x128xf32>
    %c52 = arith.constant 52 : index
    %c0_133 = arith.constant 0 : index
    %383 = vector.load %arg2[%c52, %c0_133] : memref<70x128xf32, #tpu.memory_space<vmem>>, vector<1x128xf32>
    %384 = vector.broadcast %383 : vector<1x128xf32> to vector<2x128xf32>
    %385 = arith.mulf %382, %384 : vector<2x128xf32>
    %c53 = arith.constant 53 : index
    %c0_134 = arith.constant 0 : index
    %386 = vector.load %arg2[%c53, %c0_134] : memref<70x128xf32, #tpu.memory_space<vmem>>, vector<1x128xf32>
    %387 = vector.broadcast %386 : vector<1x128xf32> to vector<2x128xf32>
    %388 = arith.addf %385, %387 : vector<2x128xf32>
    %cst_135 = arith.constant 0.000000e+00 : f32
    %389 = vector.broadcast %cst_135 : f32 to vector<2x128xf32>
    %390 = arith.maximumf %388, %389 : vector<2x128xf32>
    %391 = vector.extract_strided_slice %390 {offsets = [0, 0], sizes = [2, 32], strides = [1, 1]} : vector<2x128xf32> to vector<2x32xf32>
    %392 = arith.truncf %391 : vector<2x32xf32> to vector<2x32xbf16>
    %c656 = arith.constant 656 : index
    %c0_136 = arith.constant 0 : index
    %393 = vector.load %arg1[%c656, %c0_136] : memref<832x128xbf16, #tpu.memory_space<vmem>>, vector<32x128xbf16>
    %cst_137 = arith.constant dense<0.000000e+00> : vector<2x128xf32>
    %394 = tpu.matmul %392, %393, %cst_137 {dimension_numbers = #tpu.dot_dimension_numbers<[1], [0], [0], [1], [0, 0, 1, 1], [], []>} : vector<2x32xbf16>, vector<32x128xbf16>, vector<2x128xf32> -> vector<2x128xf32>
    %c54 = arith.constant 54 : index
    %c0_138 = arith.constant 0 : index
    %395 = vector.load %arg2[%c54, %c0_138] : memref<70x128xf32, #tpu.memory_space<vmem>>, vector<1x128xf32>
    %396 = vector.broadcast %395 : vector<1x128xf32> to vector<2x128xf32>
    %397 = arith.addf %394, %396 : vector<2x128xf32>
    %398 = vector.extract_strided_slice %397 {offsets = [0, 0], sizes = [2, 16], strides = [1, 1]} : vector<2x128xf32> to vector<2x16xf32>
    %cst_139 = arith.constant dense<0.000000e+00> : vector<2xf32>
    %399 = vector.multi_reduction <add>, %398, %cst_139 [1] : vector<2x16xf32> to vector<2xf32>
    %400 = vector.shape_cast %399 : vector<2xf32> to vector<2x1xf32>
    %cst_140 = arith.constant 1.600000e+01 : f32
    %401 = vector.broadcast %cst_140 : f32 to vector<2x1xf32>
    %402 = arith.divf %400, %401 : vector<2x1xf32>
    %403 = vector.broadcast %402 : vector<2x1xf32> to vector<2x16xf32>
    %404 = arith.subf %398, %403 : vector<2x16xf32>
    %405 = arith.mulf %404, %404 : vector<2x16xf32>
    %cst_141 = arith.constant dense<0.000000e+00> : vector<2xf32>
    %406 = vector.multi_reduction <add>, %405, %cst_141 [1] : vector<2x16xf32> to vector<2xf32>
    %407 = vector.shape_cast %406 : vector<2xf32> to vector<2x1xf32>
    %cst_142 = arith.constant 1.600000e+01 : f32
    %408 = vector.broadcast %cst_142 : f32 to vector<2x1xf32>
    %409 = arith.divf %407, %408 : vector<2x1xf32>
    %410 = vector.broadcast %402 : vector<2x1xf32> to vector<2x128xf32>
    %411 = arith.subf %397, %410 : vector<2x128xf32>
    %cst_143 = arith.constant 9.99999974E-6 : f32
    %412 = vector.broadcast %cst_143 : f32 to vector<2x1xf32>
    %413 = arith.addf %409, %412 : vector<2x1xf32>
    %414 = math.rsqrt %413 : vector<2x1xf32>
    %415 = vector.broadcast %414 : vector<2x1xf32> to vector<2x128xf32>
    %416 = arith.mulf %411, %415 : vector<2x128xf32>
    %c55 = arith.constant 55 : index
    %c0_144 = arith.constant 0 : index
    %417 = vector.load %arg2[%c55, %c0_144] : memref<70x128xf32, #tpu.memory_space<vmem>>, vector<1x128xf32>
    %418 = vector.broadcast %417 : vector<1x128xf32> to vector<2x128xf32>
    %419 = arith.mulf %416, %418 : vector<2x128xf32>
    %c56 = arith.constant 56 : index
    %c0_145 = arith.constant 0 : index
    %420 = vector.load %arg2[%c56, %c0_145] : memref<70x128xf32, #tpu.memory_space<vmem>>, vector<1x128xf32>
    %421 = vector.broadcast %420 : vector<1x128xf32> to vector<2x128xf32>
    %422 = arith.addf %419, %421 : vector<2x128xf32>
    %cst_146 = arith.constant 0.000000e+00 : f32
    %423 = vector.broadcast %cst_146 : f32 to vector<2x128xf32>
    %424 = arith.maximumf %422, %423 : vector<2x128xf32>
    %425 = vector.extract_strided_slice %424 {offsets = [0, 0], sizes = [2, 16], strides = [1, 1]} : vector<2x128xf32> to vector<2x16xf32>
    %426 = arith.truncf %425 : vector<2x16xf32> to vector<2x16xbf16>
    %c688 = arith.constant 688 : index
    %c0_147 = arith.constant 0 : index
    %427 = vector.load %arg1[%c688, %c0_147] : memref<832x128xbf16, #tpu.memory_space<vmem>>, vector<16x128xbf16>
    %cst_148 = arith.constant dense<0.000000e+00> : vector<2x128xf32>
    %428 = tpu.matmul %426, %427, %cst_148 {dimension_numbers = #tpu.dot_dimension_numbers<[1], [0], [0], [1], [0, 0, 1, 1], [], []>} : vector<2x16xbf16>, vector<16x128xbf16>, vector<2x128xf32> -> vector<2x128xf32>
    %c57 = arith.constant 57 : index
    %c0_149 = arith.constant 0 : index
    %429 = vector.load %arg2[%c57, %c0_149] : memref<70x128xf32, #tpu.memory_space<vmem>>, vector<1x128xf32>
    %430 = vector.broadcast %429 : vector<1x128xf32> to vector<2x128xf32>
    %431 = arith.addf %428, %430 : vector<2x128xf32>
    %432 = vector.extract_strided_slice %431 {offsets = [0, 0], sizes = [2, 5], strides = [1, 1]} : vector<2x128xf32> to vector<2x5xf32>
    %cst_150 = arith.constant dense<0xFF800000> : vector<2xf32>
    %433 = vector.multi_reduction <maximumf>, %432, %cst_150 [1] : vector<2x5xf32> to vector<2xf32>
    %434 = vector.shape_cast %433 : vector<2xf32> to vector<2x1xf32>
    %435 = vector.broadcast %434 : vector<2x1xf32> to vector<2x5xf32>
    %436 = arith.subf %432, %435 : vector<2x5xf32>
    %437 = math.exp %436 : vector<2x5xf32>
    %cst_151 = arith.constant dense<0.000000e+00> : vector<2xf32>
    %438 = vector.multi_reduction <add>, %437, %cst_151 [1] : vector<2x5xf32> to vector<2xf32>
    %439 = vector.shape_cast %438 : vector<2xf32> to vector<2x1xf32>
    %440 = vector.broadcast %439 : vector<2x1xf32> to vector<2x5xf32>
    %441 = arith.divf %437, %440 : vector<2x5xf32>
    %cst_152 = arith.constant 0.000000e+00 : f32
    %442 = vector.broadcast %cst_152 : f32 to vector<2x91xf32>
    %443 = vector.extract_strided_slice %363 {offsets = [0, 0], sizes = [2, 32], strides = [1, 1]} : vector<2x128xf32> to vector<2x32xf32>
    %444 = tpu.concatenate %443, %441, %442 in 1 : vector<2x32xf32>, vector<2x5xf32>, vector<2x91xf32> -> vector<2x128xf32>
    %445 = vector.extract_strided_slice %444 {offsets = [0, 0], sizes = [2, 37], strides = [1, 1]} : vector<2x128xf32> to vector<2x37xf32>
    %cst_153 = arith.constant dense<0.000000e+00> : vector<2xf32>
    %446 = vector.multi_reduction <add>, %445, %cst_153 [1] : vector<2x37xf32> to vector<2xf32>
    %447 = vector.shape_cast %446 : vector<2xf32> to vector<2x1xf32>
    %cst_154 = arith.constant 3.700000e+01 : f32
    %448 = vector.broadcast %cst_154 : f32 to vector<2x1xf32>
    %449 = arith.divf %447, %448 : vector<2x1xf32>
    %450 = vector.broadcast %449 : vector<2x1xf32> to vector<2x37xf32>
    %451 = arith.subf %445, %450 : vector<2x37xf32>
    %452 = arith.mulf %451, %451 : vector<2x37xf32>
    %cst_155 = arith.constant dense<0.000000e+00> : vector<2xf32>
    %453 = vector.multi_reduction <add>, %452, %cst_155 [1] : vector<2x37xf32> to vector<2xf32>
    %454 = vector.shape_cast %453 : vector<2xf32> to vector<2x1xf32>
    %cst_156 = arith.constant 3.700000e+01 : f32
    %455 = vector.broadcast %cst_156 : f32 to vector<2x1xf32>
    %456 = arith.divf %454, %455 : vector<2x1xf32>
    %457 = vector.broadcast %449 : vector<2x1xf32> to vector<2x128xf32>
    %458 = arith.subf %444, %457 : vector<2x128xf32>
    %cst_157 = arith.constant 9.99999974E-6 : f32
    %459 = vector.broadcast %cst_157 : f32 to vector<2x1xf32>
    %460 = arith.addf %456, %459 : vector<2x1xf32>
    %461 = math.rsqrt %460 : vector<2x1xf32>
    %462 = vector.broadcast %461 : vector<2x1xf32> to vector<2x128xf32>
    %463 = arith.mulf %458, %462 : vector<2x128xf32>
    %c58 = arith.constant 58 : index
    %c0_158 = arith.constant 0 : index
    %464 = vector.load %arg2[%c58, %c0_158] : memref<70x128xf32, #tpu.memory_space<vmem>>, vector<1x128xf32>
    %465 = vector.broadcast %464 : vector<1x128xf32> to vector<2x128xf32>
    %466 = arith.mulf %463, %465 : vector<2x128xf32>
    %c59 = arith.constant 59 : index
    %c0_159 = arith.constant 0 : index
    %467 = vector.load %arg2[%c59, %c0_159] : memref<70x128xf32, #tpu.memory_space<vmem>>, vector<1x128xf32>
    %468 = vector.broadcast %467 : vector<1x128xf32> to vector<2x128xf32>
    %469 = arith.addf %466, %468 : vector<2x128xf32>
    %cst_160 = arith.constant 0.000000e+00 : f32
    %470 = vector.broadcast %cst_160 : f32 to vector<2x128xf32>
    %471 = arith.maximumf %469, %470 : vector<2x128xf32>
    %472 = vector.extract_strided_slice %471 {offsets = [0, 0], sizes = [2, 48], strides = [1, 1]} : vector<2x128xf32> to vector<2x48xf32>
    %473 = arith.truncf %472 : vector<2x48xf32> to vector<2x48xbf16>
    %c704 = arith.constant 704 : index
    %c0_161 = arith.constant 0 : index
    %474 = vector.load %arg1[%c704, %c0_161] : memref<832x128xbf16, #tpu.memory_space<vmem>>, vector<48x128xbf16>
    %cst_162 = arith.constant dense<0.000000e+00> : vector<2x128xf32>
    %475 = tpu.matmul %473, %474, %cst_162 {dimension_numbers = #tpu.dot_dimension_numbers<[1], [0], [0], [1], [0, 0, 1, 1], [], []>} : vector<2x48xbf16>, vector<48x128xbf16>, vector<2x128xf32> -> vector<2x128xf32>
    %c60 = arith.constant 60 : index
    %c0_163 = arith.constant 0 : index
    %476 = vector.load %arg2[%c60, %c0_163] : memref<70x128xf32, #tpu.memory_space<vmem>>, vector<1x128xf32>
    %477 = vector.broadcast %476 : vector<1x128xf32> to vector<2x128xf32>
    %478 = arith.addf %475, %477 : vector<2x128xf32>
    %479 = vector.extract_strided_slice %478 {offsets = [0, 0], sizes = [2, 16], strides = [1, 1]} : vector<2x128xf32> to vector<2x16xf32>
    %cst_164 = arith.constant dense<0.000000e+00> : vector<2xf32>
    %480 = vector.multi_reduction <add>, %479, %cst_164 [1] : vector<2x16xf32> to vector<2xf32>
    %481 = vector.shape_cast %480 : vector<2xf32> to vector<2x1xf32>
    %cst_165 = arith.constant 1.600000e+01 : f32
    %482 = vector.broadcast %cst_165 : f32 to vector<2x1xf32>
    %483 = arith.divf %481, %482 : vector<2x1xf32>
    %484 = vector.broadcast %483 : vector<2x1xf32> to vector<2x16xf32>
    %485 = arith.subf %479, %484 : vector<2x16xf32>
    %486 = arith.mulf %485, %485 : vector<2x16xf32>
    %cst_166 = arith.constant dense<0.000000e+00> : vector<2xf32>
    %487 = vector.multi_reduction <add>, %486, %cst_166 [1] : vector<2x16xf32> to vector<2xf32>
    %488 = vector.shape_cast %487 : vector<2xf32> to vector<2x1xf32>
    %cst_167 = arith.constant 1.600000e+01 : f32
    %489 = vector.broadcast %cst_167 : f32 to vector<2x1xf32>
    %490 = arith.divf %488, %489 : vector<2x1xf32>
    %491 = vector.broadcast %483 : vector<2x1xf32> to vector<2x128xf32>
    %492 = arith.subf %478, %491 : vector<2x128xf32>
    %cst_168 = arith.constant 9.99999974E-6 : f32
    %493 = vector.broadcast %cst_168 : f32 to vector<2x1xf32>
    %494 = arith.addf %490, %493 : vector<2x1xf32>
    %495 = math.rsqrt %494 : vector<2x1xf32>
    %496 = vector.broadcast %495 : vector<2x1xf32> to vector<2x128xf32>
    %497 = arith.mulf %492, %496 : vector<2x128xf32>
    %c61 = arith.constant 61 : index
    %c0_169 = arith.constant 0 : index
    %498 = vector.load %arg2[%c61, %c0_169] : memref<70x128xf32, #tpu.memory_space<vmem>>, vector<1x128xf32>
    %499 = vector.broadcast %498 : vector<1x128xf32> to vector<2x128xf32>
    %500 = arith.mulf %497, %499 : vector<2x128xf32>
    %c62 = arith.constant 62 : index
    %c0_170 = arith.constant 0 : index
    %501 = vector.load %arg2[%c62, %c0_170] : memref<70x128xf32, #tpu.memory_space<vmem>>, vector<1x128xf32>
    %502 = vector.broadcast %501 : vector<1x128xf32> to vector<2x128xf32>
    %503 = arith.addf %500, %502 : vector<2x128xf32>
    %cst_171 = arith.constant 0.000000e+00 : f32
    %504 = vector.broadcast %cst_171 : f32 to vector<2x128xf32>
    %505 = arith.maximumf %503, %504 : vector<2x128xf32>
    %506 = vector.extract_strided_slice %505 {offsets = [0, 0], sizes = [2, 16], strides = [1, 1]} : vector<2x128xf32> to vector<2x16xf32>
    %507 = arith.truncf %506 : vector<2x16xf32> to vector<2x16xbf16>
    %c752 = arith.constant 752 : index
    %c0_172 = arith.constant 0 : index
    %508 = vector.load %arg1[%c752, %c0_172] : memref<832x128xbf16, #tpu.memory_space<vmem>>, vector<16x128xbf16>
    %cst_173 = arith.constant dense<0.000000e+00> : vector<2x128xf32>
    %509 = tpu.matmul %507, %508, %cst_173 {dimension_numbers = #tpu.dot_dimension_numbers<[1], [0], [0], [1], [0, 0, 1, 1], [], []>} : vector<2x16xbf16>, vector<16x128xbf16>, vector<2x128xf32> -> vector<2x128xf32>
    %c63 = arith.constant 63 : index
    %c0_174 = arith.constant 0 : index
    %510 = vector.load %arg2[%c63, %c0_174] : memref<70x128xf32, #tpu.memory_space<vmem>>, vector<1x128xf32>
    %511 = vector.broadcast %510 : vector<1x128xf32> to vector<2x128xf32>
    %512 = arith.addf %509, %511 : vector<2x128xf32>
    %513 = vector.extract_strided_slice %512 {offsets = [0, 0], sizes = [2, 1], strides = [1, 1]} : vector<2x128xf32> to vector<2x1xf32>
    %cst_175 = arith.constant 0.000000e+00 : f32
    %514 = vector.broadcast %cst_175 : f32 to vector<2x90xf32>
    %515 = vector.extract_strided_slice %363 {offsets = [0, 0], sizes = [2, 32], strides = [1, 1]} : vector<2x128xf32> to vector<2x32xf32>
    %516 = tpu.concatenate %515, %441, %513, %514 in 1 : vector<2x32xf32>, vector<2x5xf32>, vector<2x1xf32>, vector<2x90xf32> -> vector<2x128xf32>
    %517 = vector.extract_strided_slice %516 {offsets = [0, 0], sizes = [2, 38], strides = [1, 1]} : vector<2x128xf32> to vector<2x38xf32>
    %cst_176 = arith.constant dense<0.000000e+00> : vector<2xf32>
    %518 = vector.multi_reduction <add>, %517, %cst_176 [1] : vector<2x38xf32> to vector<2xf32>
    %519 = vector.shape_cast %518 : vector<2xf32> to vector<2x1xf32>
    %cst_177 = arith.constant 3.800000e+01 : f32
    %520 = vector.broadcast %cst_177 : f32 to vector<2x1xf32>
    %521 = arith.divf %519, %520 : vector<2x1xf32>
    %522 = vector.broadcast %521 : vector<2x1xf32> to vector<2x38xf32>
    %523 = arith.subf %517, %522 : vector<2x38xf32>
    %524 = arith.mulf %523, %523 : vector<2x38xf32>
    %cst_178 = arith.constant dense<0.000000e+00> : vector<2xf32>
    %525 = vector.multi_reduction <add>, %524, %cst_178 [1] : vector<2x38xf32> to vector<2xf32>
    %526 = vector.shape_cast %525 : vector<2xf32> to vector<2x1xf32>
    %cst_179 = arith.constant 3.800000e+01 : f32
    %527 = vector.broadcast %cst_179 : f32 to vector<2x1xf32>
    %528 = arith.divf %526, %527 : vector<2x1xf32>
    %529 = vector.broadcast %521 : vector<2x1xf32> to vector<2x128xf32>
    %530 = arith.subf %516, %529 : vector<2x128xf32>
    %cst_180 = arith.constant 9.99999974E-6 : f32
    %531 = vector.broadcast %cst_180 : f32 to vector<2x1xf32>
    %532 = arith.addf %528, %531 : vector<2x1xf32>
    %533 = math.rsqrt %532 : vector<2x1xf32>
    %534 = vector.broadcast %533 : vector<2x1xf32> to vector<2x128xf32>
    %535 = arith.mulf %530, %534 : vector<2x128xf32>
    %c64 = arith.constant 64 : index
    %c0_181 = arith.constant 0 : index
    %536 = vector.load %arg2[%c64, %c0_181] : memref<70x128xf32, #tpu.memory_space<vmem>>, vector<1x128xf32>
    %537 = vector.broadcast %536 : vector<1x128xf32> to vector<2x128xf32>
    %538 = arith.mulf %535, %537 : vector<2x128xf32>
    %c65 = arith.constant 65 : index
    %c0_182 = arith.constant 0 : index
    %539 = vector.load %arg2[%c65, %c0_182] : memref<70x128xf32, #tpu.memory_space<vmem>>, vector<1x128xf32>
    %540 = vector.broadcast %539 : vector<1x128xf32> to vector<2x128xf32>
    %541 = arith.addf %538, %540 : vector<2x128xf32>
    %cst_183 = arith.constant 0.000000e+00 : f32
    %542 = vector.broadcast %cst_183 : f32 to vector<2x128xf32>
    %543 = arith.maximumf %541, %542 : vector<2x128xf32>
    %544 = vector.extract_strided_slice %543 {offsets = [0, 0], sizes = [2, 48], strides = [1, 1]} : vector<2x128xf32> to vector<2x48xf32>
    %545 = arith.truncf %544 : vector<2x48xf32> to vector<2x48xbf16>
    %c768 = arith.constant 768 : index
    %c0_184 = arith.constant 0 : index
    %546 = vector.load %arg1[%c768, %c0_184] : memref<832x128xbf16, #tpu.memory_space<vmem>>, vector<48x128xbf16>
    %cst_185 = arith.constant dense<0.000000e+00> : vector<2x128xf32>
    %547 = tpu.matmul %545, %546, %cst_185 {dimension_numbers = #tpu.dot_dimension_numbers<[1], [0], [0], [1], [0, 0, 1, 1], [], []>} : vector<2x48xbf16>, vector<48x128xbf16>, vector<2x128xf32> -> vector<2x128xf32>
    %c66 = arith.constant 66 : index
    %c0_186 = arith.constant 0 : index
    %548 = vector.load %arg2[%c66, %c0_186] : memref<70x128xf32, #tpu.memory_space<vmem>>, vector<1x128xf32>
    %549 = vector.broadcast %548 : vector<1x128xf32> to vector<2x128xf32>
    %550 = arith.addf %547, %549 : vector<2x128xf32>
    %551 = vector.extract_strided_slice %550 {offsets = [0, 0], sizes = [2, 16], strides = [1, 1]} : vector<2x128xf32> to vector<2x16xf32>
    %cst_187 = arith.constant dense<0.000000e+00> : vector<2xf32>
    %552 = vector.multi_reduction <add>, %551, %cst_187 [1] : vector<2x16xf32> to vector<2xf32>
    %553 = vector.shape_cast %552 : vector<2xf32> to vector<2x1xf32>
    %cst_188 = arith.constant 1.600000e+01 : f32
    %554 = vector.broadcast %cst_188 : f32 to vector<2x1xf32>
    %555 = arith.divf %553, %554 : vector<2x1xf32>
    %556 = vector.broadcast %555 : vector<2x1xf32> to vector<2x16xf32>
    %557 = arith.subf %551, %556 : vector<2x16xf32>
    %558 = arith.mulf %557, %557 : vector<2x16xf32>
    %cst_189 = arith.constant dense<0.000000e+00> : vector<2xf32>
    %559 = vector.multi_reduction <add>, %558, %cst_189 [1] : vector<2x16xf32> to vector<2xf32>
    %560 = vector.shape_cast %559 : vector<2xf32> to vector<2x1xf32>
    %cst_190 = arith.constant 1.600000e+01 : f32
    %561 = vector.broadcast %cst_190 : f32 to vector<2x1xf32>
    %562 = arith.divf %560, %561 : vector<2x1xf32>
    %563 = vector.broadcast %555 : vector<2x1xf32> to vector<2x128xf32>
    %564 = arith.subf %550, %563 : vector<2x128xf32>
    %cst_191 = arith.constant 9.99999974E-6 : f32
    %565 = vector.broadcast %cst_191 : f32 to vector<2x1xf32>
    %566 = arith.addf %562, %565 : vector<2x1xf32>
    %567 = math.rsqrt %566 : vector<2x1xf32>
    %568 = vector.broadcast %567 : vector<2x1xf32> to vector<2x128xf32>
    %569 = arith.mulf %564, %568 : vector<2x128xf32>
    %c67 = arith.constant 67 : index
    %c0_192 = arith.constant 0 : index
    %570 = vector.load %arg2[%c67, %c0_192] : memref<70x128xf32, #tpu.memory_space<vmem>>, vector<1x128xf32>
    %571 = vector.broadcast %570 : vector<1x128xf32> to vector<2x128xf32>
    %572 = arith.mulf %569, %571 : vector<2x128xf32>
    %c68 = arith.constant 68 : index
    %c0_193 = arith.constant 0 : index
    %573 = vector.load %arg2[%c68, %c0_193] : memref<70x128xf32, #tpu.memory_space<vmem>>, vector<1x128xf32>
    %574 = vector.broadcast %573 : vector<1x128xf32> to vector<2x128xf32>
    %575 = arith.addf %572, %574 : vector<2x128xf32>
    %cst_194 = arith.constant 0.000000e+00 : f32
    %576 = vector.broadcast %cst_194 : f32 to vector<2x128xf32>
    %577 = arith.maximumf %575, %576 : vector<2x128xf32>
    %578 = vector.extract_strided_slice %577 {offsets = [0, 0], sizes = [2, 16], strides = [1, 1]} : vector<2x128xf32> to vector<2x16xf32>
    %579 = arith.truncf %578 : vector<2x16xf32> to vector<2x16xbf16>
    %c816 = arith.constant 816 : index
    %c0_195 = arith.constant 0 : index
    %580 = vector.load %arg1[%c816, %c0_195] : memref<832x128xbf16, #tpu.memory_space<vmem>>, vector<16x128xbf16>
    %cst_196 = arith.constant dense<0.000000e+00> : vector<2x128xf32>
    %581 = tpu.matmul %579, %580, %cst_196 {dimension_numbers = #tpu.dot_dimension_numbers<[1], [0], [0], [1], [0, 0, 1, 1], [], []>} : vector<2x16xbf16>, vector<16x128xbf16>, vector<2x128xf32> -> vector<2x128xf32>
    %c69 = arith.constant 69 : index
    %c0_197 = arith.constant 0 : index
    %582 = vector.load %arg2[%c69, %c0_197] : memref<70x128xf32, #tpu.memory_space<vmem>>, vector<1x128xf32>
    %583 = vector.broadcast %582 : vector<1x128xf32> to vector<2x128xf32>
    %584 = arith.addf %581, %583 : vector<2x128xf32>
    %585 = vector.extract_strided_slice %584 {offsets = [0, 0], sizes = [2, 1], strides = [1, 1]} : vector<2x128xf32> to vector<2x1xf32>
    %cst_198 = arith.constant 0.000000e+00 : f32
    %586 = vector.broadcast %cst_198 : f32 to vector<2x1xf32>
    %587 = arith.subf %586, %585 : vector<2x1xf32>
    %588 = math.exp %587 : vector<2x1xf32>
    %cst_199 = arith.constant 1.000000e+00 : f32
    %589 = vector.broadcast %cst_199 : f32 to vector<2x1xf32>
    %590 = arith.addf %589, %588 : vector<2x1xf32>
    %cst_200 = arith.constant 1.000000e+00 : f32
    %591 = vector.broadcast %cst_200 : f32 to vector<2x1xf32>
    %592 = arith.divf %591, %590 : vector<2x1xf32>
    %593 = tpu.iota {dimensions = array<i32: 1>} : vector<2x128xi32>
    %c5_i32 = arith.constant 5 : i32
    %594 = vector.broadcast %c5_i32 : i32 to vector<2x128xi32>
    %595 = arith.cmpi eq, %593, %594 : vector<2x128xi32>
    %596 = vector.shape_cast %513 : vector<2x1xf32> to vector<2x1xf32>
    %597 = vector.broadcast %596 : vector<2x1xf32> to vector<2x128xf32>
    %598 = arith.select %595, %597, %431 : vector<2x128xi1>, vector<2x128xf32>
    %c6_i32 = arith.constant 6 : i32
    %599 = vector.broadcast %c6_i32 : i32 to vector<2x128xi32>
    %600 = arith.cmpi eq, %593, %599 : vector<2x128xi32>
    %601 = vector.shape_cast %592 : vector<2x1xf32> to vector<2x1xf32>
    %602 = vector.broadcast %601 : vector<2x1xf32> to vector<2x128xf32>
    %603 = arith.select %600, %602, %598 : vector<2x128xi1>, vector<2x128xf32>
    %c0_201 = arith.constant 0 : index
    %c0_202 = arith.constant 0 : index
    %604 = vector.load %arg3[%c0_201, %c0_202] : memref<2x128xf32, #tpu.memory_space<vmem>>, vector<2x128xf32>
    tpu.vector_store %arg3[%c0_201, %c0_202], %603 {strides = array<i32>} : memref<2x128xf32, #tpu.memory_space<vmem>>, vector<2x128xf32>,
    return
  }
}

</mosaic_0001>

<bundles_post_ra>
// kernel: vit_autoregressor_forward.1
= control target key start
LH: loop header
LB: loop body
LE: loop exit
PB: predicated region body
PF: predicated region fallthrough
CT: control target
= control target key end

     0   :  { %vm33_vm0 = vcmask 130048   ;;  %vm59_vm1 = vcmask 261120   ;;  %v2938_v23 = vmov 32.0   ;;  %s2943_s19 = smov 37   ;;  %s3686_s1 = inlined_call_operand.vmem [shape: bf16[832,128], index: 1, kind: input, shape index: {}]   ;;  %s3687_s0 = inlined_call_operand.vmem [shape: f32[32,16], index: 0, kind: input, shape index: {}]   ;;  %s3688_s2 = inlined_call_operand.vmem [shape: f32[70,128], index: 2, kind: input, shape index: {}]   ;;  %s3689_s3 = inlined_call_operand.vmem [shape: f32[2,128], index: 3, kind: output, shape index: {}]  }
   0x1   :  { %v2717_v0 = vld [vmem:[%s3686_s1] sm:$0xff]  ;;  %v16_v2 = vld [vmem:[%s3687_s0 + $0x8] sm:$0xff]  ;;  %v17_v4 = vld [vmem:[%s3687_s0 + $0x10] sm:$0xff]  ;;  %2814 = vrcp.f32 %v2938_v23 }
   0x2   :  { %v15_v1 = vld [vmem:[%s3687_s0] sm:$0xff]  ;;  %47 = vmatpush.bf16.msra.mxu0 %v2717_v0  ;;  %v18_v5 = vld [vmem:[%s3687_s0 + $0x18] sm:$0xff]  ;;  %v24_v11 = vld [vmem:[%s3688_s2 + $0x8] sm:$0xff]  ;;  %s2940_s0 = smov 32  }
   0x3   :  { %v19_v3 = vpack.c.bf16 %v16_v2, %v15_v1  ;;  %v20_v6 = vpack.c.bf16 %v18_v5, %v17_v4  ;;  %v23_v7 = vld [vmem:[%s3688_s2] sm:$0xff]  ;;  %v25_v15 = vld [vmem:[%s3688_s2 + $0x10] sm:$0xff]  ;;  %v26_v19 = vld [vmem:[%s3688_s2 + $0x18] sm:$0xff] }
   0x4   :  { %v2719_v50 = vld [vmem:[%s3686_s1 + $0x10] sm:$0xff]  ;;  %v2721_v51 = vld [vmem:[%s3686_s1 + $0x20] sm:$0xff]  ;;  %v2718_v53 = vld [vmem:[%s3686_s1 + $0x8] sm:$0xff] }
   0x5   :  { %2448 = vmatmul.msk.bf16.vlgmr.msra.gmra.mxu0 %vm33_vm0, %v19_v3  ;;  %v2723_v52 = vld [vmem:[%s3686_s1 + $0x30] sm:$0xff]  ;;  %187 = vmatpush.bf16.msra.mxu1 %v2719_v50  ;;  %v2720_v54 = vld [vmem:[%s3686_s1 + $0x18] sm:$0xff]  ;;  %v2722_v55 = vld [vmem:[%s3686_s1 + $0x28] sm:$0xff] }
   0x6   :  { %228 = vmatpush.bf16.msra.mxu2 %v2721_v51  ;;  %269 = vmatpush.bf16.msra.mxu3 %v2723_v52  ;;  %v2778_v52 = vld [vmem:[%s3688_s2 + $0x22] ss:$0 sm:$0xff] }
   0x7   :  { %v2815_v24 = vpop.eup %2814 }
   0x8   :  { %v73_v25 = vmul.f32 32.0, %v2815_v24  ;;  %vm77_vm2 = vweird.f32 %v2815_v24 }
   0x9   :  { %188 = vmatpush.bf16.msra.mxu1 %v2718_v53 }
   0xa   :  { %v74_v26 = vsub.f32 1.0, %v73_v25  ;;  %229 = vmatpush.bf16.msra.mxu2 %v2720_v54  ;;  %270 = vmatpush.bf16.msra.mxu3 %v2722_v55 }
   0xc   :  { %v75_v27 = vmul.f32 %v2815_v24, %v74_v26 }
   0xe   :  { %v76_v28 = vadd.f32 %v2815_v24, %v75_v27 }
  0x10   :  { %v3010_v29 = vsel %vm77_vm2, %v2815_v24, %v76_v28 }
  0x15   :  { %2449 = vmatmul.msk.bf16.gmra.mxu0 %vm33_vm0, %v20_v6 }
  0x82   :  { %v49_v8 = vpop.f32.mrf.mxu0 }
  0x83   :  { %v2985_v9 = vadd.f32 %v49_v8, %v23_v7 }
  0x85   :  { %v60_v10 = vsel %vm59_vm1, %v2985_v9, 0.0 }
  0x86   :  { %61 = vadd.xlane.f32.xlu0 %v60_v10 }
  0x8a   :  { %v51_v12 = vpop.f32.mrf.mxu0 }
  0x8b   :  { %v2992_v13 = vadd.f32 %v51_v12, %v24_v11 }
  0x8d   :  { %v63_v14 = vsel %vm59_vm1, %v2992_v13, 0.0 }
  0x8e   :  { %64 = vadd.xlane.f32.xlu0 %v63_v14 }
  0x92   :  { %v54_v16 = vpop.f32.mrf.mxu0 }
  0x93   :  { %v2999_v17 = vadd.f32 %v54_v16, %v25_v15 }
  0x95   :  { %v66_v18 = vsel %vm59_vm1, %v2999_v17, 0.0 }
  0x96   :  { %67 = vadd.xlane.f32.xlu2 %v66_v18 }
  0x9a   :  { %v56_v20 = vpop.f32.mrf.mxu0 }
  0x9b   :  { %v3006_v21 = vadd.f32 %v56_v20, %v26_v19 }
  0x9d   :  { %v69_v22 = vsel %vm59_vm1, %v3006_v21, 0.0 }
  0x9e   :  { %70 = vadd.xlane.f32.xlu2 %v69_v22 }
  0xf9   :  { %v62_v30 = vpop.xlane.xlu0 %61 }
  0xfa   :  { %v79_v31 = vmul.f32 %v3010_v29, %v62_v30 }
  0xfc   :  { %v3014_v32 = vsub.f32 %v2985_v9, %v79_v31 }
  0xfe   :  { %v87_v33 = vmul.f32 %v3014_v32, %v3014_v32 }
 0x100   :  { %v91_v34 = vsel %vm59_vm1, %v87_v33, 0.0 }
 0x101   :  { %92 = vadd.xlane.f32.xlu1 %v91_v34  ;;  %v65_v35 = vpop.xlane.xlu0 %64 }
 0x102   :  { %v80_v36 = vmul.f32 %v3010_v29, %v65_v35 }
 0x104   :  { %v3021_v37 = vsub.f32 %v2992_v13, %v80_v36 }
 0x106   :  { %v88_v38 = vmul.f32 %v3021_v37, %v3021_v37 }
 0x108   :  { %v94_v39 = vsel %vm59_vm1, %v88_v38, 0.0 }
 0x109   :  { %v68_v40 = vpop.xlane.xlu2 %67  ;;  %95 = vadd.xlane.f32.xlu1 %v94_v39 }
 0x10a   :  { %v81_v41 = vmul.f32 %v3010_v29, %v68_v40 }
 0x10c   :  { %v3028_v42 = vsub.f32 %v2999_v17, %v81_v41 }
 0x10e   :  { %v89_v43 = vmul.f32 %v3028_v42, %v3028_v42 }
 0x110   :  { %v97_v44 = vsel %vm59_vm1, %v89_v43, 0.0 }
 0x111   :  { %v71_v45 = vpop.xlane.xlu2 %70  ;;  %98 = vadd.xlane.f32.xlu0 %v97_v44 }
 0x112   :  { %v82_v46 = vmul.f32 %v3010_v29, %v71_v45 }
 0x114   :  { %v3035_v47 = vsub.f32 %v3006_v21, %v82_v46  ;;  %v2779_v46 = vld [vmem:[%s3688_s2 + $0x23] ss:$0 sm:$0xff] }
 0x116   :  { %v90_v48 = vmul.f32 %v3035_v47, %v3035_v47 }
 0x118   :  { %v100_v49 = vsel %vm59_vm1, %v90_v48, 0.0 }
 0x119   :  { %101 = vadd.xlane.f32.xlu1 %v100_v49 }
 0x174   :  { %v93_v56 = vpop.xlane.xlu1 %92 }
 0x175   :  { %v103_v57 = vmul.f32 %v93_v56, %v3010_v29 }
 0x177   :  { %v107_v58 = vadd.f32 1e-05, %v103_v57 }
 0x179   :  { %2816 = vrsqrt.f32 %v107_v58  ;;  %vm117_vm4 = vweird.f32 %v107_v58 }
 0x17c   :  { %v96_v59 = vpop.xlane.xlu1 %95 }
 0x17d   :  { %v104_v60 = vmul.f32 %v96_v59, %v3010_v29 }
 0x17f   :  { %v2817_v61 = vpop.eup %2816  ;;  %v108_v62 = vadd.f32 1e-05, %v104_v60 }
 0x180   :  { %v112_v63 = vmul.f32 %v2817_v61, %v107_v58  ;;  %vm118_vm3 = vweird.f32 %v2817_v61 }
 0x181   :  { %2818 = vrsqrt.f32 %v108_v62  ;;  %vm119_vm6 = vmor %vm117_vm4, %vm118_vm3  ;;  %vm127_vm7 = vweird.f32 %v108_v62 }
 0x182   :  { %v113_v0 = vmul.f32 %v2817_v61, %v112_v63 }
 0x184   :  { %v114_v1 = vmul.f32 0.5, %v113_v0  ;;  %v99_v2 = vpop.xlane.xlu0 %98 }
 0x185   :  { %v105_v3 = vmul.f32 %v99_v2, %v3010_v29 }
 0x186   :  { %v115_v6 = vsub.f32 1.5, %v114_v1 }
 0x187   :  { %v2819_v4 = vpop.eup %2818  ;;  %v109_v5 = vadd.f32 1e-05, %v105_v3 }
 0x188   :  { %v122_v7 = vmul.f32 %v2819_v4, %v108_v62  ;;  %v116_v10 = vmul.f32 %v2817_v61, %v115_v6  ;;  %vm128_vm5 = vweird.f32 %v2819_v4 }
 0x189   :  { %2820 = vrsqrt.f32 %v109_v5  ;;  %vm129_vm8 = vmor %vm127_vm7, %vm128_vm5  ;;  %vm137_vm9 = vweird.f32 %v109_v5 }
 0x18a   :  { %v123_v8 = vmul.f32 %v2819_v4, %v122_v7  ;;  %v120_v19 = vsel %vm119_vm6, %v2817_v61, %v116_v10 }
 0x18b   :  { %v151_v25 = vmul.f32 %v120_v19, %v3014_v32 }
 0x18c   :  { %v124_v11 = vmul.f32 0.5, %v123_v8  ;;  %v102_v12 = vpop.xlane.xlu1 %101 }
 0x18d   :  { %v106_v14 = vmul.f32 %v102_v12, %v3010_v29 }
 0x18e   :  { %v125_v15 = vsub.f32 1.5, %v124_v11 }
 0x18f   :  { %v2821_v16 = vpop.eup %2820  ;;  %v110_v18 = vadd.f32 1e-05, %v106_v14  ;;  %v2725_v14 = vld [vmem:[%s3686_s1 + $0x40] sm:$0xff] }
 0x190   :  { %v126_v20 = vmul.f32 %v2819_v4, %v125_v15  ;;  %v132_v22 = vmul.f32 %v2821_v16, %v109_v5  ;;  %vm138_vm10 = vweird.f32 %v2821_v16  ;;  %v2726_v5 = vld [vmem:[%s3686_s1 + $0x48] sm:$0xff] }
 0x191   :  { %2822 = vrsqrt.f32 %v110_v18  ;;  %vm139_vm12 = vmor %vm137_vm9, %vm138_vm10  ;;  %vm147_vm13 = vweird.f32 %v110_v18 }
 0x192   :  { %v130_v23 = vsel %vm129_vm8, %v2819_v4, %v126_v20  ;;  %v133_v24 = vmul.f32 %v2821_v16, %v132_v22 }
 0x193   :  { %v152_v26 = vmul.f32 %v130_v23, %v3021_v37 }
 0x194   :  { %v134_v27 = vmul.f32 0.5, %v133_v24 }
 0x195   :  { %v3064_v28 = vpack.c.bf16 %v152_v26, %v151_v25 }
 0x196   :  { %v135_v31 = vsub.f32 1.5, %v134_v27 }
 0x197   :  { %v2823_v30 = vpop.eup %2822  ;;  %2458 = vmatmul.msk.bf16.vlgmr.msra.gmra.mxu1 %vm59_vm1, %v3064_v28  ;;  %2468 = vmatmul.msk.bf16.vlgmr.msra.gmra.mxu2 %vm59_vm1, %v3064_v28 }
 0x198   :  { %v142_v33 = vmul.f32 %v2823_v30, %v110_v18  ;;  %2478 = vmatmul.msk.bf16.vlgmr.msra.gmra.mxu3 %vm59_vm1, %v3064_v28  ;;  %v136_v35 = vmul.f32 %v2821_v16, %v135_v31  ;;  %vm148_vm11 = vweird.f32 %v2823_v30 }
 0x199   :  { %vm149_vm14 = vmor %vm147_vm13, %vm148_vm11  ;;  %vm974_vm13 = vcmask 523264  }
 0x19a   :  { %v143_v34 = vmul.f32 %v2823_v30, %v142_v33  ;;  %v140_v37 = vsel %vm139_vm12, %v2821_v16, %v136_v35 }
 0x19b   :  { %v153_v40 = vmul.f32 %v140_v37, %v3028_v42 }
 0x19c   :  { %v144_v32 = vmul.f32 0.5, %v143_v34 }
 0x19e   :  { %v145_v36 = vsub.f32 1.5, %v144_v32 }
 0x1a0   :  { %v146_v38 = vmul.f32 %v2823_v30, %v145_v36 }
 0x1a2   :  { %v150_v39 = vsel %vm149_vm14, %v2823_v30, %v146_v38 }
 0x1a3   :  { %v154_v41 = vmul.f32 %v150_v39, %v3035_v47  ;;  %v2780_v47 = vld [vmem:[%s3688_s2 + $0x24] ss:$0 sm:$0xff] }
 0x1a5   :  { %v3074_v43 = vpack.c.bf16 %v154_v41, %v153_v40  ;;  %v2730_v40 = vld [vmem:[%s3686_s1 + $0x68] sm:$0xff] }
 0x1a7   :  { %2459 = vmatmul.msk.bf16.gmra.mxu1 %vm59_vm1, %v3074_v43  ;;  %2469 = vmatmul.msk.bf16.gmra.mxu2 %vm59_vm1, %v3074_v43 }
 0x1a8   :  { %2479 = vmatmul.msk.bf16.gmra.mxu3 %vm59_vm1, %v3074_v43 }
 0x214   :  { %v190_v44 = vpop.f32.mrf.mxu1 }
 0x215   :  { %v191_v61 = vadd.f32 %v2778_v52, %v190_v44 }
 0x217   :  { %v200_v8 = vpack.c.bf16 %v191_v61, %v191_v61 }
 0x219   :  { %v288_v15 = vunpack.c.l.b16 %v200_v8 }
 0x21a   :  { %v231_v45 = vpop.f32.mrf.mxu2 }
 0x21b   :  { %v272_v42 = vpop.f32.mrf.mxu3  ;;  %v232_v49 = vadd.f32 %v2779_v46, %v231_v45 }
 0x21c   :  { %v192_v48 = vpop.f32.mrf.mxu1  ;;  %v273_v50 = vadd.f32 %v2780_v47, %v272_v42  ;;  %v2729_v42 = vld [vmem:[%s3686_s1 + $0x60] sm:$0xff] }
 0x21d   :  { %v241_v53 = vpack.c.bf16 %v232_v49, %v232_v49  ;;  %v193_v58 = vadd.f32 %v2778_v52, %v192_v48 }
 0x21e   :  { %v282_v56 = vpack.c.bf16 %v273_v50, %v273_v50 }
 0x21f   :  { %v293_v62 = vunpack.c.l.b16 %v241_v53  ;;  %v201_v3 = vpack.c.bf16 %v193_v58, %v193_v58 }
 0x220   :  { %v343_v0 = vunpack.c.l.b16 %v282_v56 }
 0x221   :  { %v289_v12 = vunpack.c.l.b16 %v201_v3 }
 0x222   :  { %v233_v51 = vpop.f32.mrf.mxu2 }
 0x223   :  { %v234_v54 = vadd.f32 %v2779_v46, %v233_v51  ;;  %v274_v55 = vpop.f32.mrf.mxu3  ;;  %v290_v19 = vpack.c.b16 %v289_v12, %v288_v15 }
 0x224   :  { %v275_v57 = vadd.f32 %v2780_v47, %v274_v55  ;;  %v195_v2 = vpop.f32.mrf.mxu1 }
 0x225   :  { %v242_v59 = vpack.c.bf16 %v234_v54, %v234_v54  ;;  %v196_v34 = vadd.f32 %v2778_v52, %v195_v2 }
 0x226   :  { %v283_v60 = vpack.c.bf16 %v275_v57, %v275_v57 }
 0x227   :  { %v294_v63 = vunpack.c.l.b16 %v242_v59  ;;  %v202_v44 = vpack.c.bf16 %v196_v34, %v196_v34 }
 0x228   :  { %v344_v1 = vunpack.c.l.b16 %v283_v60  ;;  %v2782_v60 = vld [vmem:[%s3688_s2 + $0x27] ss:$0 sm:$0xff] }
 0x229   :  { %v295_v4 = vpack.c.b16 %v294_v63, %v293_v62 }
 0x22a   :  { %v236_v6 = vpop.f32.mrf.mxu2  ;;  %v345_v7 = vpack.c.b16 %v344_v1, %v343_v0 }
 0x22b   :  { %v277_v10 = vpop.f32.mrf.mxu3  ;;  %v300_v11 = vsel %vm33_vm0, %v295_v4, 0  ;;  %v237_v16 = vadd.f32 %v2779_v46, %v236_v6 }
 0x22c   :  { %357 = vmatpush.bf16.msrb.mxu1 %v345_v7  ;;  %309 = vmatpush.bf16.xpose.msrb.mxu0 %v300_v11  ;;  %v278_v18 = vadd.f32 %v2780_v47, %v277_v10  ;;  %v197_v20 = vpop.f32.mrf.mxu1 }
 0x22d   :  { %v243_v23 = vpack.c.bf16 %v237_v16, %v237_v16  ;;  %v198_v30 = vadd.f32 %v2778_v52, %v197_v20 }
 0x22e   :  { %v284_v26 = vpack.c.bf16 %v278_v18, %v278_v18 }
 0x22f   :  { %v371_v35 = vunpack.c.l.b16 %v243_v23  ;;  %v203_v38 = vpack.c.bf16 %v198_v30, %v198_v30 }
 0x230   :  { %v421_v36 = vunpack.c.l.b16 %v284_v26  ;;  %v2728_v26 = vld [vmem:[%s3686_s1 + $0x58] sm:$0xff] }
 0x231   :  { %511 = vmatpush.bf16.msra.mxu1 %v2728_v26 }
 0x232   :  { %v238_v22 = vpop.f32.mrf.mxu2 }
 0x233   :  { %v239_v24 = vadd.f32 %v2779_v46, %v238_v22  ;;  %v279_v25 = vpop.f32.mrf.mxu3  ;;  %2480 = vmatmul.msk.bf16.vlgmr.msrb.gmra.mxu0 %vm33_vm0, %v290_v19  ;;  %v367_v46 = vunpack.c.l.b16 %v203_v38 }
 0x234   :  { %470 = vmatpush.bf16.msra.mxu0 %v2726_v5  ;;  %v280_v27 = vadd.f32 %v2780_v47, %v279_v25  ;;  %v366_v47 = vunpack.c.l.b16 %v202_v44 }
 0x235   :  { %v244_v31 = vpack.c.bf16 %v239_v24, %v239_v24 }
 0x236   :  { %v285_v33 = vpack.c.bf16 %v280_v27, %v280_v27  ;;  %v368_v48 = vpack.c.b16 %v367_v46, %v366_v47  ;;  %v2727_v27 = vld [vmem:[%s3686_s1 + $0x50] sm:$0xff] }
 0x237   :  { %v372_v32 = vunpack.c.l.b16 %v244_v31  ;;  %512 = vmatpush.bf16.msra.mxu1 %v2727_v27 }
 0x238   :  { %471 = vmatpush.bf16.msra.mxu0 %v2725_v14  ;;  %v422_v37 = vunpack.c.l.b16 %v285_v33 }
 0x239   :  { %v373_v39 = vpack.c.b16 %v372_v32, %v371_v35 }
 0x23a   :  { %v423_v41 = vpack.c.b16 %v422_v37, %v421_v36 }
 0x23b   :  { %v378_v45 = vsel %vm33_vm0, %v373_v39, 0 }
 0x23c   :  { %435 = vmatpush.bf16.msrb.mxu3 %v423_v41  ;;  %387 = vmatpush.bf16.xpose.msrb.mxu2 %v378_v45 }
 0x243   :  { %2482 = vmatmul.msk.bf16.vlgmr.msrb.gmra.mxu2 %vm33_vm0, %v368_v48  ;;  %2492 = vmatmul.msk.bf16.vlgmr.msra.gmra.mxu0 %vm59_vm1, %v3064_v28 }
 0x244   :  { %552 = vmatpush.bf16.msra.mxu2 %v2730_v40 }
 0x248   :  { %553 = vmatpush.bf16.msra.mxu2 %v2729_v42 }
 0x253   :  { %2493 = vmatmul.msk.bf16.gmra.mxu0 %vm59_vm1, %v3074_v43  ;;  %2512 = vmatmul.msk.bf16.vlgmr.msra.gmra.mxu2 %vm59_vm1, %v3064_v28 }
 0x263   :  { %2513 = vmatmul.msk.bf16.gmra.mxu2 %vm59_vm1, %v3074_v43 }
 0x2b0   :  { %v311_v49 = vpop.f32.mrf.mxu0 }
 0x2b1   :  { %v316_v50 = vmul.f32 0.25, %v311_v49 }
 0x2b3   :  { %v318_v51 = vsel %vm33_vm0, %v316_v50, -inf }
 0x2b4   :  { %319 = vmax.xlane.f32.xlu2 %v318_v51 }
 0x2b8   :  { %v313_v52 = vpop.f32.mrf.mxu0 }
 0x2b9   :  { %v317_v53 = vmul.f32 0.25, %v313_v52 }
 0x2bb   :  { %v321_v54 = vsel %vm33_vm0, %v317_v53, -inf }
 0x2bc   :  { %322 = vmax.xlane.f32.xlu0 %v321_v54 }
 0x2c6   :  { %v389_v55 = vpop.f32.mrf.mxu2 }
 0x2c7   :  { %v394_v56 = vmul.f32 0.25, %v389_v55 }
 0x2c9   :  { %v396_v57 = vsel %vm33_vm0, %v394_v56, -inf }
 0x2ca   :  { %397 = vmax.xlane.f32.xlu0 %v396_v57 }
 0x2ce   :  { %v391_v58 = vpop.f32.mrf.mxu2 }
 0x2cf   :  { %v395_v15 = vmul.f32 0.25, %v391_v58 }
 0x2d1   :  { %v399_v18 = vsel %vm33_vm0, %v395_v15, -inf }
 0x2d6   :  { %v555_v59 = vpop.f32.mrf.mxu2 }
 0x2d7   :  { %v556_v61 = vadd.f32 %v2782_v60, %v555_v59 }
 0x2d9   :  { %v565_v63 = vpack.c.bf16 %v556_v61, %v556_v61  ;;  %v473_v61 = vpop.f32.mrf.mxu0 }
 0x2db   :  { %v3121_v2 = vunpack.c.l.b16 %v565_v63 }
 0x2de   :  { %v557_v62 = vpop.f32.mrf.mxu2 }
 0x2df   :  { %v558_v0 = vadd.f32 %v2782_v60, %v557_v62 }
 0x2e1   :  { %v566_v1 = vpack.c.bf16 %v558_v0, %v558_v0  ;;  %v475_v62 = vpop.f32.mrf.mxu0 }
 0x2e3   :  { %v3123_v3 = vunpack.c.l.b16 %v566_v1  ;;  %v2781_v1 = vld [vmem:[%s3688_s2 + $0x25] ss:$0 sm:$0xff] }
 0x2e5   :  { %v628_v4 = vpack.c.b16 %v3123_v3, %v3121_v2 }
 0x2e6   :  { %v560_v30 = vpop.f32.mrf.mxu2 }
 0x2e7   :  { %v561_v36 = vadd.f32 %v2782_v60, %v560_v30 }
 0x2e9   :  { %v567_v41 = vpack.c.bf16 %v561_v36, %v561_v36 }
 0x2eb   :  { %v704_v47 = vunpack.c.l.b16 %v567_v41 }
 0x2ee   :  { %v562_v33 = vpop.f32.mrf.mxu2 }
 0x2ef   :  { %v563_v34 = vadd.f32 %v2782_v60, %v562_v33 }
 0x2f1   :  { %v568_v38 = vpack.c.bf16 %v563_v34, %v563_v34 }
 0x2f3   :  { %v705_v45 = vunpack.c.l.b16 %v568_v38 }
 0x327   :  { %v320_v5 = vpop.xlane.xlu2 %319 }
 0x328   :  { %v324_v6 = vsub.f32 %v316_v50, %v320_v5  ;;  %v706_v50 = vpack.c.b16 %v705_v45, %v704_v47 }
 0x32a   :  { %v326_v7 = vmul.f32 1.442695, %v324_v6 }
 0x32c   :  { %2824 = vpow2.f32 %v326_v7  ;;  %v476_v7 = vadd.f32 %v2781_v1, %v475_v62 }
 0x32f   :  { %v323_v8 = vpop.xlane.xlu0 %322 }
 0x330   :  { %v325_v10 = vsub.f32 %v317_v53, %v323_v8 }
 0x332   :  { %v2825_v11 = vpop.eup %2824  ;;  %v328_v12 = vmul.f32 1.442695, %v325_v10  ;;  %v474_v10 = vadd.f32 %v2781_v1, %v473_v61 }
 0x333   :  { %v330_v14 = vsel %vm33_vm0, %v2825_v11, 0.0 }
 0x334   :  { %2826 = vpow2.f32 %v328_v12  ;;  %331 = vadd.xlane.f32.xlu1 %v330_v14  ;;  %v478_v14 = vpop.f32.mrf.mxu0 }
 0x33a   :  { %v2827_v16 = vpop.eup %2826 }
 0x33b   :  { %v333_v19 = vsel %vm33_vm0, %v2827_v16, 0.0 }
 0x33c   :  { %400 = vmax.xlane.f32.xlu1 %v399_v18  ;;  %334 = vadd.xlane.f32.xlu2 %v333_v19  ;;  %v483_v19 = vpack.c.bf16 %v474_v10, %v474_v10  ;;  %v480_v26 = vpop.f32.mrf.mxu0 }
 0x33d   :  { %v398_v20 = vpop.xlane.xlu0 %397  ;;  %v481_v33 = vadd.f32 %v2781_v1, %v480_v26 }
 0x33e   :  { %v402_v22 = vsub.f32 %v394_v56, %v398_v20 }
 0x340   :  { %v404_v23 = vmul.f32 1.442695, %v402_v22 }
 0x342   :  { %2828 = vpow2.f32 %v404_v23  ;;  %v571_v23 = vunpack.c.l.b16 %v483_v19 }
 0x348   :  { %v2829_v24 = vpop.eup %2828 }
 0x349   :  { %v408_v25 = vsel %vm33_vm0, %v2829_v24, 0.0 }
 0x34a   :  { %409 = vadd.xlane.f32.xlu2 %v408_v25 }
 0x3a7   :  { %v332_v31 = vpop.xlane.xlu1 %331 }
 0x3a8   :  { %2830 = vrcp.f32 %v332_v31 }
 0x3ae   :  { %v2831_v40 = vpop.eup %2830 }
 0x3af   :  { %v401_v35 = vpop.xlane.xlu1 %400  ;;  %v335_v32 = vpop.xlane.xlu2 %334  ;;  %v338_v46 = vmul.f32 %v2831_v40, %v2825_v11 }
 0x3b0   :  { %v403_v37 = vsub.f32 %v395_v15, %v401_v35  ;;  %2832 = vrcp.f32 %v335_v32  ;;  %v484_v15 = vpack.c.bf16 %v476_v7, %v476_v7  ;;  %v479_v35 = vadd.f32 %v2781_v1, %v478_v14 }
 0x3b2   :  { %v406_v39 = vmul.f32 1.442695, %v403_v37  ;;  %v572_v22 = vunpack.c.l.b16 %v484_v15  ;;  %v486_v37 = vpack.c.bf16 %v481_v33, %v481_v33 }
 0x3b4   :  { %2834 = vpow2.f32 %v406_v39  ;;  %v573_v25 = vpack.c.b16 %v572_v22, %v571_v23  ;;  %v485_v39 = vpack.c.bf16 %v479_v35, %v479_v35  ;;  %v650_v3 = vunpack.c.l.b16 %v486_v37 }
 0x3b6   :  { %v2833_v44 = vpop.eup %2832 }
 0x3b7   :  { %v339_v42 = vmul.f32 %v2833_v44, %v2827_v16 }
 0x3b9   :  { %v340_v48 = vpack.c.bf16 %v339_v42, %v338_v46 }
 0x3ba   :  { %v2835_v49 = vpop.eup %2834 }
 0x3bb   :  { %2481 = vmatmul.msk.bf16.vlgmr.msrb.gmra.mxu1 %vm33_vm0, %v340_v48  ;;  %v411_v51 = vsel %vm33_vm0, %v2835_v49, 0.0 }
 0x3bc   :  { %718 = vmatpush.bf16.msrb.mxu1 %v706_v50  ;;  %412 = vadd.xlane.f32.xlu0 %v411_v51 }
 0x3bd   :  { %v410_v52 = vpop.xlane.xlu2 %409 }
 0x3be   :  { %2836 = vrcp.f32 %v410_v52 }
 0x3c4   :  { %v2837_v54 = vpop.eup %2836 }
 0x3c5   :  { %v416_v56 = vmul.f32 %v2837_v54, %v2829_v24 }
 0x3cb   :  { %2502 = vmatmul.msk.bf16.vlgmr.msra.gmra.mxu1 %vm59_vm1, %v3064_v28 }
 0x3db   :  { %2503 = vmatmul.msk.bf16.gmra.mxu1 %vm59_vm1, %v3074_v43  ;;  %v2783_v43 = vld [vmem:[%s3688_s2 + $0x26] ss:$0 sm:$0xff] }
 0x42f   :  { %v413_v53 = vpop.xlane.xlu0 %412 }
 0x430   :  { %2838 = vrcp.f32 %v413_v53 }
 0x436   :  { %v2839_v55 = vpop.eup %2838 }
 0x437   :  { %v417_v57 = vmul.f32 %v2839_v55, %v2835_v49 }
 0x438   :  { %v3143_v58 = vpop.f32.mrf.mxu1 }
 0x439   :  { %v418_v59 = vpack.c.bf16 %v417_v57, %v416_v56 }
 0x43b   :  { %2483 = vmatmul.msk.bf16.vlgmr.msrb.gmra.mxu3 %vm33_vm0, %v418_v59 }
 0x440   :  { %v3146_v60 = vpop.f32.mrf.mxu1 }
 0x448   :  { %v514_v28 = vpop.f32.mrf.mxu1 }
 0x449   :  { %v515_v63 = vadd.f32 %v2783_v43, %v514_v28 }
 0x44b   :  { %v524_v5 = vpack.c.bf16 %v515_v63, %v515_v63 }
 0x44d   :  { %v576_v11 = vunpack.c.l.b16 %v524_v5 }
 0x450   :  { %v516_v0 = vpop.f32.mrf.mxu1 }
 0x451   :  { %v517_v6 = vadd.f32 %v2783_v43, %v516_v0 }
 0x453   :  { %v525_v8 = vpack.c.bf16 %v517_v6, %v517_v6 }
 0x455   :  { %v577_v12 = vunpack.c.l.b16 %v525_v8 }
 0x457   :  { %v578_v16 = vpack.c.b16 %v577_v12, %v576_v11  ;;  %v2724_v11 = vld [vmem:[%s3686_s1 + $0x38] sm:$0xff] }
 0x458   :  { %v519_v18 = vpop.f32.mrf.mxu1 }
 0x459   :  { %v583_v20 = vsel %vm33_vm0, %v578_v16, 0  ;;  %v520_v24 = vadd.f32 %v2783_v43, %v519_v18 }
 0x45a   :  { %592 = vmatpush.bf16.xpose.msra.mxu3 %v583_v20 }
 0x45b   :  { %v526_v30 = vpack.c.bf16 %v520_v24, %v520_v24 }
 0x45d   :  { %v654_v32 = vunpack.c.l.b16 %v526_v30 }
 0x460   :  { %v521_v27 = vpop.f32.mrf.mxu1 }
 0x461   :  { %v522_v31 = vadd.f32 %v2783_v43, %v521_v27  ;;  %2514 = vmatmul.msk.bf16.vlgmr.msra.gmra.mxu3 %vm33_vm0, %v573_v25  ;;  %v442_v27 = vpack.c.bf16 %v3146_v60, %v3143_v58 }
 0x462   :  { %640 = vmatpush.bf16.msrb.mxu3 %v628_v4  ;;  %v649_v4 = vunpack.c.l.b16 %v485_v39 }
 0x463   :  { %v527_v34 = vpack.c.bf16 %v522_v31, %v522_v31  ;;  %v2731_v31 = vld [vmem:[%s3686_s1 + $0x70] sm:$0xff] }
 0x464   :  { %v651_v40 = vpack.c.b16 %v650_v3, %v649_v4  ;;  %748 = vmatpush.bf16.msrb.mxu2 %v2731_v31 }
 0x465   :  { %v655_v36 = vunpack.c.l.b16 %v527_v34 }
 0x466   :  { %779 = vmatpush.bf16.msra.mxu3 %v2724_v11 }
 0x467   :  { %v656_v38 = vpack.c.b16 %v655_v36, %v654_v32 }
 0x469   :  { %v661_v2 = vsel %vm33_vm0, %v656_v38, 0 }
 0x46a   :  { %670 = vmatpush.bf16.xpose.msrb.mxu0 %v661_v2 }
 0x471   :  { %2516 = vmatmul.msk.bf16.vlgmr.msrb.gmra.mxu0 %vm33_vm0, %v651_v40 }
 0x4be   :  { %v437_v41 = vpop.f32.mrf.mxu3 }
 0x4c6   :  { %v439_v44 = vpop.f32.mrf.mxu3 }
 0x4c7   :  { %v443_v30 = vpack.c.bf16 %v439_v44, %v437_v41 }
 0x4e4   :  { %v594_v45 = vpop.f32.mrf.mxu3 }
 0x4e5   :  { %v599_v46 = vmul.f32 0.25, %v594_v45  ;;  %v2784_v45 = vld [vmem:[%s3688_s2 + $0x28] ss:$0 sm:$0xff] }
 0x4e7   :  { %v601_v42 = vsel %vm33_vm0, %v599_v46, -inf }
 0x4e8   :  { %602 = vmax.xlane.f32.xlu1 %v601_v42 }
 0x4ec   :  { %v596_v47 = vpop.f32.mrf.mxu3 }
 0x4ed   :  { %v600_v48 = vmul.f32 0.25, %v596_v47 }
 0x4ee   :  { %v672_v50 = vpop.f32.mrf.mxu0 }
 0x4ef   :  { %v604_v49 = vsel %vm33_vm0, %v600_v48, -inf  ;;  %v677_v51 = vmul.f32 0.25, %v672_v50 }
 0x4f0   :  { %605 = vmax.xlane.f32.xlu2 %v604_v49 }
 0x4f1   :  { %v679_v52 = vsel %vm33_vm0, %v677_v51, -inf }
 0x4f6   :  { %v674_v43 = vpop.f32.mrf.mxu0 }
 0x4f7   :  { %v678_v62 = vmul.f32 0.25, %v674_v43 }
 0x4f8   :  { %680 = vmax.xlane.f32.xlu2 %v679_v52 }
 0x4f9   :  { %v682_v6 = vsel %vm33_vm0, %v678_v62, -inf }
 0x55b   :  { %v603_v53 = vpop.xlane.xlu1 %602 }
 0x55c   :  { %v607_v54 = vsub.f32 %v599_v46, %v603_v53 }
 0x55e   :  { %v609_v55 = vmul.f32 1.442695, %v607_v54 }
 0x560   :  { %2840 = vpow2.f32 %v609_v55 }
 0x563   :  { %v606_v56 = vpop.xlane.xlu2 %605 }
 0x564   :  { %v608_v57 = vsub.f32 %v600_v48, %v606_v56 }
 0x566   :  { %v2841_v59 = vpop.eup %2840  ;;  %v611_v61 = vmul.f32 1.442695, %v608_v57 }
 0x567   :  { %v613_v28 = vsel %vm33_vm0, %v2841_v59, 0.0 }
 0x568   :  { %2842 = vpow2.f32 %v611_v61  ;;  %614 = vadd.xlane.f32.xlu0 %v613_v28 }
 0x56b   :  { %v681_v63 = vpop.xlane.xlu2 %680 }
 0x56c   :  { %v685_v0 = vsub.f32 %v677_v51, %v681_v63 }
 0x56e   :  { %v2843_v1 = vpop.eup %2842  ;;  %v687_v5 = vmul.f32 1.442695, %v685_v0 }
 0x56f   :  { %v616_v7 = vsel %vm33_vm0, %v2843_v1, 0.0 }
 0x570   :  { %2844 = vpow2.f32 %v687_v5  ;;  %683 = vmax.xlane.f32.xlu0 %v682_v6  ;;  %617 = vadd.xlane.f32.xlu1 %v616_v7 }
 0x576   :  { %v2845_v8 = vpop.eup %2844 }
 0x577   :  { %v691_v10 = vsel %vm33_vm0, %v2845_v8, 0.0 }
 0x578   :  { %692 = vadd.xlane.f32.xlu1 %v691_v10 }
 0x5db   :  { %v615_v12 = vpop.xlane.xlu0 %614 }
 0x5dc   :  { %2846 = vrcp.f32 %v615_v12 }
 0x5e2   :  { %v2847_v19 = vpop.eup %2846 }
 0x5e3   :  { %v684_v14 = vpop.xlane.xlu0 %683  ;;  %v618_v15 = vpop.xlane.xlu1 %617  ;;  %v621_v22 = vmul.f32 %v2847_v19, %v2841_v59 }
 0x5e4   :  { %v686_v16 = vsub.f32 %v678_v62, %v684_v14  ;;  %2848 = vrcp.f32 %v618_v15  ;;  %v2733_v14 = vld [vmem:[%s3686_s1 + $0x80] sm:$0xff] }
 0x5e5   :  { %921 = vmatpush.bf16.msra.mxu0 %v2733_v14 }
 0x5e6   :  { %v689_v18 = vmul.f32 1.442695, %v686_v16 }
 0x5e8   :  { %2850 = vpow2.f32 %v689_v18 }
 0x5ea   :  { %v2849_v20 = vpop.eup %2848 }
 0x5eb   :  { %v622_v23 = vmul.f32 %v2849_v20, %v2843_v1  ;;  %v693_v33 = vpop.xlane.xlu1 %692 }
 0x5ec   :  { %2852 = vrcp.f32 %v693_v33 }
 0x5ed   :  { %v623_v24 = vpack.c.bf16 %v622_v23, %v621_v22 }
 0x5ee   :  { %v2851_v25 = vpop.eup %2850 }
 0x5ef   :  { %2515 = vmatmul.msk.bf16.vlgmr.msrb.gmra.mxu3 %vm33_vm0, %v623_v24  ;;  %v694_v26 = vsel %vm33_vm0, %v2851_v25, 0.0 }
 0x5f0   :  { %695 = vadd.xlane.f32.xlu2 %v694_v26 }
 0x5f2   :  { %v2853_v35 = vpop.eup %2852 }
 0x5f3   :  { %v699_v36 = vmul.f32 %v2853_v35, %v2845_v8 }
 0x5ff   :  { %2528 = vmatmul.msk.bf16.vlgmr.msra.gmra.mxu3 %vm33_vm0, %v442_v27 }
 0x60f   :  { %2529 = vmatmul.msk.bf16.gmra.mxu3 %vm33_vm0, %v443_v30 }
 0x663   :  { %v696_v34 = vpop.xlane.xlu2 %695 }
 0x664   :  { %2854 = vrcp.f32 %v696_v34 }
 0x66a   :  { %v2855_v32 = vpop.eup %2854 }
 0x66b   :  { %v700_v37 = vmul.f32 %v2855_v32, %v2851_v25 }
 0x66d   :  { %v701_v38 = vpack.c.bf16 %v700_v37, %v699_v36 }
 0x66f   :  { %2517 = vmatmul.msk.bf16.vlgmr.msrb.gmra.mxu1 %vm33_vm0, %v701_v38 }
 0x672   :  { %v642_v58 = vpop.f32.mrf.mxu3 }
 0x67a   :  { %v644_v60 = vpop.f32.mrf.mxu3 }
 0x67b   :  { %v725_v39 = vpack.c.bf16 %v644_v60, %v642_v58 }
 0x67d   :  { %2522 = vmatmul.msk.bf16.vlgmr.msrb.gmra.mxu2 %vm33_vm0, %v725_v39 }
 0x682   :  { %v781_v40 = vpop.f32.mrf.mxu3 }
 0x68a   :  { %v783_v48 = vpop.f32.mrf.mxu3 }
 0x692   :  { %v786_v54 = vpop.f32.mrf.mxu3 }
 0x69a   :  { %v788_v62 = vpop.f32.mrf.mxu3 }
 0x6ec   :  { %v720_v2 = vpop.f32.mrf.mxu1 }
 0x6f4   :  { %v722_v3 = vpop.f32.mrf.mxu1 }
 0x6f5   :  { %v726_v4 = vpack.c.bf16 %v722_v3, %v720_v2 }
 0x6f7   :  { %2523 = vmatmul.msk.bf16.gmra.mxu2 %vm33_vm0, %v726_v4 }
 0x700   :  { %v750_v41 = vpop.f32.mrf.mxu2 }
 0x701   :  { %v782_v44 = vadd.f32 %v781_v40, %v750_v41 }
 0x703   :  { %v791_v46 = vadd.f32 %v782_v44, %v2985_v9 }
 0x705   :  { %v3187_v42 = vadd.f32 %v2784_v45, %v791_v46 }
 0x707   :  { %v801_v47 = vsel %vm59_vm1, %v3187_v42, 0.0 }
 0x708   :  { %802 = vadd.xlane.f32.xlu0 %v801_v47  ;;  %v752_v49 = vpop.f32.mrf.mxu2 }
 0x709   :  { %v784_v50 = vadd.f32 %v783_v48, %v752_v49 }
 0x70b   :  { %v792_v51 = vadd.f32 %v784_v50, %v2992_v13 }
 0x70d   :  { %v3192_v52 = vadd.f32 %v2784_v45, %v792_v51 }
 0x70f   :  { %v804_v53 = vsel %vm59_vm1, %v3192_v52, 0.0 }
 0x710   :  { %805 = vadd.xlane.f32.xlu1 %v804_v53  ;;  %v2737_v53 = vld [vmem:[%s3686_s1 + $0xa0] sm:$0xff] }
 0x711   :  { %985 = vmatpush.bf16.msra.mxu1 %v2737_v53 }
 0x77a   :  { %v755_v55 = vpop.f32.mrf.mxu2 }
 0x77b   :  { %v787_v9 = vadd.f32 %v786_v54, %v755_v55  ;;  %v803_v56 = vpop.xlane.xlu0 %802  ;;  %v2736_v55 = vld [vmem:[%s3686_s1 + $0x98] sm:$0xff] }
 0x77c   :  { %v813_v57 = vmul.f32 %v803_v56, %v3010_v29  ;;  %986 = vmatpush.bf16.msra.mxu1 %v2736_v55 }
 0x77d   :  { %v793_v59 = vadd.f32 %v787_v9, %v2999_v17 }
 0x77e   :  { %v3199_v61 = vsub.f32 %v3187_v42, %v813_v57 }
 0x77f   :  { %v3201_v28 = vadd.f32 %v2784_v45, %v793_v59 }
 0x780   :  { %v821_v13 = vmul.f32 %v3199_v61, %v3199_v61 }
 0x781   :  { %v807_v43 = vsel %vm59_vm1, %v3201_v28, 0.0 }
 0x782   :  { %v757_v63 = vpop.f32.mrf.mxu2  ;;  %808 = vadd.xlane.f32.xlu1 %v807_v43  ;;  %v825_v0 = vsel %vm59_vm1, %v821_v13, 0.0 }
 0x783   :  { %v789_v1 = vadd.f32 %v788_v62, %v757_v63  ;;  %826 = vadd.xlane.f32.xlu2 %v825_v0  ;;  %v806_v5 = vpop.xlane.xlu1 %805  ;;  %v2734_v62 = vld [vmem:[%s3686_s1 + $0x88] sm:$0xff] }
 0x784   :  { %v814_v17 = vmul.f32 %v806_v5, %v3010_v29 }
 0x785   :  { %v794_v6 = vadd.f32 %v789_v1, %v3006_v21  ;;  %v2732_v21 = vld [vmem:[%s3686_s1 + $0x78] sm:$0xff] }
 0x786   :  { %v818_v7 = vsub.f32 %v3192_v52, %v814_v17  ;;  %922 = vmatpush.bf16.msra.mxu0 %v2732_v21 }
 0x787   :  { %v3211_v8 = vadd.f32 %v2784_v45, %v794_v6 }
 0x788   :  { %v822_v10 = vmul.f32 %v818_v7, %v818_v7 }
 0x789   :  { %v810_v11 = vsel %vm59_vm1, %v3211_v8, 0.0 }
 0x78a   :  { %v828_v12 = vsel %vm59_vm1, %v822_v10, 0.0 }
 0x78b   :  { %829 = vadd.xlane.f32.xlu0 %v828_v12  ;;  %811 = vadd.xlane.f32.xlu2 %v810_v11 }
 0x7f5   :  { %v809_v15 = vpop.xlane.xlu1 %808 }
 0x7f6   :  { %v815_v16 = vmul.f32 %v809_v15, %v3010_v29  ;;  %v827_v18 = vpop.xlane.xlu2 %826 }
 0x7f7   :  { %v837_v19 = vmul.f32 %v827_v18, %v3010_v29  ;;  %v2785_v18 = vld [vmem:[%s3688_s2 + $0x29] ss:$0 sm:$0xff] }
 0x7f8   :  { %v3225_v20 = vsub.f32 %v3201_v28, %v815_v16 }
 0x7f9   :  { %v841_v22 = vadd.f32 1e-05, %v837_v19 }
 0x7fa   :  { %v823_v23 = vmul.f32 %v3225_v20, %v3225_v20 }
 0x7fb   :  { %2856 = vrsqrt.f32 %v841_v22  ;;  %vm851_vm2 = vweird.f32 %v841_v22 }
 0x7fc   :  { %v831_v24 = vsel %vm59_vm1, %v823_v23, 0.0 }
 0x7fd   :  { %832 = vadd.xlane.f32.xlu0 %v831_v24 }
 0x7fe   :  { %v830_v25 = vpop.xlane.xlu0 %829  ;;  %v812_v26 = vpop.xlane.xlu2 %811 }
 0x7ff   :  { %v838_v27 = vmul.f32 %v830_v25, %v3010_v29  ;;  %v816_v30 = vmul.f32 %v812_v26, %v3010_v29 }
 0x801   :  { %v2857_v31 = vpop.eup %2856  ;;  %v842_v33 = vadd.f32 1e-05, %v838_v27  ;;  %v3233_v34 = vsub.f32 %v3211_v8, %v816_v30 }
 0x802   :  { %v846_v35 = vmul.f32 %v2857_v31, %v841_v22  ;;  %vm852_vm15 = vweird.f32 %v2857_v31 }
 0x803   :  { %2858 = vrsqrt.f32 %v842_v33  ;;  %v824_v32 = vmul.f32 %v3233_v34, %v3233_v34  ;;  %vm853_vm4 = vmor %vm851_vm2, %vm852_vm15  ;;  %vm861_vm5 = vweird.f32 %v842_v33 }
 0x804   :  { %v847_v36 = vmul.f32 %v2857_v31, %v846_v35 }
 0x805   :  { %v834_v37 = vsel %vm59_vm1, %v824_v32, 0.0  ;;  %v2786_v32 = vld [vmem:[%s3688_s2 + $0x2a] ss:$0 sm:$0xff] }
 0x806   :  { %v848_v38 = vmul.f32 0.5, %v847_v36  ;;  %835 = vadd.xlane.f32.xlu1 %v834_v37 }
 0x808   :  { %v849_v60 = vsub.f32 1.5, %v848_v38 }
 0x809   :  { %v2859_v58 = vpop.eup %2858 }
 0x80a   :  { %v856_v39 = vmul.f32 %v2859_v58, %v842_v33  ;;  %v850_v3 = vmul.f32 %v2857_v31, %v849_v60  ;;  %vm862_vm3 = vweird.f32 %v2859_v58 }
 0x80b   :  { %vm863_vm6 = vmor %vm861_vm5, %vm862_vm3 }
 0x80c   :  { %v857_v2 = vmul.f32 %v2859_v58, %v856_v39  ;;  %v854_v41 = vsel %vm853_vm4, %v2857_v31, %v850_v3 }
 0x80d   :  { %v885_v46 = vmul.f32 %v854_v41, %v3199_v61  ;;  %v2735_v61 = vld [vmem:[%s3686_s1 + $0x90] sm:$0xff] }
 0x80e   :  { %v858_v4 = vmul.f32 0.5, %v857_v2  ;;  %987 = vmatpush.bf16.msra.mxu1 %v2735_v61  ;;  %v2740_v61 = vld [vmem:[%s3686_s1 + $0xb8] sm:$0xff] }
 0x810   :  { %v859_v40 = vsub.f32 1.5, %v858_v4 }
 0x812   :  { %v860_v44 = vmul.f32 %v2859_v58, %v859_v40  ;;  %988 = vmatpush.bf16.msra.mxu1 %v2734_v62 }
 0x814   :  { %v864_v45 = vsel %vm863_vm6, %v2859_v58, %v860_v44 }
 0x815   :  { %v886_v47 = vmul.f32 %v864_v45, %v818_v7 }
 0x817   :  { %v889_v48 = vpack.c.bf16 %v886_v47, %v885_v46 }
 0x819   :  { %2538 = vmatmul.msk.bf16.vlgmr.msra.gmra.mxu0 %vm59_vm1, %v889_v48 }
 0x870   :  { %v833_v49 = vpop.xlane.xlu0 %832 }
 0x871   :  { %v839_v50 = vmul.f32 %v833_v49, %v3010_v29 }
 0x873   :  { %v843_v51 = vadd.f32 1e-05, %v839_v50 }
 0x875   :  { %2860 = vrsqrt.f32 %v843_v51  ;;  %vm871_vm8 = vweird.f32 %v843_v51 }
 0x879   :  { %v836_v54 = vpop.xlane.xlu1 %835 }
 0x87a   :  { %v840_v9 = vmul.f32 %v836_v54, %v3010_v29 }
 0x87b   :  { %v2861_v56 = vpop.eup %2860 }
 0x87c   :  { %v866_v57 = vmul.f32 %v2861_v56, %v843_v51  ;;  %v844_v59 = vadd.f32 1e-05, %v840_v9  ;;  %vm872_vm7 = vweird.f32 %v2861_v56 }
 0x87d   :  { %vm873_vm10 = vmor %vm871_vm8, %vm872_vm7 }
 0x87e   :  { %v867_v13 = vmul.f32 %v2861_v56, %v866_v57  ;;  %2862 = vrsqrt.f32 %v844_v59  ;;  %vm881_vm11 = vweird.f32 %v844_v59  ;;  %v2741_v57 = vld [vmem:[%s3686_s1 + $0xc0] sm:$0xff] }
 0x87f   :  { %1165 = vmatpush.bf16.msrb.mxu3 %v2741_v57 }
 0x880   :  { %v868_v43 = vmul.f32 0.5, %v867_v13  ;;  %v2742_v13 = vld [vmem:[%s3686_s1 + $0xc8] sm:$0xff] }
 0x882   :  { %v869_v0 = vsub.f32 1.5, %v868_v43 }
 0x883   :  { %1166 = vmatpush.bf16.msrb.mxu3 %v2740_v61 }
 0x884   :  { %v2863_v63 = vpop.eup %2862  ;;  %v870_v17 = vmul.f32 %v2861_v56, %v869_v0 }
 0x885   :  { %v876_v1 = vmul.f32 %v2863_v63, %v844_v59  ;;  %vm882_vm9 = vweird.f32 %v2863_v63  ;;  %v2738_v59 = vld [vmem:[%s3686_s1 + $0xa8] sm:$0xff] }
 0x886   :  { %v874_v11 = vsel %vm873_vm10, %v2861_v56, %v870_v17  ;;  %vm883_vm12 = vmor %vm881_vm11, %vm882_vm9  ;;  %v2739_v56 = vld [vmem:[%s3686_s1 + $0xb0] sm:$0xff] }
 0x887   :  { %v877_v5 = vmul.f32 %v2863_v63, %v876_v1  ;;  %v887_v14 = vmul.f32 %v874_v11, %v3225_v20  ;;  %1124 = vmatpush.bf16.msra.mxu2 %v2739_v56 }
 0x889   :  { %v878_v6 = vmul.f32 0.5, %v877_v5 }
 0x88b   :  { %v879_v7 = vsub.f32 1.5, %v878_v6  ;;  %1125 = vmatpush.bf16.msra.mxu2 %v2738_v59 }
 0x88d   :  { %v880_v10 = vmul.f32 %v2863_v63, %v879_v7 }
 0x88f   :  { %v884_v12 = vsel %vm883_vm12, %v2863_v63, %v880_v10 }
 0x890   :  { %v888_v15 = vmul.f32 %v884_v12, %v3233_v34 }
 0x892   :  { %v890_v21 = vpack.c.bf16 %v888_v15, %v887_v14 }
 0x894   :  { %2539 = vmatmul.msk.bf16.gmra.mxu0 %vm59_vm1, %v890_v21 }
 0x896   :  { %v924_v16 = vpop.f32.mrf.mxu0 }
 0x897   :  { %v925_v19 = vadd.f32 %v2785_v18, %v924_v16 }
 0x899   :  { %v934_v24 = vmax.f32 %v925_v19, 0.0 }
 0x89e   :  { %v926_v22 = vpop.f32.mrf.mxu0 }
 0x89f   :  { %v927_v23 = vadd.f32 %v2785_v18, %v926_v22 }
 0x8a1   :  { %v935_v25 = vmax.f32 %v927_v23, 0.0 }
 0x8a3   :  { %v938_v26 = vpack.c.bf16 %v935_v25, %v934_v24 }
 0x8a5   :  { %2556 = vmatmul.msk.bf16.vlgmr.msra.gmra.mxu1 %vm974_vm13, %v938_v26 }
 0x911   :  { %v929_v20 = vpop.f32.mrf.mxu0 }
 0x912   :  { %v930_v27 = vadd.f32 %v2785_v18, %v929_v20 }
 0x914   :  { %v936_v33 = vmax.f32 %v930_v27, 0.0 }
 0x919   :  { %v931_v30 = vpop.f32.mrf.mxu0 }
 0x91a   :  { %v932_v31 = vadd.f32 %v2785_v18, %v931_v30 }
 0x91c   :  { %v937_v34 = vmax.f32 %v932_v31, 0.0 }
 0x91e   :  { %v939_v35 = vpack.c.bf16 %v937_v34, %v936_v33 }
 0x920   :  { %2557 = vmatmul.msk.bf16.gmra.mxu1 %vm974_vm13, %v939_v35 }
 0x922   :  { %v990_v36 = vpop.f32.mrf.mxu1 }
 0x923   :  { %v991_v37 = vadd.f32 %v2786_v32, %v990_v36 }
 0x925   :  { %v3266_v38 = vadd.f32 %v991_v37, %v3187_v42 }
 0x927   :  { %v1004_v58 = vsel %vm59_vm1, %v3266_v38, 0.0 }
 0x928   :  { %1005 = vadd.xlane.f32.xlu2 %v1004_v58 }
 0x92a   :  { %v992_v60 = vpop.f32.mrf.mxu1 }
 0x92b   :  { %v993_v39 = vadd.f32 %v2786_v32, %v992_v60 }
 0x92d   :  { %v3271_v2 = vadd.f32 %v993_v39, %v3192_v52 }
 0x92f   :  { %v1007_v3 = vsel %vm59_vm1, %v3271_v2, 0.0 }
 0x930   :  { %1008 = vadd.xlane.f32.xlu0 %v1007_v3 }
 0x99b   :  { %v1006_v4 = vpop.xlane.xlu2 %1005 }
 0x99c   :  { %v1016_v40 = vmul.f32 %v1006_v4, %v3010_v29 }
 0x99d   :  { %v995_v41 = vpop.f32.mrf.mxu1 }
 0x99e   :  { %v3277_v42 = vsub.f32 %v3266_v38, %v1016_v40  ;;  %v996_v44 = vadd.f32 %v2786_v32, %v995_v41 }
 0x9a0   :  { %v3280_v45 = vadd.f32 %v996_v44, %v3201_v28  ;;  %v1024_v46 = vmul.f32 %v3277_v42, %v3277_v42  ;;  %v2746_v44 = vld [vmem:[%s3686_s1 + $0xe8] sm:$0xff] }
 0x9a2   :  { %v1028_v52 = vsel %vm59_vm1, %v1024_v46, 0.0  ;;  %v1010_v47 = vsel %vm59_vm1, %v3280_v45, 0.0 }
 0x9a3   :  { %1029 = vadd.xlane.f32.xlu1 %v1028_v52  ;;  %v1009_v48 = vpop.xlane.xlu0 %1008  ;;  %1011 = vadd.xlane.f32.xlu0 %v1010_v47  ;;  %v2745_v52 = vld [vmem:[%s3686_s1 + $0xe0] sm:$0xff] }
 0x9a4   :  { %v1017_v49 = vmul.f32 %v1009_v48, %v3010_v29 }
 0x9a5   :  { %v997_v50 = vpop.f32.mrf.mxu1 }
 0x9a6   :  { %v1021_v51 = vsub.f32 %v3271_v2, %v1017_v49  ;;  %v998_v53 = vadd.f32 %v2786_v32, %v997_v50 }
 0x9a8   :  { %v3290_v28 = vadd.f32 %v998_v53, %v3211_v8  ;;  %v1025_v54 = vmul.f32 %v1021_v51, %v1021_v51  ;;  %v2743_v8 = vld [vmem:[%s3686_s1 + $0xd0] sm:$0xff] }
 0x9a9   :  { %1206 = vmatpush.bf16.msrb.mxu0 %v2743_v8 }
 0x9aa   :  { %v1031_v55 = vsel %vm59_vm1, %v1025_v54, 0.0  ;;  %v1013_v9 = vsel %vm59_vm1, %v3290_v28, 0.0 }
 0x9ab   :  { %1032 = vadd.xlane.f32.xlu2 %v1031_v55  ;;  %1014 = vadd.xlane.f32.xlu1 %v1013_v9 }
 0x9ad   :  { %1207 = vmatpush.bf16.msrb.mxu0 %v2742_v13 }
 0x9b1   :  { %1407 = vmatpush.bf16.msra.mxu0 %v2746_v44 }
 0x9b5   :  { %1408 = vmatpush.bf16.msra.mxu0 %v2745_v52 }
 0xa16   :  { %v1012_v43 = vpop.xlane.xlu0 %1011  ;;  %v1030_v62 = vpop.xlane.xlu1 %1029 }
 0xa17   :  { %v1018_v63 = vmul.f32 %v1012_v43, %v3010_v29  ;;  %v1040_v0 = vmul.f32 %v1030_v62, %v3010_v29 }
 0xa19   :  { %v3316_v1 = vsub.f32 %v3280_v45, %v1018_v63  ;;  %v1044_v5 = vadd.f32 1e-05, %v1040_v0  ;;  %v2789_v63 = vld [vmem:[%s3688_s2 + $0x2c] ss:$0 sm:$0xff]  ;;  %v2787_v0 = vld [vmem:[%s3688_s2 + $0x2d] ss:$0 sm:$0xff] }
 0xa1b   :  { %2864 = vrsqrt.f32 %v1044_v5  ;;  %v1026_v17 = vmul.f32 %v3316_v1, %v3316_v1  ;;  %vm1054_vm15 = vweird.f32 %v1044_v5 }
 0xa1d   :  { %v1034_v6 = vsel %vm59_vm1, %v1026_v17, 0.0 }
 0xa1e   :  { %v1033_v7 = vpop.xlane.xlu2 %1032  ;;  %1035 = vadd.xlane.f32.xlu2 %v1034_v6  ;;  %v1015_v10 = vpop.xlane.xlu1 %1014 }
 0xa1f   :  { %v1041_v11 = vmul.f32 %v1033_v7, %v3010_v29  ;;  %v1019_v12 = vmul.f32 %v1015_v10, %v3010_v29 }
 0xa21   :  { %v2865_v14 = vpop.eup %2864  ;;  %v1045_v15 = vadd.f32 1e-05, %v1041_v11  ;;  %v3324_v21 = vsub.f32 %v3290_v28, %v1019_v12  ;;  %v2788_v11 = vld [vmem:[%s3688_s2 + $0x2b] ss:$0 sm:$0xff] }
 0xa22   :  { %v1049_v16 = vmul.f32 %v2865_v14, %v1044_v5  ;;  %vm1055_vm14 = vweird.f32 %v2865_v14 }
 0xa23   :  { %2866 = vrsqrt.f32 %v1045_v15  ;;  %v1027_v18 = vmul.f32 %v3324_v21, %v3324_v21  ;;  %vm1056_vm3 = vmor %vm1054_vm15, %vm1055_vm14  ;;  %vm1064_vm4 = vweird.f32 %v1045_v15 }
 0xa24   :  { %v1050_v19 = vmul.f32 %v2865_v14, %v1049_v16 }
 0xa25   :  { %v1037_v22 = vsel %vm59_vm1, %v1027_v18, 0.0 }
 0xa26   :  { %v1051_v23 = vmul.f32 0.5, %v1050_v19  ;;  %1038 = vadd.xlane.f32.xlu0 %v1037_v22 }
 0xa28   :  { %v1052_v25 = vsub.f32 1.5, %v1051_v23 }
 0xa29   :  { %v2867_v24 = vpop.eup %2866 }
 0xa2a   :  { %v1059_v26 = vmul.f32 %v2867_v24, %v1045_v15  ;;  %v1053_v27 = vmul.f32 %v2865_v14, %v1052_v25  ;;  %vm1065_vm2 = vweird.f32 %v2867_v24 }
 0xa2b   :  { %vm1066_vm5 = vmor %vm1064_vm4, %vm1065_vm2 }
 0xa2c   :  { %v1060_v20 = vmul.f32 %v2867_v24, %v1059_v26  ;;  %v1057_v33 = vsel %vm1056_vm3, %v2865_v14, %v1053_v27 }
 0xa2d   :  { %v1088_v32 = vmul.f32 %v1057_v33, %v3277_v42 }
 0xa2e   :  { %v1061_v30 = vmul.f32 0.5, %v1060_v20 }
 0xa30   :  { %v1062_v31 = vsub.f32 1.5, %v1061_v30 }
 0xa32   :  { %v1063_v34 = vmul.f32 %v2867_v24, %v1062_v31 }
 0xa34   :  { %v1067_v35 = vsel %vm1066_vm5, %v2867_v24, %v1063_v34 }
 0xa35   :  { %v1089_v36 = vmul.f32 %v1067_v35, %v1021_v51 }
 0xa37   :  { %v3330_v37 = vpack.c.bf16 %v1089_v36, %v1088_v32 }
 0xa39   :  { %2566 = vmatmul.msk.bf16.vlgmr.msra.gmra.mxu2 %vm59_vm1, %v3330_v37  ;;  %2576 = vmatmul.msk.bf16.vlgmr.msrb.gmra.mxu3 %vm59_vm1, %v3330_v37 }
 0xa3a   :  { %2586 = vmatmul.msk.bf16.vlgmr.msrb.gmra.mxu0 %vm59_vm1, %v3330_v37 }
 0xa91   :  { %v1036_v58 = vpop.xlane.xlu2 %1035 }
 0xa92   :  { %v1042_v60 = vmul.f32 %v1036_v58, %v3010_v29 }
 0xa94   :  { %v1046_v39 = vadd.f32 1e-05, %v1042_v60 }
 0xa96   :  { %2868 = vrsqrt.f32 %v1046_v39  ;;  %vm1074_vm7 = vweird.f32 %v1046_v39 }
 0xa99   :  { %v1039_v3 = vpop.xlane.xlu0 %1038 }
 0xa9a   :  { %v1043_v4 = vmul.f32 %v1039_v3, %v3010_v29 }
 0xa9c   :  { %v2869_v40 = vpop.eup %2868  ;;  %v1047_v41 = vadd.f32 1e-05, %v1043_v4 }
 0xa9d   :  { %v1069_v42 = vmul.f32 %v2869_v40, %v1046_v39  ;;  %vm1075_vm6 = vweird.f32 %v2869_v40 }
 0xa9e   :  { %2870 = vrsqrt.f32 %v1047_v41  ;;  %vm1076_vm9 = vmor %vm1074_vm7, %vm1075_vm6  ;;  %vm1084_vm10 = vweird.f32 %v1047_v41 }
 0xa9f   :  { %v1070_v46 = vmul.f32 %v2869_v40, %v1069_v42 }
 0xaa1   :  { %v1071_v47 = vmul.f32 0.5, %v1070_v46 }
 0xaa3   :  { %v1072_v49 = vsub.f32 1.5, %v1071_v47 }
 0xaa4   :  { %v2871_v48 = vpop.eup %2870 }
 0xaa5   :  { %v1079_v50 = vmul.f32 %v2871_v48, %v1047_v41  ;;  %v1073_v53 = vmul.f32 %v2869_v40, %v1072_v49  ;;  %vm1085_vm8 = vweird.f32 %v2871_v48 }
 0xaa6   :  { %vm1086_vm11 = vmor %vm1084_vm10, %vm1085_vm8 }
 0xaa7   :  { %v1080_v51 = vmul.f32 %v2871_v48, %v1079_v50  ;;  %v1077_v9 = vsel %vm1076_vm9, %v2869_v40, %v1073_v53 }
 0xaa8   :  { %v1090_v8 = vmul.f32 %v1077_v9, %v3316_v1 }
 0xaa9   :  { %v1081_v54 = vmul.f32 0.5, %v1080_v51 }
 0xaab   :  { %v1082_v55 = vsub.f32 1.5, %v1081_v54 }
 0xaad   :  { %v1083_v56 = vmul.f32 %v2871_v48, %v1082_v55 }
 0xaaf   :  { %v1087_v57 = vsel %vm1086_vm11, %v2871_v48, %v1083_v56 }
 0xab0   :  { %v1091_v59 = vmul.f32 %v1087_v57, %v3324_v21  ;;  %v2750_v57 = vld [vmem:[%s3686_s1 + $0x108] sm:$0xff] }
 0xab2   :  { %v3348_v61 = vpack.c.bf16 %v1091_v59, %v1090_v8 }
 0xab4   :  { %2567 = vmatmul.msk.bf16.gmra.mxu2 %vm59_vm1, %v3348_v61  ;;  %2577 = vmatmul.msk.bf16.gmra.mxu3 %vm59_vm1, %v3348_v61 }
 0xab5   :  { %2587 = vmatmul.msk.bf16.gmra.mxu0 %vm59_vm1, %v3348_v61 }
 0xab7   :  { %v1209_v13 = vpop.f32.mrf.mxu0 }
 0xab8   :  { %v1210_v6 = vadd.f32 %v2787_v0, %v1209_v13 }
 0xaba   :  { %v1219_v21 = vpack.c.bf16 %v1210_v6, %v1210_v6 }
 0xabc   :  { %v1127_v43 = vpop.f32.mrf.mxu2  ;;  %v1168_v62 = vpop.f32.mrf.mxu3  ;;  %v1280_v25 = vunpack.c.l.b16 %v1219_v21 }
 0xabd   :  { %v1169_v5 = vadd.f32 %v2789_v63, %v1168_v62  ;;  %v1128_v19 = vadd.f32 %v2788_v11, %v1127_v43  ;;  %v2749_v43 = vld [vmem:[%s3686_s1 + $0x100] sm:$0xff] }
 0xabf   :  { %v1211_v1 = vpop.f32.mrf.mxu0  ;;  %v1178_v12 = vpack.c.bf16 %v1169_v5, %v1169_v5  ;;  %v1137_v27 = vpack.c.bf16 %v1128_v19, %v1128_v19 }
 0xac0   :  { %v1212_v17 = vadd.f32 %v2787_v0, %v1211_v1 }
 0xac1   :  { %v1230_v22 = vunpack.c.l.b16 %v1178_v12  ;;  %v1225_v34 = vunpack.c.l.b16 %v1137_v27 }
 0xac2   :  { %v1220_v14 = vpack.c.bf16 %v1212_v17, %v1212_v17 }
 0xac4   :  { %v1129_v7 = vpop.f32.mrf.mxu2  ;;  %v1170_v10 = vpop.f32.mrf.mxu3  ;;  %v1281_v23 = vunpack.c.l.b16 %v1220_v14 }
 0xac5   :  { %v1171_v15 = vadd.f32 %v2789_v63, %v1170_v10  ;;  %2600 = vmatmul.msk.bf16.vlgmr.msra.gmra.mxu0 %vm59_vm1, %v3330_v37  ;;  %v1130_v16 = vadd.f32 %v2788_v11, %v1129_v7 }
 0xac6   :  { %v1282_v30 = vpack.c.b16 %v1281_v23, %v1280_v25 }
 0xac7   :  { %v1179_v18 = vpack.c.bf16 %v1171_v15, %v1171_v15  ;;  %v1138_v26 = vpack.c.bf16 %v1130_v16, %v1130_v16 }
 0xac9   :  { %v1231_v24 = vunpack.c.l.b16 %v1179_v18  ;;  %v1226_v33 = vunpack.c.l.b16 %v1138_v26 }
 0xacb   :  { %v1232_v20 = vpack.c.b16 %v1231_v24, %v1230_v22  ;;  %v1227_v35 = vpack.c.b16 %v1226_v33, %v1225_v34 }
 0xacd   :  { %v1237_v31 = vsel %vm33_vm0, %v1232_v20, 0 }
 0xace   :  { %1246 = vmatpush.bf16.xpose.msrb.mxu1 %v1237_v31 }
 0xad5   :  { %2601 = vmatmul.msk.bf16.gmra.mxu0 %vm59_vm1, %v3348_v61  ;;  %2588 = vmatmul.msk.bf16.vlgmr.msrb.gmra.mxu1 %vm33_vm0, %v1227_v35 }
 0xad6   :  { %1294 = vmatpush.bf16.msra.mxu1 %v1282_v30  ;;  %v2791_v30 = vld [vmem:[%s3688_s2 + $0x30] ss:$0 sm:$0xff] }
 0xb32   :  { %v1214_v32 = vpop.f32.mrf.mxu0 }
 0xb33   :  { %v1215_v36 = vadd.f32 %v2787_v0, %v1214_v32 }
 0xb35   :  { %v1221_v3 = vpack.c.bf16 %v1215_v36, %v1215_v36 }
 0xb37   :  { %v1132_v58 = vpop.f32.mrf.mxu2  ;;  %v1173_v60 = vpop.f32.mrf.mxu3  ;;  %v1358_v42 = vunpack.c.l.b16 %v1221_v3  ;;  %v2748_v3 = vld [vmem:[%s3686_s1 + $0xf8] sm:$0xff] }
 0xb38   :  { %v1174_v40 = vadd.f32 %v2789_v63, %v1173_v60  ;;  %v1133_v53 = vadd.f32 %v2788_v11, %v1132_v58  ;;  %1448 = vmatpush.bf16.msrb.mxu1 %v2748_v3 }
 0xb3a   :  { %v1216_v39 = vpop.f32.mrf.mxu0  ;;  %v1180_v47 = vpack.c.bf16 %v1174_v40, %v1174_v40  ;;  %v1139_v8 = vpack.c.bf16 %v1133_v53, %v1133_v53 }
 0xb3b   :  { %v1217_v4 = vadd.f32 %v2787_v0, %v1216_v39 }
 0xb3c   :  { %v1308_v54 = vunpack.c.l.b16 %v1180_v47  ;;  %v1303_v62 = vunpack.c.l.b16 %v1139_v8 }
 0xb3d   :  { %v1222_v41 = vpack.c.bf16 %v1217_v4, %v1217_v4  ;;  %v2747_v4 = vld [vmem:[%s3686_s1 + $0xf0] sm:$0xff] }
 0xb3e   :  { %1449 = vmatpush.bf16.msrb.mxu1 %v2747_v4 }
 0xb3f   :  { %v1359_v44 = vunpack.c.l.b16 %v1222_v41  ;;  %v1134_v46 = vpop.f32.mrf.mxu2  ;;  %v1175_v52 = vpop.f32.mrf.mxu3 }
 0xb40   :  { %v1176_v48 = vadd.f32 %v2789_v63, %v1175_v52  ;;  %v1135_v50 = vadd.f32 %v2788_v11, %v1134_v46 }
 0xb41   :  { %v1360_v49 = vpack.c.b16 %v1359_v44, %v1358_v42 }
 0xb42   :  { %v1181_v51 = vpack.c.bf16 %v1176_v48, %v1176_v48  ;;  %v1140_v9 = vpack.c.bf16 %v1135_v50, %v1135_v50 }
 0xb43   :  { %1372 = vmatpush.bf16.msra.mxu3 %v1360_v49 }
 0xb44   :  { %v1309_v55 = vunpack.c.l.b16 %v1181_v51  ;;  %v1304_v13 = vunpack.c.l.b16 %v1140_v9 }
 0xb46   :  { %v1310_v56 = vpack.c.b16 %v1309_v55, %v1308_v54  ;;  %v1305_v63 = vpack.c.b16 %v1304_v13, %v1303_v62 }
 0xb48   :  { %v1315_v59 = vsel %vm33_vm0, %v1310_v56, 0 }
 0xb49   :  { %1324 = vmatpush.bf16.xpose.msrb.mxu2 %v1315_v59 }
 0xb50   :  { %2590 = vmatmul.msk.bf16.vlgmr.msrb.gmra.mxu2 %vm33_vm0, %v1305_v63 }
 0xb51   :  { %1489 = vmatpush.bf16.msra.mxu2 %v2750_v57 }
 0xb52   :  { %v1248_v0 = vpop.f32.mrf.mxu1 }
 0xb53   :  { %v1253_v1 = vmul.f32 0.25, %v1248_v0 }
 0xb55   :  { %1490 = vmatpush.bf16.msra.mxu2 %v2749_v43  ;;  %v1255_v5 = vsel %vm33_vm0, %v1253_v1, -inf }
 0xb56   :  { %1256 = vmax.xlane.f32.xlu1 %v1255_v5 }
 0xb5a   :  { %v1250_v17 = vpop.f32.mrf.mxu1 }
 0xb5b   :  { %v1254_v6 = vmul.f32 0.25, %v1250_v17 }
 0xb5d   :  { %v1258_v7 = vsel %vm33_vm0, %v1254_v6, -inf }
 0xb5e   :  { %1259 = vmax.xlane.f32.xlu2 %v1258_v7 }
 0xb60   :  { %2620 = vmatmul.msk.bf16.vlgmr.msra.gmra.mxu2 %vm59_vm1, %v3330_v37 }
 0xb70   :  { %2621 = vmatmul.msk.bf16.gmra.mxu2 %vm59_vm1, %v3348_v61 }
 0xbc9   :  { %v1257_v10 = vpop.xlane.xlu1 %1256 }
 0xbca   :  { %v1261_v11 = vsub.f32 %v1253_v1, %v1257_v10 }
 0xbcc   :  { %v1263_v12 = vmul.f32 1.442695, %v1261_v11 }
 0xbce   :  { %2872 = vpow2.f32 %v1263_v12 }
 0xbd1   :  { %v1260_v14 = vpop.xlane.xlu2 %1259 }
 0xbd2   :  { %v1262_v15 = vsub.f32 %v1254_v6, %v1260_v14 }
 0xbd3   :  { %v1326_v21 = vpop.f32.mrf.mxu2 }
 0xbd4   :  { %v2873_v16 = vpop.eup %2872  ;;  %v1265_v18 = vmul.f32 1.442695, %v1262_v15  ;;  %v1331_v19 = vmul.f32 0.25, %v1326_v21 }
 0xbd5   :  { %v1267_v22 = vsel %vm33_vm0, %v2873_v16, 0.0 }
 0xbd6   :  { %2874 = vpow2.f32 %v1265_v18  ;;  %1268 = vadd.xlane.f32.xlu0 %v1267_v22  ;;  %v1333_v23 = vsel %vm33_vm0, %v1331_v19, -inf  ;;  %v2792_v18 = vld [vmem:[%s3688_s2 + $0x2f] ss:$0 sm:$0xff] }
 0xbd7   :  { %1334 = vmax.xlane.f32.xlu2 %v1333_v23 }
 0xbdb   :  { %v1328_v24 = vpop.f32.mrf.mxu2 }
 0xbdc   :  { %v2875_v25 = vpop.eup %2874  ;;  %v1332_v26 = vmul.f32 0.25, %v1328_v24  ;;  %v2790_v24 = vld [vmem:[%s3688_s2 + $0x2e] ss:$0 sm:$0xff] }
 0xbdd   :  { %v1270_v20 = vsel %vm33_vm0, %v2875_v25, 0.0 }
 0xbde   :  { %1271 = vadd.xlane.f32.xlu1 %v1270_v20  ;;  %v1336_v27 = vsel %vm33_vm0, %v1332_v26, -inf }
 0xbdf   :  { %1337 = vmax.xlane.f32.xlu0 %v1336_v27 }
 0xbe3   :  { %v1492_v31 = vpop.f32.mrf.mxu2 }
 0xbe4   :  { %v1493_v33 = vadd.f32 %v2791_v30, %v1492_v31 }
 0xbe6   :  { %v1502_v35 = vpack.c.bf16 %v1493_v33, %v1493_v33 }
 0xbe8   :  { %v3392_v58 = vunpack.c.l.b16 %v1502_v35 }
 0xbeb   :  { %v1494_v34 = vpop.f32.mrf.mxu2 }
 0xbec   :  { %v1495_v32 = vadd.f32 %v2791_v30, %v1494_v34 }
 0xbee   :  { %v1503_v36 = vpack.c.bf16 %v1495_v32, %v1495_v32 }
 0xbf0   :  { %v3394_v60 = vunpack.c.l.b16 %v1503_v36 }
 0xbf2   :  { %v1565_v39 = vpack.c.b16 %v3394_v60, %v3392_v58 }
 0xbf3   :  { %v1497_v40 = vpop.f32.mrf.mxu2 }
 0xbf4   :  { %v1498_v49 = vadd.f32 %v2791_v30, %v1497_v40 }
 0xbf6   :  { %v1504_v56 = vpack.c.bf16 %v1498_v49, %v1498_v49 }
 0xbf8   :  { %v1641_v62 = vunpack.c.l.b16 %v1504_v56 }
 0xbfb   :  { %v1499_v46 = vpop.f32.mrf.mxu2 }
 0xbfc   :  { %v1500_v47 = vadd.f32 %v2791_v30, %v1499_v46 }
 0xbfe   :  { %v1505_v53 = vpack.c.bf16 %v1500_v47, %v1500_v47 }
 0xc00   :  { %v1642_v59 = vunpack.c.l.b16 %v1505_v53 }
 0xc02   :  { %v1643_v0 = vpack.c.b16 %v1642_v59, %v1641_v62 }
 0xc49   :  { %v1269_v41 = vpop.xlane.xlu0 %1268 }
 0xc4a   :  { %v1335_v42 = vpop.xlane.xlu2 %1334 }
 0xc4b   :  { %v1339_v44 = vsub.f32 %v1331_v19, %v1335_v42 }
 0xc4d   :  { %v1341_v52 = vmul.f32 1.442695, %v1339_v44 }
 0xc4f   :  { %2876 = vpow2.f32 %v1341_v52 }
 0xc50   :  { %2878 = vrcp.f32 %v1269_v41 }
 0xc51   :  { %v1272_v48 = vpop.xlane.xlu1 %1271 }
 0xc52   :  { %2880 = vrcp.f32 %v1272_v48  ;;  %v1338_v50 = vpop.xlane.xlu0 %1337 }
 0xc53   :  { %v1340_v51 = vsub.f32 %v1332_v26, %v1338_v50 }
 0xc55   :  { %v2877_v54 = vpop.eup %2876  ;;  %v1343_v55 = vmul.f32 1.442695, %v1340_v51 }
 0xc56   :  { %v2879_v9 = vpop.eup %2878  ;;  %v1345_v57 = vsel %vm33_vm0, %v2877_v54, 0.0 }
 0xc57   :  { %2882 = vpow2.f32 %v1343_v55  ;;  %1346 = vadd.xlane.f32.xlu1 %v1345_v57  ;;  %v1275_v13 = vmul.f32 %v2879_v9, %v2873_v16  ;;  %v1410_v16 = vpop.f32.mrf.mxu0 }
 0xc58   :  { %v2881_v8 = vpop.eup %2880  ;;  %v1411_v30 = vadd.f32 %v2790_v24, %v1410_v16 }
 0xc59   :  { %v1276_v43 = vmul.f32 %v2881_v8, %v2875_v25 }
 0xc5a   :  { %v1420_v3 = vpack.c.bf16 %v1411_v30, %v1411_v30 }
 0xc5b   :  { %v1277_v63 = vpack.c.bf16 %v1276_v43, %v1275_v13 }
 0xc5c   :  { %v1508_v41 = vunpack.c.l.b16 %v1420_v3 }
 0xc5d   :  { %v2883_v1 = vpop.eup %2882  ;;  %2589 = vmatmul.msk.bf16.vlgmr.msra.gmra.mxu1 %vm33_vm0, %v1277_v63 }
 0xc5e   :  { %1655 = vmatpush.bf16.msra.mxu1 %v1643_v0  ;;  %v1348_v5 = vsel %vm33_vm0, %v2883_v1, 0.0 }
 0xc5f   :  { %1349 = vadd.xlane.f32.xlu2 %v1348_v5  ;;  %v1412_v19 = vpop.f32.mrf.mxu0 }
 0xc60   :  { %v1413_v20 = vadd.f32 %v2790_v24, %v1412_v19 }
 0xc62   :  { %v1421_v35 = vpack.c.bf16 %v1413_v20, %v1413_v20 }
 0xc64   :  { %v1509_v40 = vunpack.c.l.b16 %v1421_v35 }
 0xc66   :  { %v1510_v44 = vpack.c.b16 %v1509_v40, %v1508_v41 }
 0xc67   :  { %v1415_v34 = vpop.f32.mrf.mxu0 }
 0xc68   :  { %v1416_v51 = vadd.f32 %v2790_v24, %v1415_v34 }
 0xc6a   :  { %v1422_v56 = vpack.c.bf16 %v1416_v51, %v1416_v51 }
 0xc6d   :  { %2610 = vmatmul.msk.bf16.vlgmr.msrb.gmra.mxu1 %vm59_vm1, %v3330_v37 }
 0xc6f   :  { %v1417_v46 = vpop.f32.mrf.mxu0 }
 0xc70   :  { %v1418_v49 = vadd.f32 %v2790_v24, %v1417_v46 }
 0xc72   :  { %v1423_v55 = vpack.c.bf16 %v1418_v49, %v1418_v49 }
 0xc74   :  { %v1587_v60 = vunpack.c.l.b16 %v1423_v55 }
 0xc7d   :  { %2611 = vmatmul.msk.bf16.gmra.mxu1 %vm59_vm1, %v3348_v61 }
 0xcca   :  { %v1347_v17 = vpop.xlane.xlu1 %1346 }
 0xccb   :  { %2884 = vrcp.f32 %v1347_v17 }
 0xcd1   :  { %v2885_v7 = vpop.eup %2884 }
 0xcd2   :  { %v1350_v6 = vpop.xlane.xlu2 %1349  ;;  %v1353_v11 = vmul.f32 %v2885_v7, %v2877_v54 }
 0xcd3   :  { %2886 = vrcp.f32 %v1350_v6 }
 0xcd9   :  { %v2887_v10 = vpop.eup %2886 }
 0xcda   :  { %v1354_v12 = vmul.f32 %v2887_v10, %v2883_v1  ;;  %v3411_v14 = vpop.f32.mrf.mxu1 }
 0xcdc   :  { %v1355_v15 = vpack.c.bf16 %v1354_v12, %v1353_v11 }
 0xcde   :  { %2591 = vmatmul.msk.bf16.vlgmr.msra.gmra.mxu3 %vm33_vm0, %v1355_v15 }
 0xce2   :  { %v3414_v21 = vpop.f32.mrf.mxu1 }
 0xce3   :  { %v1379_v37 = vpack.c.bf16 %v3414_v21, %v3411_v14 }
 0xcea   :  { %v1451_v61 = vpop.f32.mrf.mxu1 }
 0xceb   :  { %v1452_v22 = vadd.f32 %v2792_v18, %v1451_v61 }
 0xced   :  { %v1461_v25 = vpack.c.bf16 %v1452_v22, %v1452_v22 }
 0xcef   :  { %v1513_v31 = vunpack.c.l.b16 %v1461_v25 }
 0xcf2   :  { %v1453_v23 = vpop.f32.mrf.mxu1 }
 0xcf3   :  { %v1454_v26 = vadd.f32 %v2792_v18, %v1453_v23 }
 0xcf5   :  { %v1462_v27 = vpack.c.bf16 %v1454_v26, %v1454_v26 }
 0xcf7   :  { %v1514_v33 = vunpack.c.l.b16 %v1462_v27 }
 0xcf9   :  { %v1515_v32 = vpack.c.b16 %v1514_v33, %v1513_v31 }
 0xcfa   :  { %v1456_v36 = vpop.f32.mrf.mxu1 }
 0xcfb   :  { %v1520_v4 = vsel %vm33_vm0, %v1515_v32, 0  ;;  %v1457_v42 = vadd.f32 %v2792_v18, %v1456_v36 }
 0xcfc   :  { %1529 = vmatpush.bf16.xpose.msrb.mxu3 %v1520_v4  ;;  %v2744_v4 = vld [vmem:[%s3686_s1 + $0xd8] sm:$0xff] }
 0xcfd   :  { %v1463_v47 = vpack.c.bf16 %v1457_v42, %v1457_v42 }
 0xcff   :  { %v1591_v53 = vunpack.c.l.b16 %v1463_v47 }
 0xd02   :  { %v1458_v52 = vpop.f32.mrf.mxu1 }
 0xd03   :  { %v1459_v48 = vadd.f32 %v2792_v18, %v1458_v52  ;;  %2622 = vmatmul.msk.bf16.vlgmr.msrb.gmra.mxu3 %vm33_vm0, %v1510_v44 }
 0xd04   :  { %1577 = vmatpush.bf16.msra.mxu3 %v1565_v39  ;;  %v1586_v39 = vunpack.c.l.b16 %v1422_v56 }
 0xd05   :  { %v1464_v50 = vpack.c.bf16 %v1459_v48, %v1459_v48 }
 0xd06   :  { %v1588_v57 = vpack.c.b16 %v1587_v60, %v1586_v39 }
 0xd07   :  { %v1592_v54 = vunpack.c.l.b16 %v1464_v50 }
 0xd08   :  { %1716 = vmatpush.bf16.msrb.mxu3 %v2744_v4 }
 0xd09   :  { %v1593_v9 = vpack.c.b16 %v1592_v54, %v1591_v53 }
 0xd0b   :  { %v1598_v58 = vsel %vm33_vm0, %v1593_v9, 0  ;;  %v2751_v9 = vld [vmem:[%s3686_s1 + $0x110] sm:$0xff] }
 0xd0c   :  { %1607 = vmatpush.bf16.xpose.msrb.mxu0 %v1598_v58  ;;  %1685 = vmatpush.bf16.msrb.mxu2 %v2751_v9 }
 0xd13   :  { %2624 = vmatmul.msk.bf16.vlgmr.msrb.gmra.mxu0 %vm33_vm0, %v1588_v57 }
 0xd61   :  { %v3431_v8 = vpop.f32.mrf.mxu3 }
 0xd69   :  { %v3433_v59 = vpop.f32.mrf.mxu3 }
 0xd6a   :  { %v1380_v13 = vpack.c.bf16 %v3433_v59, %v3431_v8  ;;  %v2793_v59 = vld [vmem:[%s3688_s2 + $0x31] ss:$0 sm:$0xff] }
 0xd86   :  { %v1531_v43 = vpop.f32.mrf.mxu3 }
 0xd87   :  { %v1536_v62 = vmul.f32 0.25, %v1531_v43 }
 0xd89   :  { %v1538_v63 = vsel %vm33_vm0, %v1536_v62, -inf }
 0xd8a   :  { %1539 = vmax.xlane.f32.xlu0 %v1538_v63 }
 0xd8e   :  { %v1533_v0 = vpop.f32.mrf.mxu3 }
 0xd8f   :  { %v1537_v1 = vmul.f32 0.25, %v1533_v0 }
 0xd90   :  { %v1609_v5 = vpop.f32.mrf.mxu0 }
 0xd91   :  { %v1614_v17 = vmul.f32 0.25, %v1609_v5  ;;  %v1541_v6 = vsel %vm33_vm0, %v1537_v1, -inf }
 0xd92   :  { %1542 = vmax.xlane.f32.xlu1 %v1541_v6 }
 0xd93   :  { %v1616_v7 = vsel %vm33_vm0, %v1614_v17, -inf }
 0xd94   :  { %1617 = vmax.xlane.f32.xlu2 %v1616_v7 }
 0xd98   :  { %v1611_v10 = vpop.f32.mrf.mxu0 }
 0xd99   :  { %v1615_v11 = vmul.f32 0.25, %v1611_v10 }
 0xd9b   :  { %v1619_v12 = vsel %vm33_vm0, %v1615_v11, -inf }
 0xd9c   :  { %1620 = vmax.xlane.f32.xlu0 %v1619_v12 }
 0xdfd   :  { %v1540_v15 = vpop.xlane.xlu0 %1539 }
 0xdfe   :  { %v1544_v16 = vsub.f32 %v1536_v62, %v1540_v15 }
 0xe00   :  { %v1546_v61 = vmul.f32 1.442695, %v1544_v16 }
 0xe02   :  { %2888 = vpow2.f32 %v1546_v61 }
 0xe05   :  { %v1543_v18 = vpop.xlane.xlu1 %1542 }
 0xe06   :  { %v1545_v19 = vsub.f32 %v1537_v1, %v1543_v18 }
 0xe07   :  { %v1618_v22 = vpop.xlane.xlu2 %1617 }
 0xe08   :  { %v2889_v23 = vpop.eup %2888  ;;  %v1548_v24 = vmul.f32 1.442695, %v1545_v19  ;;  %v1622_v25 = vsub.f32 %v1614_v17, %v1618_v22 }
 0xe09   :  { %v1550_v26 = vsel %vm33_vm0, %v2889_v23, 0.0 }
 0xe0a   :  { %2890 = vpow2.f32 %v1548_v24  ;;  %v1624_v20 = vmul.f32 1.442695, %v1622_v25  ;;  %1551 = vadd.xlane.f32.xlu1 %v1550_v26 }
 0xe0c   :  { %2892 = vpow2.f32 %v1624_v20 }
 0xe0f   :  { %v1621_v27 = vpop.xlane.xlu0 %1620 }
 0xe10   :  { %v2891_v30 = vpop.eup %2890  ;;  %v1623_v31 = vsub.f32 %v1615_v11, %v1621_v27 }
 0xe11   :  { %v1553_v33 = vsel %vm33_vm0, %v2891_v30, 0.0 }
 0xe12   :  { %v2893_v34 = vpop.eup %2892  ;;  %v1626_v35 = vmul.f32 1.442695, %v1623_v31  ;;  %1554 = vadd.xlane.f32.xlu2 %v1553_v33 }
 0xe13   :  { %v1628_v32 = vsel %vm33_vm0, %v2893_v34, 0.0 }
 0xe14   :  { %2894 = vpow2.f32 %v1626_v35  ;;  %1629 = vadd.xlane.f32.xlu0 %v1628_v32 }
 0xe1a   :  { %v2895_v36 = vpop.eup %2894 }
 0xe1b   :  { %v1631_v3 = vsel %vm33_vm0, %v2895_v36, 0.0 }
 0xe1c   :  { %1632 = vadd.xlane.f32.xlu1 %v1631_v3 }
 0xe7d   :  { %v1552_v40 = vpop.xlane.xlu1 %1551 }
 0xe7e   :  { %2896 = vrcp.f32 %v1552_v40 }
 0xe84   :  { %v2897_v42 = vpop.eup %2896 }
 0xe85   :  { %v1555_v41 = vpop.xlane.xlu2 %1554  ;;  %v1558_v52 = vmul.f32 %v2897_v42, %v2889_v23 }
 0xe86   :  { %2898 = vrcp.f32 %v1555_v41 }
 0xe87   :  { %v1630_v44 = vpop.xlane.xlu0 %1629 }
 0xe88   :  { %2900 = vrcp.f32 %v1630_v44  ;;  %v2753_v44 = vld [vmem:[%s3686_s1 + $0x120] sm:$0xff] }
 0xe89   :  { %1858 = vmatpush.bf16.msra.mxu0 %v2753_v44 }
 0xe8c   :  { %v2899_v46 = vpop.eup %2898 }
 0xe8d   :  { %v1559_v47 = vmul.f32 %v2899_v46, %v2891_v30  ;;  %v2752_v46 = vld [vmem:[%s3686_s1 + $0x118] sm:$0xff] }
 0xe8e   :  { %v2901_v50 = vpop.eup %2900  ;;  %1859 = vmatpush.bf16.msra.mxu0 %v2752_v46 }
 0xe8f   :  { %v1560_v48 = vpack.c.bf16 %v1559_v47, %v1558_v52  ;;  %v1633_v49 = vpop.xlane.xlu1 %1632  ;;  %v1636_v53 = vmul.f32 %v2901_v50, %v2893_v34 }
 0xe90   :  { %2902 = vrcp.f32 %v1633_v49 }
 0xe91   :  { %2623 = vmatmul.msk.bf16.vlgmr.msra.gmra.mxu3 %vm33_vm0, %v1560_v48 }
 0xe96   :  { %v2903_v51 = vpop.eup %2902 }
 0xe97   :  { %v1637_v54 = vmul.f32 %v2903_v51, %v2895_v36 }
 0xe99   :  { %v1638_v55 = vpack.c.bf16 %v1637_v54, %v1636_v53 }
 0xe9b   :  { %2625 = vmatmul.msk.bf16.vlgmr.msra.gmra.mxu1 %vm33_vm0, %v1638_v55 }
 0xea1   :  { %2636 = vmatmul.msk.bf16.vlgmr.msrb.gmra.mxu3 %vm33_vm0, %v1379_v37 }
 0xeb1   :  { %2637 = vmatmul.msk.bf16.gmra.mxu3 %vm33_vm0, %v1380_v13 }
 0xf14   :  { %v1579_v56 = vpop.f32.mrf.mxu3 }
 0xf18   :  { %v1657_v39 = vpop.f32.mrf.mxu1 }
 0xf1c   :  { %v1581_v58 = vpop.f32.mrf.mxu3 }
 0xf1d   :  { %v1662_v60 = vpack.c.bf16 %v1581_v58, %v1579_v56 }
 0xf1f   :  { %2630 = vmatmul.msk.bf16.vlgmr.msrb.gmra.mxu2 %vm33_vm0, %v1662_v60 }
 0xf20   :  { %v1659_v57 = vpop.f32.mrf.mxu1 }
 0xf21   :  { %v1663_v14 = vpack.c.bf16 %v1659_v57, %v1657_v39 }
 0xf24   :  { %v1718_v21 = vpop.f32.mrf.mxu3 }
 0xf2c   :  { %v1720_v43 = vpop.f32.mrf.mxu3 }
 0xf2f   :  { %2631 = vmatmul.msk.bf16.gmra.mxu2 %vm33_vm0, %v1663_v14 }
 0xf34   :  { %v1723_v6 = vpop.f32.mrf.mxu3 }
 0xf3c   :  { %v1725_v16 = vpop.f32.mrf.mxu3 }
 0xfa2   :  { %v1687_v37 = vpop.f32.mrf.mxu2 }
 0xfa3   :  { %v1719_v8 = vadd.f32 %v1718_v21, %v1687_v37 }
 0xfa5   :  { %v1728_v13 = vadd.f32 %v1719_v8, %v3266_v38 }
 0xfa7   :  { %v3467_v62 = vadd.f32 %v2793_v59, %v1728_v13 }
 0xfa9   :  { %v1738_v63 = vsel %vm59_vm1, %v3467_v62, 0.0 }
 0xfaa   :  { %1739 = vadd.xlane.f32.xlu2 %v1738_v63  ;;  %v1689_v0 = vpop.f32.mrf.mxu2 }
 0xfab   :  { %v1721_v1 = vadd.f32 %v1720_v43, %v1689_v0 }
 0xfad   :  { %v1729_v5 = vadd.f32 %v1721_v1, %v3271_v2 }
 0xfaf   :  { %v3472_v17 = vadd.f32 %v2793_v59, %v1729_v5 }
 0xfb1   :  { %v1741_v7 = vsel %vm59_vm1, %v3472_v17, 0.0 }
 0xfb2   :  { %1742 = vadd.xlane.f32.xlu0 %v1741_v7  ;;  %v1692_v10 = vpop.f32.mrf.mxu2 }
 0xfb3   :  { %v1724_v38 = vadd.f32 %v1723_v6, %v1692_v10 }
 0xfb5   :  { %v1730_v11 = vadd.f32 %v1724_v38, %v3280_v45 }
 0xfb7   :  { %v3477_v12 = vadd.f32 %v2793_v59, %v1730_v11 }
 0xfb9   :  { %v1744_v15 = vsel %vm59_vm1, %v3477_v12, 0.0 }
 0xfba   :  { %v1694_v61 = vpop.f32.mrf.mxu2  ;;  %1745 = vadd.xlane.f32.xlu1 %v1744_v15 }
 0xfbb   :  { %v1726_v2 = vadd.f32 %v1725_v16, %v1694_v61 }
 0xfbd   :  { %v1731_v18 = vadd.f32 %v1726_v2, %v3290_v28 }
 0xfbf   :  { %v3482_v19 = vadd.f32 %v2793_v59, %v1731_v18 }
 0xfc1   :  { %v1747_v22 = vsel %vm59_vm1, %v3482_v19, 0.0 }
 0xfc2   :  { %1748 = vadd.xlane.f32.xlu2 %v1747_v22 }
0x101d   :  { %v1740_v23 = vpop.xlane.xlu2 %1739 }
0x101e   :  { %v1750_v45 = vmul.f32 %v1740_v23, %v3010_v29 }
0x1020   :  { %v3488_v24 = vsub.f32 %v3467_v62, %v1750_v45 }
0x1022   :  { %v1758_v25 = vmul.f32 %v3488_v24, %v3488_v24 }
0x1024   :  { %v1762_v26 = vsel %vm59_vm1, %v1758_v25, 0.0 }
0x1025   :  { %1763 = vadd.xlane.f32.xlu0 %v1762_v26  ;;  %v1743_v20 = vpop.xlane.xlu0 %1742 }
0x1026   :  { %v1751_v28 = vmul.f32 %v1743_v20, %v3010_v29 }
0x1028   :  { %v1755_v27 = vsub.f32 %v3472_v17, %v1751_v28 }
0x102a   :  { %v1759_v30 = vmul.f32 %v1755_v27, %v1755_v27 }
0x102c   :  { %v1765_v31 = vsel %vm59_vm1, %v1759_v30, 0.0 }
0x102d   :  { %1766 = vadd.xlane.f32.xlu1 %v1765_v31  ;;  %v1746_v33 = vpop.xlane.xlu1 %1745  ;;  %v2757_v31 = vld [vmem:[%s3686_s1 + $0x140] sm:$0xff] }
0x102e   :  { %v1752_v34 = vmul.f32 %v1746_v33, %v3010_v29  ;;  %1921 = vmatpush.bf16.msrb.mxu1 %v2757_v31  ;;  %v2756_v33 = vld [vmem:[%s3686_s1 + $0x138] sm:$0xff]  ;;  %v2939_v31 = vmov 16.0  }
0x1030   :  { %v3498_v35 = vsub.f32 %v3477_v12, %v1752_v34  ;;  %v2755_v34 = vld [vmem:[%s3686_s1 + $0x130] sm:$0xff] }
0x1032   :  { %v1760_v32 = vmul.f32 %v3498_v35, %v3498_v35  ;;  %1922 = vmatpush.bf16.msrb.mxu1 %v2756_v33 }
0x1034   :  { %v1768_v36 = vsel %vm59_vm1, %v1760_v32, 0.0 }
0x1035   :  { %v1749_v3 = vpop.xlane.xlu2 %1748  ;;  %1769 = vadd.xlane.f32.xlu2 %v1768_v36  ;;  %v2794_v36 = vld [vmem:[%s3688_s2 + $0x32] ss:$0 sm:$0xff] }
0x1036   :  { %v1753_v4 = vmul.f32 %v1749_v3, %v3010_v29  ;;  %1923 = vmatpush.bf16.msrb.mxu1 %v2755_v34 }
0x1038   :  { %v3505_v40 = vsub.f32 %v3482_v19, %v1753_v4 }
0x103a   :  { %v1761_v41 = vmul.f32 %v3505_v40, %v3505_v40 }
0x103c   :  { %v1771_v42 = vsel %vm59_vm1, %v1761_v41, 0.0 }
0x103d   :  { %1772 = vadd.xlane.f32.xlu0 %v1771_v42 }
0x1098   :  { %v1764_v52 = vpop.xlane.xlu0 %1763 }
0x1099   :  { %v1774_v47 = vmul.f32 %v1764_v52, %v3010_v29 }
0x109b   :  { %v1778_v48 = vadd.f32 1e-05, %v1774_v47 }
0x109d   :  { %2904 = vrsqrt.f32 %v1778_v48  ;;  %vm1788_vm14 = vweird.f32 %v1778_v48 }
0x10a0   :  { %v1767_v49 = vpop.xlane.xlu1 %1766 }
0x10a1   :  { %v1775_v50 = vmul.f32 %v1767_v49, %v3010_v29 }
0x10a3   :  { %v2905_v51 = vpop.eup %2904  ;;  %v1779_v53 = vadd.f32 1e-05, %v1775_v50 }
0x10a4   :  { %v1783_v54 = vmul.f32 %v2905_v51, %v1778_v48  ;;  %vm1789_vm12 = vweird.f32 %v2905_v51 }
0x10a5   :  { %2906 = vrsqrt.f32 %v1779_v53  ;;  %vm1790_vm2 = vmor %vm1788_vm14, %vm1789_vm12  ;;  %vm1798_vm3 = vweird.f32 %v1779_v53 }
0x10a6   :  { %v1784_v55 = vmul.f32 %v2905_v51, %v1783_v54 }
0x10a8   :  { %v1785_v9 = vmul.f32 0.5, %v1784_v55  ;;  %v1770_v56 = vpop.xlane.xlu2 %1769 }
0x10a9   :  { %v1776_v58 = vmul.f32 %v1770_v56, %v3010_v29 }
0x10aa   :  { %v1786_v57 = vsub.f32 1.5, %v1785_v9  ;;  %v2795_v9 = vld [vmem:[%s3688_s2 + $0x33] ss:$0 sm:$0xff] }
0x10ab   :  { %v2907_v60 = vpop.eup %2906  ;;  %v1780_v39 = vadd.f32 1e-05, %v1776_v58 }
0x10ac   :  { %v1793_v14 = vmul.f32 %v2907_v60, %v1779_v53  ;;  %v1787_v37 = vmul.f32 %v2905_v51, %v1786_v57  ;;  %vm1799_vm15 = vweird.f32 %v2907_v60 }
0x10ad   :  { %2908 = vrsqrt.f32 %v1780_v39  ;;  %vm1800_vm4 = vmor %vm1798_vm3, %vm1799_vm15  ;;  %vm1808_vm6 = vweird.f32 %v1780_v39  ;;  %vm2029_vm15 = vcmask 123904  }
0x10ae   :  { %v1794_v21 = vmul.f32 %v2907_v60, %v1793_v14  ;;  %v1791_v1 = vsel %vm1790_vm2, %v2905_v51, %v1787_v37 }
0x10af   :  { %v1822_v38 = vmul.f32 %v1791_v1, %v3488_v24  ;;  %v2758_v1 = vld [vmem:[%s3686_s1 + $0x148] sm:$0xff] }
0x10b0   :  { %v1795_v8 = vmul.f32 0.5, %v1794_v21  ;;  %v1773_v59 = vpop.xlane.xlu0 %1772 }
0x10b1   :  { %v1777_v13 = vmul.f32 %v1773_v59, %v3010_v29  ;;  %v1940_v59 = vld [vmem:[%s3688_s2 + $0x20] sm:$0x3] }
0x10b2   :  { %v1796_v43 = vsub.f32 1.5, %v1795_v8 }
0x10b3   :  { %v2909_v63 = vpop.eup %2908  ;;  %v1781_v0 = vadd.f32 1e-05, %v1777_v13 }
0x10b4   :  { %v1797_v5 = vmul.f32 %v2907_v60, %v1796_v43  ;;  %v1803_v6 = vmul.f32 %v2909_v63, %v1780_v39  ;;  %vm1809_vm5 = vweird.f32 %v2909_v63 }
0x10b5   :  { %2910 = vrsqrt.f32 %v1781_v0  ;;  %vm1810_vm8 = vmor %vm1808_vm6, %vm1809_vm5  ;;  %vm1818_vm9 = vweird.f32 %v1781_v0  ;;  %vm2093_vm6 = vcmask 33792  }
0x10b6   :  { %v1801_v7 = vsel %vm1800_vm4, %v2907_v60, %v1797_v5  ;;  %v1804_v10 = vmul.f32 %v2909_v63, %v1803_v6 }
0x10b7   :  { %v1823_v11 = vmul.f32 %v1801_v7, %v1755_v27 }
0x10b8   :  { %v1805_v15 = vmul.f32 0.5, %v1804_v10 }
0x10b9   :  { %v1826_v16 = vpack.c.bf16 %v1823_v11, %v1822_v38 }
0x10ba   :  { %v1806_v2 = vsub.f32 1.5, %v1805_v15 }
0x10bb   :  { %v2911_v61 = vpop.eup %2910  ;;  %2646 = vmatmul.msk.bf16.vlgmr.msra.gmra.mxu0 %vm59_vm1, %v1826_v16 }
0x10bc   :  { %v1813_v18 = vmul.f32 %v2911_v61, %v1781_v0  ;;  %v1807_v23 = vmul.f32 %v2909_v63, %v1806_v2  ;;  %vm1819_vm7 = vweird.f32 %v2911_v61  ;;  %v2759_v0 = vld [vmem:[%s3686_s1 + $0x150] sm:$0xff] }
0x10bd   :  { %vm1820_vm10 = vmor %vm1818_vm9, %vm1819_vm7  ;;  %2022 = vmatpush.bf16.msra.mxu3 %v2759_v0  ;;  %v2796_v2 = vld [vmem:[%s3688_s2 + $0x34] ss:$0 sm:$0xff] }
0x10be   :  { %v1814_v22 = vmul.f32 %v2911_v61, %v1813_v18  ;;  %v1811_v26 = vsel %vm1810_vm8, %v2909_v63, %v1807_v23 }
0x10bf   :  { %v1824_v28 = vmul.f32 %v1811_v26, %v3498_v35  ;;  %v2754_v35 = vld [vmem:[%s3686_s1 + $0x128] sm:$0xff] }
0x10c0   :  { %v1815_v45 = vmul.f32 0.5, %v1814_v22  ;;  %1924 = vmatpush.bf16.msrb.mxu1 %v2754_v35 }
0x10c1   :  { %2023 = vmatpush.bf16.msra.mxu3 %v2758_v1 }
0x10c2   :  { %v1816_v25 = vsub.f32 1.5, %v1815_v45 }
0x10c4   :  { %v1817_v20 = vmul.f32 %v2911_v61, %v1816_v25 }
0x10c6   :  { %v1821_v24 = vsel %vm1820_vm10, %v2911_v61, %v1817_v20  ;;  %v2798_v20 = vld [vmem:[%s3688_s2 + $0x36] ss:$0 sm:$0xff] }
0x10c7   :  { %v1825_v27 = vmul.f32 %v1821_v24, %v3505_v40 }
0x10c9   :  { %v1827_v30 = vpack.c.bf16 %v1825_v27, %v1824_v28 }
0x10cb   :  { %2647 = vmatmul.msk.bf16.gmra.mxu0 %vm59_vm1, %v1827_v30 }
0x1138   :  { %v1861_v32 = vpop.f32.mrf.mxu0 }
0x1139   :  { %v1862_v3 = vadd.f32 %v2794_v36, %v1861_v32 }
0x113b   :  { %v1871_v41 = vmax.f32 %v1862_v3, 0.0 }
0x1140   :  { %v1863_v4 = vpop.f32.mrf.mxu0 }
0x1141   :  { %v1864_v40 = vadd.f32 %v2794_v36, %v1863_v4 }
0x1143   :  { %v1872_v42 = vmax.f32 %v1864_v40, 0.0 }
0x1145   :  { %v1875_v44 = vpack.c.bf16 %v1872_v42, %v1871_v41 }
0x1147   :  { %2664 = vmatmul.msk.bf16.vlgmr.msrb.gmra.mxu1 %vm974_vm13, %v1875_v44 }
0x1148   :  { %v1866_v46 = vpop.f32.mrf.mxu0 }
0x1149   :  { %v1867_v52 = vadd.f32 %v2794_v36, %v1866_v46  ;;  %v2760_v46 = vld [vmem:[%s3686_s1 + $0x158] sm:$0xff] }
0x114b   :  { %v1873_v49 = vmax.f32 %v1867_v52, 0.0 }
0x1150   :  { %v1868_v47 = vpop.f32.mrf.mxu0 }
0x1151   :  { %v1869_v48 = vadd.f32 %v2794_v36, %v1868_v47 }
0x1153   :  { %v1874_v50 = vmax.f32 %v1869_v48, 0.0 }
0x1155   :  { %v1876_v51 = vpack.c.bf16 %v1874_v50, %v1873_v49 }
0x1157   :  { %2665 = vmatmul.msk.bf16.gmra.mxu1 %vm974_vm13, %v1876_v51  ;;  %vm1964_vm13 = vcmask 254976  }
0x11c4   :  { %v1926_v53 = vpop.f32.mrf.mxu1 }
0x11c5   :  { %v1927_v14 = vadd.f32 %v2795_v9, %v1926_v53 }
0x11c7   :  { %v1936_v8 = vadd.f32 %v1927_v14, %v3467_v62 }
0x11cc   :  { %v1928_v54 = vpop.f32.mrf.mxu1 }
0x11cd   :  { %v1929_v39 = vadd.f32 %v2795_v9, %v1928_v54 }
0x11cf   :  { %v1937_v37 = vadd.f32 %v1929_v39, %v3472_v17 }
0x11d4   :  { %v1931_v55 = vpop.f32.mrf.mxu1 }
0x11d5   :  { %v1932_v58 = vadd.f32 %v2795_v9, %v1931_v55 }
0x11d7   :  { %v1938_v21 = vadd.f32 %v1932_v58, %v3477_v12  ;;  %v2800_v58 = vld [vmem:[%s3688_s2 + $0x38] ss:$0 sm:$0xff] }
0x11dc   :  { %v1933_v56 = vpop.f32.mrf.mxu1 }
0x11dd   :  { %v1934_v60 = vadd.f32 %v2795_v9, %v1933_v56  ;;  %v2799_v9 = vld [vmem:[%s3688_s2 + $0x37] ss:$0 sm:$0xff] }
0x11df   :  { %v1939_v57 = vadd.f32 %v1934_v60, %v3482_v19 }
0x11e1   :  { %1956 = vmatpush.msra.mxu2 %v1939_v57 }
0x11e3   :  { %1957 = vmatpush.msra.mxu2 %v1938_v21 }
0x11e5   :  { %1958 = vmatpush.msra.mxu2 %v1937_v37  ;;  %v2801_v37 = vld [vmem:[%s3688_s2 + $0x39] ss:$0 sm:$0xff] }
0x11e7   :  { %1959 = vmatpush.msra.mxu2 %v1936_v8 }
0x11e8   :  { %2666 = vmatmul.msk.f32.vlgmr.msra.gmra.mxu2 %vm59_vm1, %v1940_v59 }
0x11e9   :  { %2087 = vmatpush.bf16.msrb.mxu2 %v2760_v46 }
0x126b   :  { %v3553_v13 = vpop.f32.mrf.mxu2 }
0x126c   :  { %v1965_v19 = vsel %vm1964_vm13, %v3553_v13, 0.0 }
0x126d   :  { %1966 = vadd.xlane.f32.xlu1 %v1965_v19 }
0x12e0   :  { %v1967_v12 = vpop.xlane.xlu1 %1966 }
0x12e1   :  { %v1968_v17 = vmul.f32 %v1967_v12, %v3010_v29 }
0x12e3   :  { %v1969_v43 = vsub.f32 %v3553_v13, %v1968_v17 }
0x12e5   :  { %v1970_v62 = vmul.f32 %v1969_v43, %v1969_v43 }
0x12e7   :  { %v1971_v63 = vsel %vm1964_vm13, %v1970_v62, 0.0  ;;  %vm2123_vm13 = vcmask 302080  }
0x12e8   :  { %1972 = vadd.xlane.f32.xlu2 %v1971_v63 }
0x135b   :  { %v1973_v5 = vpop.xlane.xlu2 %1972 }
0x135c   :  { %v1974_v6 = vmul.f32 %v1973_v5, %v3010_v29  ;;  %v2797_v29 = vld [vmem:[%s3688_s2 + $0x35] ss:$0 sm:$0xff] }
0x135e   :  { %v1975_v7 = vadd.f32 1e-05, %v1974_v6 }
0x1360   :  { %2912 = vrsqrt.f32 %v1975_v7  ;;  %vm1982_vm12 = vweird.f32 %v1975_v7 }
0x1361   :  { %2914 = vrcp.f32 %v2939_v31 }
0x1366   :  { %v2913_v10 = vpop.eup %2912 }
0x1367   :  { %v1977_v38 = vmul.f32 %v2913_v10, %v1975_v7  ;;  %vm1983_vm11 = vweird.f32 %v2913_v10  ;;  %v2915_v33 = vpop.eup %2914 }
0x1368   :  { %vm1984_vm14 = vmor %vm1982_vm12, %vm1983_vm11  ;;  %v2034_v34 = vmul.f32 16.0, %v2915_v33  ;;  %vm2038_vm2 = vweird.f32 %v2915_v33  ;;  %vm2125_vm11 = vcmask 295936  }
0x1369   :  { %v1978_v11 = vmul.f32 %v2913_v10, %v1977_v38 }
0x136a   :  { %v2035_v35 = vsub.f32 1.0, %v2034_v34 }
0x136b   :  { %v1979_v15 = vmul.f32 0.5, %v1978_v11 }
0x136c   :  { %v2036_v32 = vmul.f32 %v2915_v33, %v2035_v35 }
0x136d   :  { %v1980_v16 = vsub.f32 1.5, %v1979_v15 }
0x136e   :  { %v2037_v36 = vadd.f32 %v2915_v33, %v2036_v32  ;;  %v2763_v32 = vld [vmem:[%s3686_s1 + $0x170] sm:$0xff] }
0x136f   :  { %v1981_v61 = vmul.f32 %v2913_v10, %v1980_v16  ;;  %2198 = vmatpush.bf16.msrb.mxu0 %v2763_v32 }
0x1370   :  { %v3576_v3 = vsel %vm2038_vm2, %v2915_v33, %v2037_v36  ;;  %v2762_v36 = vld [vmem:[%s3686_s1 + $0x168] sm:$0xff] }
0x1371   :  { %v1985_v18 = vsel %vm1984_vm14, %v2913_v10, %v1981_v61 }
0x1372   :  { %v1986_v22 = vmul.f32 %v1985_v18, %v1969_v43 }
0x1373   :  { %2199 = vmatpush.bf16.msrb.mxu0 %v2762_v36 }
0x1374   :  { %v1989_v23 = vmul.f32 %v2796_v2, %v1986_v22 }
0x1376   :  { %v1992_v45 = vadd.f32 %v2797_v29, %v1989_v23 }
0x1378   :  { %v1993_v25 = vmax.f32 %v1992_v45, 0.0 }
0x137a   :  { %v1994_v26 = vpack.c.bf16 %v1993_v25, %v1993_v25  ;;  %v2941_v25 = vmov 37.0  }
0x137c   :  { %2675 = vmatmul.msk.bf16.vlgmr.msra.gmra.mxu3 %vm59_vm1, %v1994_v26 }
0x13ff   :  { %v2025_v24 = vpop.f32.mrf.mxu3 }
0x1400   :  { %v2026_v28 = vadd.f32 %v2798_v20, %v2025_v24 }
0x1402   :  { %v2030_v27 = vsel %vm2029_vm15, %v2026_v28, 0.0 }
0x1403   :  { %2031 = vadd.xlane.f32.xlu0 %v2030_v27 }
0x1407   :  { %v2027_v30 = vpop.f32.mrf.mxu3 }
0x1476   :  { %v2032_v4 = vpop.xlane.xlu0 %2031 }
0x1477   :  { %v2040_v40 = vmul.f32 %v3576_v3, %v2032_v4  ;;  %v2761_v4 = vld [vmem:[%s3686_s1 + $0x160] sm:$0xff] }
0x1478   :  { %2200 = vmatpush.bf16.msrb.mxu0 %v2761_v4 }
0x1479   :  { %v2041_v41 = vsub.f32 %v2026_v28, %v2040_v40 }
0x147b   :  { %v2042_v42 = vmul.f32 %v2041_v41, %v2041_v41 }
0x147d   :  { %v2043_v44 = vsel %vm2029_vm15, %v2042_v42, 0.0 }
0x147e   :  { %2044 = vadd.xlane.f32.xlu1 %v2043_v44 }
0x14f1   :  { %v2045_v52 = vpop.xlane.xlu1 %2044 }
0x14f2   :  { %v2046_v47 = vmul.f32 %v2045_v52, %v3576_v3 }
0x14f4   :  { %v2047_v48 = vadd.f32 1e-05, %v2046_v47 }
0x14f6   :  { %2916 = vrsqrt.f32 %v2047_v48  ;;  %vm2054_vm4 = vweird.f32 %v2047_v48 }
0x14fc   :  { %v2917_v49 = vpop.eup %2916 }
0x14fd   :  { %v2049_v50 = vmul.f32 %v2917_v49, %v2047_v48  ;;  %vm2055_vm3 = vweird.f32 %v2917_v49 }
0x14fe   :  { %vm2056_vm5 = vmor %vm2054_vm4, %vm2055_vm3  ;;  %vm2189_vm3 = vcmask 392192  }
0x14ff   :  { %v2050_v51 = vmul.f32 %v2917_v49, %v2049_v50  ;;  %v2802_v50 = vld [vmem:[%s3688_s2 + $0x3a] ss:$0 sm:$0xff] }
0x1501   :  { %v2051_v53 = vmul.f32 0.5, %v2050_v51 }
0x1503   :  { %v2052_v54 = vsub.f32 1.5, %v2051_v53  ;;  %v2803_v53 = vld [vmem:[%s3688_s2 + $0x3b] ss:$0 sm:$0xff] }
0x1505   :  { %v2053_v55 = vmul.f32 %v2917_v49, %v2052_v54 }
0x1507   :  { %v2057_v56 = vsel %vm2056_vm5, %v2917_v49, %v2053_v55 }
0x1508   :  { %v2058_v60 = vmul.f32 %v2057_v56, %v2041_v41 }
0x150a   :  { %v2061_v39 = vmul.f32 %v2799_v9, %v2058_v60  ;;  %v2804_v60 = vld [vmem:[%s3688_s2 + $0x3c] ss:$0 sm:$0xff] }
0x150c   :  { %v2064_v57 = vadd.f32 %v2800_v58, %v2061_v39 }
0x150e   :  { %v2065_v14 = vmax.f32 %v2064_v57, 0.0 }
0x1510   :  { %v2066_v21 = vpack.c.bf16 %v2065_v14, %v2065_v14 }
0x1512   :  { %2680 = vmatmul.msk.bf16.vlgmr.msrb.gmra.mxu2 %vm33_vm0, %v2066_v21 }
0x1595   :  { %v2089_v8 = vpop.f32.mrf.mxu2 }
0x1596   :  { %v3594_v59 = vadd.f32 %v2801_v37, %v2089_v8 }
0x1598   :  { %v2094_v19 = vsel %vm2093_vm6, %v3594_v59, -inf }
0x1599   :  { %2095 = vmax.xlane.f32.xlu2 %v2094_v19 }
0x159d   :  { %v2091_v12 = vpop.f32.mrf.mxu2 }
0x160c   :  { %v2096_v17 = vpop.xlane.xlu2 %2095 }
0x160d   :  { %v2097_v43 = vsub.f32 %v3594_v59, %v2096_v17 }
0x160f   :  { %v2098_v62 = vmul.f32 1.442695, %v2097_v43  ;;  %v2764_v43 = vld [vmem:[%s3686_s1 + $0x178] sm:$0xff] }
0x1610   :  { %2256 = vmatpush.bf16.msra.mxu1 %v2764_v43 }
0x1611   :  { %2918 = vpow2.f32 %v2098_v62 }
0x1617   :  { %v2919_v63 = vpop.eup %2918 }
0x1618   :  { %v2100_v0 = vsel %vm2093_vm6, %v2919_v63, 0.0 }
0x1619   :  { %2101 = vadd.xlane.f32.xlu0 %v2100_v0 }
0x168c   :  { %v2102_v1 = vpop.xlane.xlu0 %2101 }
0x168d   :  { %2920 = vrcp.f32 %v2102_v1  ;;  %v2114_v10 = vand.u32 2147483648, %v2102_v1  ;;  %v2112_v11 = vand.u32 2147483647, %v2102_v1  ;;  %vm2108_vm8 = vweird.f32 %v2102_v1 }
0x168e   :  { %2922 = vrcp.f32 %v2941_v25  ;;  %v2807_v25 = vld [vmem:[%s3688_s2 + $0x3f] ss:$0 sm:$0xff] }
0x168f   :  { %v2115_v16 = vor.u32 1.1754944e-38, %v2114_v10  ;;  %vm2113_vm10 = vcmp.eq.f32.partialorder %v2112_v11, 8.507059e+37  ;;  %v2805_v11 = vld [vmem:[%s3688_s2 + $0x3d] ss:$0 sm:$0xff] }
0x1693   :  { %v2921_v5 = vpop.eup %2920 }
0x1694   :  { %v2104_v6 = vmul.f32 %v2921_v5, %v2102_v1  ;;  %vm2109_vm7 = vweird.f32 %v2921_v5  ;;  %v2923_v26 = vpop.eup %2922 }
0x1695   :  { %vm2110_vm9 = vmor %vm2108_vm8, %vm2109_vm7  ;;  %v2130_v20 = vmul.f32 37.0, %v2923_v26  ;;  %vm2134_vm12 = vweird.f32 %v2923_v26  ;;  %vm2267_vm7 = vcmask 310272   ;;  %vm2269_vm8 = vcmask 304128  }
0x1696   :  { %v2105_v7 = vsub.f32 1.0, %v2104_v6 }
0x1697   :  { %v2131_v24 = vsub.f32 1.0, %v2130_v20 }
0x1698   :  { %v2106_v38 = vmul.f32 %v2921_v5, %v2105_v7 }
0x1699   :  { %v2132_v28 = vmul.f32 %v2923_v26, %v2131_v24 }
0x169a   :  { %v2107_v15 = vadd.f32 %v2921_v5, %v2106_v38 }
0x169b   :  { %v2133_v27 = vadd.f32 %v2923_v26, %v2132_v28 }
0x169c   :  { %v2111_v61 = vsel %vm2110_vm9, %v2921_v5, %v2107_v15 }
0x169d   :  { %v2116_v2 = vsel %vm2113_vm10, %v2115_v16, %v2111_v61  ;;  %v2135_v30 = vsel %vm2134_vm12, %v2923_v26, %v2133_v27  ;;  %v2806_v16 = vld [vmem:[%s3688_s2 + $0x3e] ss:$0 sm:$0xff] }
0x169e   :  { %v2117_v18 = vmul.f32 %v2919_v63, %v2116_v2 }
0x16a0   :  { %2119 = vrot.lane.b32.xlu1 %v2117_v18, %s2940_s0 }
0x1712   :  { %v2120_v29 = vpop.permute.xlu1 %2119 }
0x1713   :  { %v3600_v22 = vsel %vm59_vm1, %v3553_v13, %v2120_v29 }
0x1714   :  { %v2124_v23 = vsel %vm2123_vm13, %v3600_v22, 0.0 }
0x1715   :  { %v2126_v45 = vsel %vm2125_vm11, %v2124_v23, 0.0 }
0x1716   :  { %2127 = vadd.xlane.f32.xlu2 %v2126_v45  ;;  %v2942_v45 = vmov 0  }
0x1717   :  { %2776 = vset.pattern.permute.xlu2 %v2942_v45  ;;  %2777 = vset.pattern.permute.xlu0 %v2942_v45 }
0x1789   :  { %v2128_v31 = vpop.xlane.xlu2 %2127 }
0x178a   :  { %v2136_v33 = vmul.f32 %v2135_v30, %v2128_v31 }
0x178c   :  { %v2137_v34 = vsub.f32 %v2124_v23, %v2136_v33  ;;  %v2944_v33 = vmov 38.0  }
0x178e   :  { %v2138_v13 = vmul.f32 %v2137_v34, %v2137_v34 }
0x1790   :  { %v2139_v35 = vsel %vm2125_vm11, %v2138_v13, 0.0 }
0x1791   :  { %2140 = vadd.xlane.f32.xlu0 %v2139_v35 }
0x1804   :  { %v2141_v40 = vpop.xlane.xlu0 %2140 }
0x1805   :  { %v2142_v41 = vmul.f32 %v2141_v40, %v2135_v30 }
0x1807   :  { %v2143_v42 = vadd.f32 1e-05, %v2142_v41 }
0x1809   :  { %2924 = vrsqrt.f32 %v2143_v42  ;;  %vm2150_vm14 = vweird.f32 %v2143_v42 }
0x180f   :  { %v2925_v44 = vpop.eup %2924 }
0x1810   :  { %v2145_v46 = vmul.f32 %v2925_v44, %v2143_v42  ;;  %vm2151_vm1 = vweird.f32 %v2925_v44 }
0x1811   :  { %vm2152_vm2 = vmor %vm2150_vm14, %vm2151_vm1 }
0x1812   :  { %v2146_v52 = vmul.f32 %v2925_v44, %v2145_v46 }
0x1814   :  { %v2147_v47 = vmul.f32 0.5, %v2146_v52  ;;  %v2766_v52 = vld [vmem:[%s3686_s1 + $0x188] sm:$0xff] }
0x1816   :  { %v2148_v48 = vsub.f32 1.5, %v2147_v47  ;;  %v2765_v47 = vld [vmem:[%s3686_s1 + $0x180] sm:$0xff] }
0x1818   :  { %v2149_v49 = vmul.f32 %v2925_v44, %v2148_v48 }
0x181a   :  { %v2153_v51 = vsel %vm2152_vm2, %v2925_v44, %v2149_v49 }
0x181b   :  { %v2154_v54 = vmul.f32 %v2153_v51, %v2137_v34 }
0x181d   :  { %v2157_v55 = vmul.f32 %v2802_v50, %v2154_v54 }
0x181f   :  { %v2160_v9 = vadd.f32 %v2803_v53, %v2157_v55 }
0x1821   :  { %v2161_v56 = vmax.f32 %v2160_v9, 0.0 }
0x1823   :  { %v2162_v58 = vpack.c.bf16 %v2161_v56, %v2161_v56 }
0x1825   :  { %2693 = vmatmul.msk.bf16.vlgmr.msrb.gmra.mxu0 %vm2189_vm3, %v2162_v58  ;;  %v2808_v58 = vld [vmem:[%s3688_s2 + $0x40] ss:$0 sm:$0xff] }
0x18a2   :  { %v2202_v39 = vpop.f32.mrf.mxu0 }
0x18a3   :  { %v2203_v57 = vadd.f32 %v2804_v60, %v2202_v39  ;;  %v2809_v39 = vld [vmem:[%s3688_s2 + $0x41] ss:$0 sm:$0xff] }
0x18a5   :  { %v2206_v14 = vsel %vm2029_vm15, %v2203_v57, 0.0 }
0x18a6   :  { %2207 = vadd.xlane.f32.xlu2 %v2206_v14 }
0x18aa   :  { %v2204_v21 = vpop.f32.mrf.mxu0 }
0x1919   :  { %v2208_v37 = vpop.xlane.xlu2 %2207 }
0x191a   :  { %v2209_v8 = vmul.f32 %v2208_v37, %v3576_v3 }
0x191c   :  { %v2210_v19 = vsub.f32 %v2203_v57, %v2209_v8 }
0x191e   :  { %v2211_v12 = vmul.f32 %v2210_v19, %v2210_v19 }
0x1920   :  { %v2212_v17 = vsel %vm2029_vm15, %v2211_v12, 0.0 }
0x1921   :  { %2213 = vadd.xlane.f32.xlu0 %v2212_v17 }
0x1994   :  { %v2214_v62 = vpop.xlane.xlu0 %2213 }
0x1995   :  { %v2215_v63 = vmul.f32 %v2214_v62, %v3576_v3 }
0x1997   :  { %v2216_v0 = vadd.f32 1e-05, %v2215_v63 }
0x1999   :  { %2926 = vrsqrt.f32 %v2216_v0  ;;  %vm2223_vm5 = vweird.f32 %v2216_v0 }
0x199a   :  { %2928 = vrcp.f32 %v2944_v33 }
0x199f   :  { %v2927_v1 = vpop.eup %2926 }
0x19a0   :  { %v2218_v5 = vmul.f32 %v2927_v1, %v2216_v0  ;;  %vm2224_vm4 = vweird.f32 %v2927_v1  ;;  %v2929_v34 = vpop.eup %2928 }
0x19a1   :  { %vm2225_vm6 = vmor %vm2223_vm5, %vm2224_vm4  ;;  %v2274_v13 = vmul.f32 38.0, %v2929_v34  ;;  %vm2278_vm9 = vweird.f32 %v2929_v34 }
0x19a2   :  { %v2219_v6 = vmul.f32 %v2927_v1, %v2218_v5 }
0x19a3   :  { %v2275_v35 = vsub.f32 1.0, %v2274_v13 }
0x19a4   :  { %v2220_v7 = vmul.f32 0.5, %v2219_v6 }
0x19a5   :  { %v2276_v32 = vmul.f32 %v2929_v34, %v2275_v35 }
0x19a6   :  { %v2221_v10 = vsub.f32 1.5, %v2220_v7  ;;  %v2768_v7 = vld [vmem:[%s3686_s1 + $0x198] sm:$0xff] }
0x19a7   :  { %v2277_v36 = vadd.f32 %v2929_v34, %v2276_v32  ;;  %2399 = vmatpush.bf16.msra.mxu2 %v2768_v7 }
0x19a8   :  { %v2222_v38 = vmul.f32 %v2927_v1, %v2221_v10 }
0x19a9   :  { %v2279_v4 = vsel %vm2278_vm9, %v2929_v34, %v2277_v36 }
0x19aa   :  { %v2226_v15 = vsel %vm2225_vm6, %v2927_v1, %v2222_v38 }
0x19ab   :  { %v2227_v61 = vmul.f32 %v2226_v15, %v2210_v19  ;;  %v2810_v19 = vld [vmem:[%s3688_s2 + $0x42] ss:$0 sm:$0xff] }
0x19ad   :  { %v2230_v2 = vmul.f32 %v2805_v11, %v2227_v61 }
0x19af   :  { %v2233_v18 = vadd.f32 %v2806_v16, %v2230_v2 }
0x19b1   :  { %v2234_v29 = vmax.f32 %v2233_v18, 0.0 }
0x19b3   :  { %v2235_v23 = vpack.c.bf16 %v2234_v29, %v2234_v29 }
0x19b5   :  { %2698 = vmatmul.msk.bf16.vlgmr.msra.gmra.mxu1 %vm33_vm0, %v2235_v23  ;;  %v2811_v23 = vld [vmem:[%s3688_s2 + $0x43] ss:$0 sm:$0xff] }
0x1a32   :  { %v2258_v26 = vpop.f32.mrf.mxu1 }
0x1a33   :  { %v2259_v20 = vadd.f32 %v2807_v25, %v2258_v26 }
0x1a35   :  { %2263 = vrot.lane.b32.xlu2 %v2259_v20, %s2943_s19 }
0x1a3a   :  { %v2260_v24 = vpop.f32.mrf.mxu1 }
0x1a3d   :  { %2428 = vperm.xlu2 %2776, %v2259_v20  }
0x1a8f   :  { %v2264_v28 = vpop.permute.xlu2 %2263 }
0x1a90   :  { %v2266_v27 = vsel %vm2123_vm13, %v3600_v22, %v2264_v28  ;;  %v2767_v22 = vld [vmem:[%s3686_s1 + $0x190] sm:$0xff] }
0x1a91   :  { %v2268_v30 = vsel %vm2267_vm7, %v2266_v27, 0.0  ;;  %2341 = vmatpush.bf16.msrb.mxu3 %v2767_v22  ;;  %v2813_v27 = vld [vmem:[%s3688_s2 + $0x45] ss:$0 sm:$0xff] }
0x1a92   :  { %v2270_v31 = vsel %vm2269_vm8, %v2268_v30, 0.0 }
0x1a93   :  { %2271 = vadd.xlane.f32.xlu0 %v2270_v31 }
0x1a95   :  { %2342 = vmatpush.bf16.msrb.mxu3 %v2766_v52 }
0x1a99   :  { %2343 = vmatpush.bf16.msrb.mxu3 %v2765_v47 }
0x1b06   :  { %v2272_v40 = vpop.xlane.xlu0 %2271 }
0x1b07   :  { %v2280_v41 = vmul.f32 %v2279_v4, %v2272_v40 }
0x1b09   :  { %v2281_v42 = vsub.f32 %v2268_v30, %v2280_v41 }
0x1b0b   :  { %v2282_v44 = vmul.f32 %v2281_v42, %v2281_v42 }
0x1b0d   :  { %v2283_v46 = vsel %vm2269_vm8, %v2282_v44, 0.0 }
0x1b0e   :  { %2284 = vadd.xlane.f32.xlu1 %v2283_v46 }
0x1b81   :  { %v2285_v48 = vpop.xlane.xlu1 %2284 }
0x1b82   :  { %v2286_v49 = vmul.f32 %v2285_v48, %v2279_v4  ;;  %v2424_v48 = vlaneseq }
0x1b84   :  { %v2287_v50 = vadd.f32 1e-05, %v2286_v49  ;;  %v2425_v49 = vand.u32 127, %v2424_v48 }
0x1b86   :  { %2930 = vrsqrt.f32 %v2287_v50  ;;  %vm2294_vm13 = vweird.f32 %v2287_v50  ;;  %vm2426_vm4 = vcmp.eq.s32.totalorder %v2425_v49, 5  ;;  %vm2432_vm5 = vcmp.eq.s32.totalorder %v2425_v49, 6 }
0x1b8c   :  { %v2931_v51 = vpop.eup %2930 }
0x1b8d   :  { %v2289_v53 = vmul.f32 %v2931_v51, %v2287_v50  ;;  %vm2295_vm10 = vweird.f32 %v2931_v51  ;;  %v2429_v50 = vpop.permute.xlu2 %2428 }
0x1b8e   :  { %vm2296_vm11 = vmor %vm2294_vm13, %vm2295_vm10 }
0x1b8f   :  { %v2290_v54 = vmul.f32 %v2931_v51, %v2289_v53 }
0x1b91   :  { %v2291_v55 = vmul.f32 0.5, %v2290_v54 }
0x1b93   :  { %v2292_v9 = vsub.f32 1.5, %v2291_v55 }
0x1b95   :  { %v2293_v56 = vmul.f32 %v2931_v51, %v2292_v9 }
0x1b97   :  { %v2297_v60 = vsel %vm2296_vm11, %v2931_v51, %v2293_v56  ;;  %v2431_v51 = vsel %vm2426_vm4, %v2429_v50, %v3594_v59 }
0x1b98   :  { %v2298_v57 = vmul.f32 %v2297_v60, %v2281_v42 }
0x1b9a   :  { %v2301_v14 = vmul.f32 %v2808_v58, %v2298_v57 }
0x1b9c   :  { %v2304_v21 = vadd.f32 %v2809_v39, %v2301_v14 }
0x1b9e   :  { %v2305_v37 = vmax.f32 %v2304_v21, 0.0 }
0x1ba0   :  { %v2306_v8 = vpack.c.bf16 %v2305_v37, %v2305_v37 }
0x1ba2   :  { %2711 = vmatmul.msk.bf16.vlgmr.msrb.gmra.mxu3 %vm2189_vm3, %v2306_v8 }
0x1c25   :  { %v2345_v12 = vpop.f32.mrf.mxu3 }
0x1c26   :  { %v2346_v17 = vadd.f32 %v2810_v19, %v2345_v12 }
0x1c28   :  { %v2349_v43 = vsel %vm2029_vm15, %v2346_v17, 0.0 }
0x1c29   :  { %2350 = vadd.xlane.f32.xlu0 %v2349_v43 }
0x1c2d   :  { %v2347_v62 = vpop.f32.mrf.mxu3 }
0x1c9c   :  { %v2351_v63 = vpop.xlane.xlu0 %2350 }
0x1c9d   :  { %v2352_v0 = vmul.f32 %v2351_v63, %v3576_v3 }
0x1c9f   :  { %v2353_v1 = vsub.f32 %v2346_v17, %v2352_v0 }
0x1ca1   :  { %v2354_v5 = vmul.f32 %v2353_v1, %v2353_v1 }
0x1ca3   :  { %v2355_v6 = vsel %vm2029_vm15, %v2354_v5, 0.0 }
0x1ca4   :  { %2356 = vadd.xlane.f32.xlu0 %v2355_v6 }
0x1d17   :  { %v2357_v10 = vpop.xlane.xlu0 %2356 }
0x1d18   :  { %v2358_v38 = vmul.f32 %v2357_v10, %v3576_v3  ;;  %v2812_v3 = vld [vmem:[%s3688_s2 + $0x44] ss:$0 sm:$0xff] }
0x1d1a   :  { %v2359_v11 = vadd.f32 1e-05, %v2358_v38 }
0x1d1c   :  { %2932 = vrsqrt.f32 %v2359_v11  ;;  %vm2366_vm1 = vweird.f32 %v2359_v11 }
0x1d22   :  { %v2933_v15 = vpop.eup %2932 }
0x1d23   :  { %v2361_v16 = vmul.f32 %v2933_v15, %v2359_v11  ;;  %vm2367_vm12 = vweird.f32 %v2933_v15 }
0x1d24   :  { %vm2368_vm15 = vmor %vm2366_vm1, %vm2367_vm12 }
0x1d25   :  { %v2362_v61 = vmul.f32 %v2933_v15, %v2361_v16 }
0x1d27   :  { %v2363_v2 = vmul.f32 0.5, %v2362_v61 }
0x1d29   :  { %v2364_v18 = vsub.f32 1.5, %v2363_v2 }
0x1d2b   :  { %v2365_v29 = vmul.f32 %v2933_v15, %v2364_v18 }
0x1d2d   :  { %v2369_v45 = vsel %vm2368_vm15, %v2933_v15, %v2365_v29 }
0x1d2e   :  { %v2370_v25 = vmul.f32 %v2369_v45, %v2353_v1 }
0x1d30   :  { %v2373_v26 = vmul.f32 %v2811_v23, %v2370_v25 }
0x1d32   :  { %v2376_v20 = vadd.f32 %v2812_v3, %v2373_v26 }
0x1d34   :  { %v2377_v24 = vmax.f32 %v2376_v20, 0.0 }
0x1d36   :  { %v2378_v28 = vpack.c.bf16 %v2377_v24, %v2377_v24 }
0x1d38   :  { %2716 = vmatmul.msk.bf16.vlgmr.msra.gmra.mxu2 %vm33_vm0, %v2378_v28 }
0x1dbb   :  { %v2401_v30 = vpop.f32.mrf.mxu2 }
0x1dbc   :  { %v2402_v31 = vadd.f32 %v2813_v27, %v2401_v30 }
0x1dbe   :  { %v2405_v33 = vsub.f32 0.0, %v2402_v31 }
0x1dc0   :  { %v2406_v34 = vmul.f32 1.442695, %v2405_v33 }
0x1dc2   :  { %2934 = vpow2.f32 %v2406_v34 }
0x1dc3   :  { %v2403_v13 = vpop.f32.mrf.mxu2 }
0x1dc8   :  { %v2935_v35 = vpop.eup %2934 }
0x1dc9   :  { %v2408_v32 = vadd.f32 1.0, %v2935_v35 }
0x1dcb   :  { %2936 = vrcp.f32 %v2408_v32  ;;  %v2420_v41 = vand.u32 2147483648, %v2408_v32  ;;  %v2418_v44 = vand.u32 2147483647, %v2408_v32  ;;  %vm2414_vm0 = vweird.f32 %v2408_v32 }
0x1dcd   :  { %v2421_v22 = vor.u32 1.1754944e-38, %v2420_v41  ;;  %vm2419_vm3 = vcmp.eq.f32.partialorder %v2418_v44, 8.507059e+37 }
0x1dd1   :  { %v2937_v36 = vpop.eup %2936 }
0x1dd2   :  { %v2410_v4 = vmul.f32 %v2937_v36, %v2408_v32  ;;  %vm2415_vm14 = vweird.f32 %v2937_v36 }
0x1dd3   :  { %vm2416_vm2 = vmor %vm2414_vm0, %vm2415_vm14 }
0x1dd4   :  { %v2411_v40 = vsub.f32 1.0, %v2410_v4 }
0x1dd6   :  { %v2412_v42 = vmul.f32 %v2937_v36, %v2411_v40 }
0x1dd8   :  { %v2413_v46 = vadd.f32 %v2937_v36, %v2412_v42 }
0x1dda   :  { %v2417_v52 = vsel %vm2416_vm2, %v2937_v36, %v2413_v46 }
0x1ddb   :  { %v2422_v47 = vsel %vm2419_vm3, %v2421_v22, %v2417_v52 }
0x1ddc   :  { %2435 = vperm.xlu0 %2777, %v2422_v47  }
0x1e4e   :  { %v2436_v53 = vpop.permute.xlu0 %2435 }
0x1e4f   :  { %v2438_v54 = vsel %vm2432_vm5, %v2436_v53, %v2431_v51 }
0x1e50   :  { %2439 = vst [vmem:[%s3689_s3] sm:$0x3] %v2438_v54 }

</bundles_post_ra>
